<compile_context>
chip_gen: v7x
topology: tpu7x:2x2x1
jax: 0.10.0
libtpu: 0.0.40
codegen_flags: <defaults>
</compile_context>

<pallas_src>
import jax
import jax.numpy as jnp
from jax.experimental import pallas as pl
from jax.experimental.pallas import tpu as pltpu

INPUT_SIZE = 30
PAD_IN = 32          # zero-padded K dim for the first matmul
HIDDEN = 64
FFN = 2048           # nn.Transformer default dim_feedforward
OUTPUT_SIZE = 2
OUT_PAD = 128        # lane-dense output width
NUM_LAYERS = 2
LN_EPS = 1e-5

# Row indices into the packed (35, HIDDEN) f32 bias/LayerNorm slab `vh`.
VH_FC_B = 0
VH_ENC = 1           # + 6*l : [attn_b, ln1w, ln1b, ffn_b2, ln2w, ln2b]
VH_ENC_NORM = 13     # [w, b]
VH_DEC = 15          # + 9*l : [sattn_b, ln1w, ln1b, cattn_b, ln2w, ln2b, ffn_b2, ln3w, ln3b]
VH_DEC_NORM = 33     # [w, b]
VH_ROWS = 35


def predictor_kernel(
    x_ref, fc_w_ref,
    e_att_w_ref, e_w1_ref, e_w2_ref,
    d_satt_w_ref, d_catt_w_ref, d_w1_ref, d_w2_ref,
    out_w_ref, out_b_ref,
    vh_ref, vf_ref,
    o_ref,
):
    H = HIDDEN

    def vec(i):                       # (1, H) f32 bias / LN row (static slice)
        return vh_ref[i:i + 1, :]

    def fvec(i):                      # (1, FFN) f32 bias row
        return vf_ref[i:i + 1, :]

    def dot(a, w):                    # f32 activations x bf16-stored weights
        return jnp.dot(a, w.astype(jnp.float32),
                       preferred_element_type=jnp.float32)

    def layernorm(h, w, b):
        mu = jnp.mean(h, axis=-1, keepdims=True)
        var = jnp.mean((h - mu) ** 2, axis=-1, keepdims=True)
        return (h - mu) * jax.lax.rsqrt(var + LN_EPS) * w + b

    x = x_ref[...]                                        # (B, 32) f32
    h0 = dot(x, fc_w_ref[...]) + vec(VH_FC_B)             # (B, H)

    # ---------------- Transformer encoder (post-norm, 2 layers) ----------------
    h = h0
    for l in range(NUM_LAYERS):
        base = VH_ENC + 6 * l
        # folded self-attention (seq_len == 1): both layers packed along lanes
        sa = dot(h, e_att_w_ref[...])[:, l * H:(l + 1) * H] + vec(base + 0)
        h = layernorm(h + sa, vec(base + 1), vec(base + 2))
        # feed-forward (ReLU); down-proj packed lane-dense (F, 2H)
        ff = jnp.maximum(dot(h, e_w1_ref[l]) + fvec(l), 0.0)
        ff = dot(ff, e_w2_ref[...])[:, l * H:(l + 1) * H] + vec(base + 3)
        h = layernorm(h + ff, vec(base + 4), vec(base + 5))
    memory = layernorm(h, vec(VH_ENC_NORM), vec(VH_ENC_NORM + 1))   # encoder.norm

    # Cross-attention value path depends only on `memory`; compute both layers once.
    ca_all = dot(memory, d_catt_w_ref[...])               # (B, 2H)

    # ---------------- Transformer decoder (post-norm, 2 layers); tgt = h0 ------
    t = h0
    for l in range(NUM_LAYERS):
        base = VH_DEC + 9 * l
        # folded (masked) self-attention
        sa = dot(t, d_satt_w_ref[...])[:, l * H:(l + 1) * H] + vec(base + 0)
        t = layernorm(t + sa, vec(base + 1), vec(base + 2))
        # folded cross-attention over memory
        ca = ca_all[:, l * H:(l + 1) * H] + vec(base + 3)
        t = layernorm(t + ca, vec(base + 4), vec(base + 5))
        # feed-forward (ReLU)
        ff = jnp.maximum(dot(t, d_w1_ref[l]) + fvec(NUM_LAYERS + l), 0.0)
        ff = dot(ff, d_w2_ref[...])[:, l * H:(l + 1) * H] + vec(base + 6)
        t = layernorm(t + ff, vec(base + 7), vec(base + 8))
    t = layernorm(t, vec(VH_DEC_NORM), vec(VH_DEC_NORM + 1))        # decoder.norm

    # Lane-dense (B, 128) output; real logits live in columns 0:2.
    o_ref[...] = dot(t, out_w_ref[...]) + out_b_ref[...]


def sports_outcome_predictor(x, packed):
    B = x.shape[0]
    x_pad = jnp.zeros((B, PAD_IN), jnp.float32).at[:, :INPUT_SIZE].set(x)
    args = (
        x_pad, packed["fc_w"],
        packed["e_att_w"], packed["e_w1"], packed["e_w2"],
        packed["d_satt_w"], packed["d_catt_w"], packed["d_w1"], packed["d_w2"],
        packed["out_w"], packed["out_b"],
        packed["vh"], packed["vf"],
    )
    out = pl.pallas_call(
        predictor_kernel,
        out_shape=jax.ShapeDtypeStruct((B, OUT_PAD), jnp.float32),
        in_specs=[pl.BlockSpec(memory_space=pltpu.MemorySpace.VMEM)] * len(args),
        out_specs=pl.BlockSpec(memory_space=pltpu.MemorySpace.VMEM),
    )(*args)
    return out[:, :OUTPUT_SIZE]


# --------------------------------------------------------------------------
# Parameter construction (PyTorch (out,in) weights are stored pre-transposed
# as (in,out) so every kernel matmul is x @ W).
# --------------------------------------------------------------------------
def init_raw_params(key):
    keys = iter(jax.random.split(key, 64))

    def w(shape, scale=0.05):
        return jax.random.normal(next(keys), shape, jnp.float32) * scale

    H, F, L = HIDDEN, FFN, NUM_LAYERS
    ones = lambda s: jnp.ones(s, jnp.float32)
    zeros = lambda s: jnp.zeros(s, jnp.float32)

    enc = []
    for _ in range(L):
        enc.append(dict(
            wv=w((H, H)), bv=w((H,), 0.02), wo=w((H, H)), bo=w((H,), 0.02),
            ln1w=ones((H,)), ln1b=zeros((H,)),
            w1=w((H, F)), b1=w((F,), 0.02), w2=w((F, H)), b2=w((H,), 0.02),
            ln2w=ones((H,)), ln2b=zeros((H,)),
        ))
    dec = []
    for _ in range(L):
        dec.append(dict(
            swv=w((H, H)), sbv=w((H,), 0.02), swo=w((H, H)), sbo=w((H,), 0.02),
            ln1w=ones((H,)), ln1b=zeros((H,)),
            cwv=w((H, H)), cbv=w((H,), 0.02), cwo=w((H, H)), cbo=w((H,), 0.02),
            ln2w=ones((H,)), ln2b=zeros((H,)),
            w1=w((H, F)), b1=w((F,), 0.02), w2=w((F, H)), b2=w((H,), 0.02),
            ln3w=ones((H,)), ln3b=zeros((H,)),
        ))
    return dict(
        fc_w=w((INPUT_SIZE, H)), fc_b=w((H,), 0.02),
        enc=enc, enc_nw=ones((H,)), enc_nb=zeros((H,)),
        dec=dec, dec_nw=ones((H,)), dec_nb=zeros((H,)),
        out_w=w((H, OUTPUT_SIZE)), out_b=w((OUTPUT_SIZE,), 0.02),
    )


def pack_params(raw):
    """Fold attention pairs, pack biases/LN into slabs, cast weights to bf16."""
    H = HIDDEN

    def fold(wv, bv, wo, bo):
        return wv @ wo, bv @ wo + bo

    fc_w = jnp.zeros((PAD_IN, H), jnp.float32).at[:INPUT_SIZE].set(raw["fc_w"])

    vh_rows = [raw["fc_b"]]
    vf_rows = []
    e_att_w, e_w1, e_w2 = [], [], []
    for l in raw["enc"]:
        W, b = fold(l["wv"], l["bv"], l["wo"], l["bo"])
        e_att_w.append(W)
        e_w1.append(l["w1"]); e_w2.append(l["w2"]); vf_rows.append(l["b1"])
        vh_rows += [b, l["ln1w"], l["ln1b"], l["b2"], l["ln2w"], l["ln2b"]]
    vh_rows += [raw["enc_nw"], raw["enc_nb"]]

    d_satt_w, d_catt_w, d_w1, d_w2 = [], [], [], []
    for l in raw["dec"]:
        Ws, bs = fold(l["swv"], l["sbv"], l["swo"], l["sbo"])
        Wc, bc = fold(l["cwv"], l["cbv"], l["cwo"], l["cbo"])
        d_satt_w.append(Ws); d_catt_w.append(Wc)
        d_w1.append(l["w1"]); d_w2.append(l["w2"]); vf_rows.append(l["b1"])
        vh_rows += [bs, l["ln1w"], l["ln1b"], bc, l["ln2w"], l["ln2b"],
                    l["b2"], l["ln3w"], l["ln3b"]]
    vh_rows += [raw["dec_nw"], raw["dec_nb"]]
    assert len(vh_rows) == VH_ROWS

    out_w = jnp.zeros((H, OUT_PAD), jnp.float32).at[:, :OUTPUT_SIZE].set(raw["out_w"])
    out_b = jnp.zeros((1, OUT_PAD), jnp.float32).at[0, :OUTPUT_SIZE].set(raw["out_b"])

    bf = lambda a: a.astype(jnp.bfloat16)
    return dict(
        fc_w=bf(fc_w),                                     # (32, 64)
        e_att_w=bf(jnp.concatenate(e_att_w, axis=1)),      # (64, 128)  lane-dense
        e_w1=bf(jnp.stack(e_w1)),                          # (2, 64, 2048)
        e_w2=bf(jnp.concatenate(e_w2, axis=1)),            # (2048, 128) lane-dense
        d_satt_w=bf(jnp.concatenate(d_satt_w, axis=1)),    # (64, 128)
        d_catt_w=bf(jnp.concatenate(d_catt_w, axis=1)),    # (64, 128)
        d_w1=bf(jnp.stack(d_w1)),                          # (2, 64, 2048)
        d_w2=bf(jnp.concatenate(d_w2, axis=1)),            # (2048, 128)
        out_w=bf(out_w),                                   # (64, 128)
        out_b=out_b,                                       # (1, 128) f32
        vh=jnp.stack(vh_rows),                             # (35, 64)  f32
        vf=jnp.stack(vf_rows),                             # (4, 2048) f32
    )


def reference_forward(x, raw):
    """Pure-JAX, unfused f32 reference of the same forward pass."""
    def ln(h, w, b):
        mu = jnp.mean(h, axis=-1, keepdims=True)
        var = jnp.mean((h - mu) ** 2, axis=-1, keepdims=True)
        return (h - mu) / jnp.sqrt(var + LN_EPS) * w + b

    h0 = x @ raw["fc_w"] + raw["fc_b"]
    h = h0
    for l in raw["enc"]:
        sa = (h @ l["wv"] + l["bv"]) @ l["wo"] + l["bo"]
        h = ln(h + sa, l["ln1w"], l["ln1b"])
        ff = jnp.maximum(h @ l["w1"] + l["b1"], 0.0) @ l["w2"] + l["b2"]
        h = ln(h + ff, l["ln2w"], l["ln2b"])
    mem = ln(h, raw["enc_nw"], raw["enc_nb"])
    t = h0
    for l in raw["dec"]:
        sa = (t @ l["swv"] + l["sbv"]) @ l["swo"] + l["sbo"]
        t = ln(t + sa, l["ln1w"], l["ln1b"])
        ca = (mem @ l["cwv"] + l["cbv"]) @ l["cwo"] + l["cbo"]
        t = ln(t + ca, l["ln2w"], l["ln2b"])
        ff = jnp.maximum(t @ l["w1"] + l["b1"], 0.0) @ l["w2"] + l["b2"]
        t = ln(t + ff, l["ln3w"], l["ln3b"])
    t = ln(t, raw["dec_nw"], raw["dec_nb"])
    return t @ raw["out_w"] + raw["out_b"]


if __name__ == "__main__":
    key = jax.random.PRNGKey(0)
    kx, kp = jax.random.split(key)
    B = 8
    x = jax.random.uniform(kx, (B, INPUT_SIZE), jnp.float32)  # MinMax-scaled-like features

    raw = init_raw_params(kp)
    packed = pack_params(raw)

    out = jax.block_until_ready(sports_outcome_predictor(x, packed))
    assert out.shape == (B, OUTPUT_SIZE) and out.dtype == jnp.float32

    ref = jax.block_until_ready(reference_forward(x, raw))
    assert jnp.allclose(out, ref, rtol=1e-2, atol=1e-2), (out, ref)

    print("KERNEL_OK")
</pallas_src>

<mosaic_0001>
module attributes {stable_mosaic.version = 11 : i64} {
  func.func @predictor_kernel(%arg0: memref<8x32xf32, #tpu.memory_space<vmem>>, %arg1: memref<32x64xbf16, #tpu.memory_space<vmem>>, %arg2: memref<64x128xbf16, #tpu.memory_space<vmem>>, %arg3: memref<2x64x2048xbf16, #tpu.memory_space<vmem>>, %arg4: memref<2048x128xbf16, #tpu.memory_space<vmem>>, %arg5: memref<64x128xbf16, #tpu.memory_space<vmem>>, %arg6: memref<64x128xbf16, #tpu.memory_space<vmem>>, %arg7: memref<2x64x2048xbf16, #tpu.memory_space<vmem>>, %arg8: memref<2048x128xbf16, #tpu.memory_space<vmem>>, %arg9: memref<64x128xbf16, #tpu.memory_space<vmem>>, %arg10: memref<1x128xf32, #tpu.memory_space<vmem>>, %arg11: memref<35x64xf32, #tpu.memory_space<vmem>>, %arg12: memref<4x2048xf32, #tpu.memory_space<vmem>>, %arg13: memref<8x128xf32, #tpu.memory_space<vmem>>) attributes {dimension_semantics = [], scalar_prefetch = 0 : i64, scratch_operands = 0 : i64, tpu.core_type = #tpu.core_type<tc>} {
    %c0 = arith.constant 0 : index
    %c0_0 = arith.constant 0 : index
    %0 = vector.load %arg0[%c0, %c0_0] : memref<8x32xf32, #tpu.memory_space<vmem>>, vector<8x32xf32>
    %c0_1 = arith.constant 0 : index
    %c0_2 = arith.constant 0 : index
    %1 = vector.load %arg1[%c0_1, %c0_2] : memref<32x64xbf16, #tpu.memory_space<vmem>>, vector<32x64xbf16>
    %2 = arith.extf %1 : vector<32x64xbf16> to vector<32x64xf32>
    %cst = arith.constant dense<0.000000e+00> : vector<8x64xf32>
    %3 = tpu.matmul %0, %2, %cst {dimension_numbers = #tpu.dot_dimension_numbers<[1], [0], [0], [1], [0, 0, 1, 1], [], []>} : vector<8x32xf32>, vector<32x64xf32>, vector<8x64xf32> -> vector<8x64xf32>
    %c0_3 = arith.constant 0 : index
    %c0_4 = arith.constant 0 : index
    %4 = vector.load %arg11[%c0_3, %c0_4] : memref<35x64xf32, #tpu.memory_space<vmem>>, vector<1x64xf32>
    %5 = vector.broadcast %4 : vector<1x64xf32> to vector<8x64xf32>
    %6 = arith.addf %3, %5 : vector<8x64xf32>
    %c0_5 = arith.constant 0 : index
    %c0_6 = arith.constant 0 : index
    %7 = vector.load %arg2[%c0_5, %c0_6] : memref<64x128xbf16, #tpu.memory_space<vmem>>, vector<64x128xbf16>
    %8 = arith.extf %7 : vector<64x128xbf16> to vector<64x128xf32>
    %cst_7 = arith.constant dense<0.000000e+00> : vector<8x128xf32>
    %9 = tpu.matmul %6, %8, %cst_7 {dimension_numbers = #tpu.dot_dimension_numbers<[1], [0], [0], [1], [0, 0, 1, 1], [], []>} : vector<8x64xf32>, vector<64x128xf32>, vector<8x128xf32> -> vector<8x128xf32>
    %10 = vector.extract_strided_slice %9 {offsets = [0, 0], sizes = [8, 64], strides = [1, 1]} : vector<8x128xf32> to vector<8x64xf32>
    %c1 = arith.constant 1 : index
    %c0_8 = arith.constant 0 : index
    %11 = vector.load %arg11[%c1, %c0_8] : memref<35x64xf32, #tpu.memory_space<vmem>>, vector<1x64xf32>
    %12 = vector.broadcast %11 : vector<1x64xf32> to vector<8x64xf32>
    %13 = arith.addf %10, %12 : vector<8x64xf32>
    %14 = arith.addf %6, %13 : vector<8x64xf32>
    %c2 = arith.constant 2 : index
    %c0_9 = arith.constant 0 : index
    %15 = vector.load %arg11[%c2, %c0_9] : memref<35x64xf32, #tpu.memory_space<vmem>>, vector<1x64xf32>
    %c3 = arith.constant 3 : index
    %c0_10 = arith.constant 0 : index
    %16 = vector.load %arg11[%c3, %c0_10] : memref<35x64xf32, #tpu.memory_space<vmem>>, vector<1x64xf32>
    %cst_11 = arith.constant dense<0.000000e+00> : vector<8xf32>
    %17 = vector.multi_reduction <add>, %14, %cst_11 [1] : vector<8x64xf32> to vector<8xf32>
    %18 = vector.shape_cast %17 : vector<8xf32> to vector<8x1xf32>
    %cst_12 = arith.constant 6.400000e+01 : f32
    %19 = vector.broadcast %cst_12 : f32 to vector<8x1xf32>
    %20 = arith.divf %18, %19 : vector<8x1xf32>
    %21 = vector.broadcast %20 : vector<8x1xf32> to vector<8x64xf32>
    %22 = arith.subf %14, %21 : vector<8x64xf32>
    %23 = arith.mulf %22, %22 : vector<8x64xf32>
    %cst_13 = arith.constant dense<0.000000e+00> : vector<8xf32>
    %24 = vector.multi_reduction <add>, %23, %cst_13 [1] : vector<8x64xf32> to vector<8xf32>
    %25 = vector.shape_cast %24 : vector<8xf32> to vector<8x1xf32>
    %cst_14 = arith.constant 6.400000e+01 : f32
    %26 = vector.broadcast %cst_14 : f32 to vector<8x1xf32>
    %27 = arith.divf %25, %26 : vector<8x1xf32>
    %28 = vector.broadcast %20 : vector<8x1xf32> to vector<8x64xf32>
    %29 = arith.subf %14, %28 : vector<8x64xf32>
    %cst_15 = arith.constant 9.99999974E-6 : f32
    %30 = vector.broadcast %cst_15 : f32 to vector<8x1xf32>
    %31 = arith.addf %27, %30 : vector<8x1xf32>
    %32 = math.rsqrt %31 : vector<8x1xf32>
    %33 = vector.broadcast %32 : vector<8x1xf32> to vector<8x64xf32>
    %34 = arith.mulf %29, %33 : vector<8x64xf32>
    %35 = vector.broadcast %15 : vector<1x64xf32> to vector<8x64xf32>
    %36 = arith.mulf %34, %35 : vector<8x64xf32>
    %37 = vector.broadcast %16 : vector<1x64xf32> to vector<8x64xf32>
    %38 = arith.addf %36, %37 : vector<8x64xf32>
    %c0_16 = arith.constant 0 : index
    %c0_17 = arith.constant 0 : index
    %c0_18 = arith.constant 0 : index
    %39 = vector.load %arg3[%c0_16, %c0_17, %c0_18] : memref<2x64x2048xbf16, #tpu.memory_space<vmem>>, vector<1x64x2048xbf16>
    %40 = vector.shape_cast %39 : vector<1x64x2048xbf16> to vector<64x2048xbf16>
    %41 = arith.extf %40 : vector<64x2048xbf16> to vector<64x2048xf32>
    %cst_19 = arith.constant dense<0.000000e+00> : vector<8x2048xf32>
    %42 = tpu.matmul %38, %41, %cst_19 {dimension_numbers = #tpu.dot_dimension_numbers<[1], [0], [0], [1], [0, 0, 1, 1], [], []>} : vector<8x64xf32>, vector<64x2048xf32>, vector<8x2048xf32> -> vector<8x2048xf32>
    %c0_20 = arith.constant 0 : index
    %c0_21 = arith.constant 0 : index
    %43 = vector.load %arg12[%c0_20, %c0_21] : memref<4x2048xf32, #tpu.memory_space<vmem>>, vector<1x2048xf32>
    %44 = vector.broadcast %43 : vector<1x2048xf32> to vector<8x2048xf32>
    %45 = arith.addf %42, %44 : vector<8x2048xf32>
    %cst_22 = arith.constant 0.000000e+00 : f32
    %46 = vector.broadcast %cst_22 : f32 to vector<8x2048xf32>
    %47 = arith.maximumf %45, %46 : vector<8x2048xf32>
    %c0_23 = arith.constant 0 : index
    %c0_24 = arith.constant 0 : index
    %48 = vector.load %arg4[%c0_23, %c0_24] : memref<2048x128xbf16, #tpu.memory_space<vmem>>, vector<2048x128xbf16>
    %49 = arith.extf %48 : vector<2048x128xbf16> to vector<2048x128xf32>
    %cst_25 = arith.constant dense<0.000000e+00> : vector<8x128xf32>
    %50 = tpu.matmul %47, %49, %cst_25 {dimension_numbers = #tpu.dot_dimension_numbers<[1], [0], [0], [1], [0, 0, 1, 1], [], []>} : vector<8x2048xf32>, vector<2048x128xf32>, vector<8x128xf32> -> vector<8x128xf32>
    %51 = vector.extract_strided_slice %50 {offsets = [0, 0], sizes = [8, 64], strides = [1, 1]} : vector<8x128xf32> to vector<8x64xf32>
    %c4 = arith.constant 4 : index
    %c0_26 = arith.constant 0 : index
    %52 = vector.load %arg11[%c4, %c0_26] : memref<35x64xf32, #tpu.memory_space<vmem>>, vector<1x64xf32>
    %53 = vector.broadcast %52 : vector<1x64xf32> to vector<8x64xf32>
    %54 = arith.addf %51, %53 : vector<8x64xf32>
    %55 = arith.addf %38, %54 : vector<8x64xf32>
    %c5 = arith.constant 5 : index
    %c0_27 = arith.constant 0 : index
    %56 = vector.load %arg11[%c5, %c0_27] : memref<35x64xf32, #tpu.memory_space<vmem>>, vector<1x64xf32>
    %c6 = arith.constant 6 : index
    %c0_28 = arith.constant 0 : index
    %57 = vector.load %arg11[%c6, %c0_28] : memref<35x64xf32, #tpu.memory_space<vmem>>, vector<1x64xf32>
    %cst_29 = arith.constant dense<0.000000e+00> : vector<8xf32>
    %58 = vector.multi_reduction <add>, %55, %cst_29 [1] : vector<8x64xf32> to vector<8xf32>
    %59 = vector.shape_cast %58 : vector<8xf32> to vector<8x1xf32>
    %cst_30 = arith.constant 6.400000e+01 : f32
    %60 = vector.broadcast %cst_30 : f32 to vector<8x1xf32>
    %61 = arith.divf %59, %60 : vector<8x1xf32>
    %62 = vector.broadcast %61 : vector<8x1xf32> to vector<8x64xf32>
    %63 = arith.subf %55, %62 : vector<8x64xf32>
    %64 = arith.mulf %63, %63 : vector<8x64xf32>
    %cst_31 = arith.constant dense<0.000000e+00> : vector<8xf32>
    %65 = vector.multi_reduction <add>, %64, %cst_31 [1] : vector<8x64xf32> to vector<8xf32>
    %66 = vector.shape_cast %65 : vector<8xf32> to vector<8x1xf32>
    %cst_32 = arith.constant 6.400000e+01 : f32
    %67 = vector.broadcast %cst_32 : f32 to vector<8x1xf32>
    %68 = arith.divf %66, %67 : vector<8x1xf32>
    %69 = vector.broadcast %61 : vector<8x1xf32> to vector<8x64xf32>
    %70 = arith.subf %55, %69 : vector<8x64xf32>
    %cst_33 = arith.constant 9.99999974E-6 : f32
    %71 = vector.broadcast %cst_33 : f32 to vector<8x1xf32>
    %72 = arith.addf %68, %71 : vector<8x1xf32>
    %73 = math.rsqrt %72 : vector<8x1xf32>
    %74 = vector.broadcast %73 : vector<8x1xf32> to vector<8x64xf32>
    %75 = arith.mulf %70, %74 : vector<8x64xf32>
    %76 = vector.broadcast %56 : vector<1x64xf32> to vector<8x64xf32>
    %77 = arith.mulf %75, %76 : vector<8x64xf32>
    %78 = vector.broadcast %57 : vector<1x64xf32> to vector<8x64xf32>
    %79 = arith.addf %77, %78 : vector<8x64xf32>
    %c0_34 = arith.constant 0 : index
    %c0_35 = arith.constant 0 : index
    %80 = vector.load %arg2[%c0_34, %c0_35] : memref<64x128xbf16, #tpu.memory_space<vmem>>, vector<64x128xbf16>
    %81 = arith.extf %80 : vector<64x128xbf16> to vector<64x128xf32>
    %cst_36 = arith.constant dense<0.000000e+00> : vector<8x128xf32>
    %82 = tpu.matmul %79, %81, %cst_36 {dimension_numbers = #tpu.dot_dimension_numbers<[1], [0], [0], [1], [0, 0, 1, 1], [], []>} : vector<8x64xf32>, vector<64x128xf32>, vector<8x128xf32> -> vector<8x128xf32>
    %83 = vector.extract_strided_slice %82 {offsets = [0, 64], sizes = [8, 64], strides = [1, 1]} : vector<8x128xf32> to vector<8x64xf32>
    %c7 = arith.constant 7 : index
    %c0_37 = arith.constant 0 : index
    %84 = vector.load %arg11[%c7, %c0_37] : memref<35x64xf32, #tpu.memory_space<vmem>>, vector<1x64xf32>
    %85 = vector.broadcast %84 : vector<1x64xf32> to vector<8x64xf32>
    %86 = arith.addf %83, %85 : vector<8x64xf32>
    %87 = arith.addf %79, %86 : vector<8x64xf32>
    %c8 = arith.constant 8 : index
    %c0_38 = arith.constant 0 : index
    %88 = vector.load %arg11[%c8, %c0_38] : memref<35x64xf32, #tpu.memory_space<vmem>>, vector<1x64xf32>
    %c9 = arith.constant 9 : index
    %c0_39 = arith.constant 0 : index
    %89 = vector.load %arg11[%c9, %c0_39] : memref<35x64xf32, #tpu.memory_space<vmem>>, vector<1x64xf32>
    %cst_40 = arith.constant dense<0.000000e+00> : vector<8xf32>
    %90 = vector.multi_reduction <add>, %87, %cst_40 [1] : vector<8x64xf32> to vector<8xf32>
    %91 = vector.shape_cast %90 : vector<8xf32> to vector<8x1xf32>
    %cst_41 = arith.constant 6.400000e+01 : f32
    %92 = vector.broadcast %cst_41 : f32 to vector<8x1xf32>
    %93 = arith.divf %91, %92 : vector<8x1xf32>
    %94 = vector.broadcast %93 : vector<8x1xf32> to vector<8x64xf32>
    %95 = arith.subf %87, %94 : vector<8x64xf32>
    %96 = arith.mulf %95, %95 : vector<8x64xf32>
    %cst_42 = arith.constant dense<0.000000e+00> : vector<8xf32>
    %97 = vector.multi_reduction <add>, %96, %cst_42 [1] : vector<8x64xf32> to vector<8xf32>
    %98 = vector.shape_cast %97 : vector<8xf32> to vector<8x1xf32>
    %cst_43 = arith.constant 6.400000e+01 : f32
    %99 = vector.broadcast %cst_43 : f32 to vector<8x1xf32>
    %100 = arith.divf %98, %99 : vector<8x1xf32>
    %101 = vector.broadcast %93 : vector<8x1xf32> to vector<8x64xf32>
    %102 = arith.subf %87, %101 : vector<8x64xf32>
    %cst_44 = arith.constant 9.99999974E-6 : f32
    %103 = vector.broadcast %cst_44 : f32 to vector<8x1xf32>
    %104 = arith.addf %100, %103 : vector<8x1xf32>
    %105 = math.rsqrt %104 : vector<8x1xf32>
    %106 = vector.broadcast %105 : vector<8x1xf32> to vector<8x64xf32>
    %107 = arith.mulf %102, %106 : vector<8x64xf32>
    %108 = vector.broadcast %88 : vector<1x64xf32> to vector<8x64xf32>
    %109 = arith.mulf %107, %108 : vector<8x64xf32>
    %110 = vector.broadcast %89 : vector<1x64xf32> to vector<8x64xf32>
    %111 = arith.addf %109, %110 : vector<8x64xf32>
    %c1_45 = arith.constant 1 : index
    %c0_46 = arith.constant 0 : index
    %c0_47 = arith.constant 0 : index
    %112 = vector.load %arg3[%c1_45, %c0_46, %c0_47] : memref<2x64x2048xbf16, #tpu.memory_space<vmem>>, vector<1x64x2048xbf16>
    %113 = vector.shape_cast %112 : vector<1x64x2048xbf16> to vector<64x2048xbf16>
    %114 = arith.extf %113 : vector<64x2048xbf16> to vector<64x2048xf32>
    %cst_48 = arith.constant dense<0.000000e+00> : vector<8x2048xf32>
    %115 = tpu.matmul %111, %114, %cst_48 {dimension_numbers = #tpu.dot_dimension_numbers<[1], [0], [0], [1], [0, 0, 1, 1], [], []>} : vector<8x64xf32>, vector<64x2048xf32>, vector<8x2048xf32> -> vector<8x2048xf32>
    %c1_49 = arith.constant 1 : index
    %c0_50 = arith.constant 0 : index
    %116 = vector.load %arg12[%c1_49, %c0_50] : memref<4x2048xf32, #tpu.memory_space<vmem>>, vector<1x2048xf32>
    %117 = vector.broadcast %116 : vector<1x2048xf32> to vector<8x2048xf32>
    %118 = arith.addf %115, %117 : vector<8x2048xf32>
    %cst_51 = arith.constant 0.000000e+00 : f32
    %119 = vector.broadcast %cst_51 : f32 to vector<8x2048xf32>
    %120 = arith.maximumf %118, %119 : vector<8x2048xf32>
    %c0_52 = arith.constant 0 : index
    %c0_53 = arith.constant 0 : index
    %121 = vector.load %arg4[%c0_52, %c0_53] : memref<2048x128xbf16, #tpu.memory_space<vmem>>, vector<2048x128xbf16>
    %122 = arith.extf %121 : vector<2048x128xbf16> to vector<2048x128xf32>
    %cst_54 = arith.constant dense<0.000000e+00> : vector<8x128xf32>
    %123 = tpu.matmul %120, %122, %cst_54 {dimension_numbers = #tpu.dot_dimension_numbers<[1], [0], [0], [1], [0, 0, 1, 1], [], []>} : vector<8x2048xf32>, vector<2048x128xf32>, vector<8x128xf32> -> vector<8x128xf32>
    %124 = vector.extract_strided_slice %123 {offsets = [0, 64], sizes = [8, 64], strides = [1, 1]} : vector<8x128xf32> to vector<8x64xf32>
    %c10 = arith.constant 10 : index
    %c0_55 = arith.constant 0 : index
    %125 = vector.load %arg11[%c10, %c0_55] : memref<35x64xf32, #tpu.memory_space<vmem>>, vector<1x64xf32>
    %126 = vector.broadcast %125 : vector<1x64xf32> to vector<8x64xf32>
    %127 = arith.addf %124, %126 : vector<8x64xf32>
    %128 = arith.addf %111, %127 : vector<8x64xf32>
    %c11 = arith.constant 11 : index
    %c0_56 = arith.constant 0 : index
    %129 = vector.load %arg11[%c11, %c0_56] : memref<35x64xf32, #tpu.memory_space<vmem>>, vector<1x64xf32>
    %c12 = arith.constant 12 : index
    %c0_57 = arith.constant 0 : index
    %130 = vector.load %arg11[%c12, %c0_57] : memref<35x64xf32, #tpu.memory_space<vmem>>, vector<1x64xf32>
    %cst_58 = arith.constant dense<0.000000e+00> : vector<8xf32>
    %131 = vector.multi_reduction <add>, %128, %cst_58 [1] : vector<8x64xf32> to vector<8xf32>
    %132 = vector.shape_cast %131 : vector<8xf32> to vector<8x1xf32>
    %cst_59 = arith.constant 6.400000e+01 : f32
    %133 = vector.broadcast %cst_59 : f32 to vector<8x1xf32>
    %134 = arith.divf %132, %133 : vector<8x1xf32>
    %135 = vector.broadcast %134 : vector<8x1xf32> to vector<8x64xf32>
    %136 = arith.subf %128, %135 : vector<8x64xf32>
    %137 = arith.mulf %136, %136 : vector<8x64xf32>
    %cst_60 = arith.constant dense<0.000000e+00> : vector<8xf32>
    %138 = vector.multi_reduction <add>, %137, %cst_60 [1] : vector<8x64xf32> to vector<8xf32>
    %139 = vector.shape_cast %138 : vector<8xf32> to vector<8x1xf32>
    %cst_61 = arith.constant 6.400000e+01 : f32
    %140 = vector.broadcast %cst_61 : f32 to vector<8x1xf32>
    %141 = arith.divf %139, %140 : vector<8x1xf32>
    %142 = vector.broadcast %134 : vector<8x1xf32> to vector<8x64xf32>
    %143 = arith.subf %128, %142 : vector<8x64xf32>
    %cst_62 = arith.constant 9.99999974E-6 : f32
    %144 = vector.broadcast %cst_62 : f32 to vector<8x1xf32>
    %145 = arith.addf %141, %144 : vector<8x1xf32>
    %146 = math.rsqrt %145 : vector<8x1xf32>
    %147 = vector.broadcast %146 : vector<8x1xf32> to vector<8x64xf32>
    %148 = arith.mulf %143, %147 : vector<8x64xf32>
    %149 = vector.broadcast %129 : vector<1x64xf32> to vector<8x64xf32>
    %150 = arith.mulf %148, %149 : vector<8x64xf32>
    %151 = vector.broadcast %130 : vector<1x64xf32> to vector<8x64xf32>
    %152 = arith.addf %150, %151 : vector<8x64xf32>
    %c13 = arith.constant 13 : index
    %c0_63 = arith.constant 0 : index
    %153 = vector.load %arg11[%c13, %c0_63] : memref<35x64xf32, #tpu.memory_space<vmem>>, vector<1x64xf32>
    %c14 = arith.constant 14 : index
    %c0_64 = arith.constant 0 : index
    %154 = vector.load %arg11[%c14, %c0_64] : memref<35x64xf32, #tpu.memory_space<vmem>>, vector<1x64xf32>
    %cst_65 = arith.constant dense<0.000000e+00> : vector<8xf32>
    %155 = vector.multi_reduction <add>, %152, %cst_65 [1] : vector<8x64xf32> to vector<8xf32>
    %156 = vector.shape_cast %155 : vector<8xf32> to vector<8x1xf32>
    %cst_66 = arith.constant 6.400000e+01 : f32
    %157 = vector.broadcast %cst_66 : f32 to vector<8x1xf32>
    %158 = arith.divf %156, %157 : vector<8x1xf32>
    %159 = vector.broadcast %158 : vector<8x1xf32> to vector<8x64xf32>
    %160 = arith.subf %152, %159 : vector<8x64xf32>
    %161 = arith.mulf %160, %160 : vector<8x64xf32>
    %cst_67 = arith.constant dense<0.000000e+00> : vector<8xf32>
    %162 = vector.multi_reduction <add>, %161, %cst_67 [1] : vector<8x64xf32> to vector<8xf32>
    %163 = vector.shape_cast %162 : vector<8xf32> to vector<8x1xf32>
    %cst_68 = arith.constant 6.400000e+01 : f32
    %164 = vector.broadcast %cst_68 : f32 to vector<8x1xf32>
    %165 = arith.divf %163, %164 : vector<8x1xf32>
    %166 = vector.broadcast %158 : vector<8x1xf32> to vector<8x64xf32>
    %167 = arith.subf %152, %166 : vector<8x64xf32>
    %cst_69 = arith.constant 9.99999974E-6 : f32
    %168 = vector.broadcast %cst_69 : f32 to vector<8x1xf32>
    %169 = arith.addf %165, %168 : vector<8x1xf32>
    %170 = math.rsqrt %169 : vector<8x1xf32>
    %171 = vector.broadcast %170 : vector<8x1xf32> to vector<8x64xf32>
    %172 = arith.mulf %167, %171 : vector<8x64xf32>
    %173 = vector.broadcast %153 : vector<1x64xf32> to vector<8x64xf32>
    %174 = arith.mulf %172, %173 : vector<8x64xf32>
    %175 = vector.broadcast %154 : vector<1x64xf32> to vector<8x64xf32>
    %176 = arith.addf %174, %175 : vector<8x64xf32>
    %c0_70 = arith.constant 0 : index
    %c0_71 = arith.constant 0 : index
    %177 = vector.load %arg6[%c0_70, %c0_71] : memref<64x128xbf16, #tpu.memory_space<vmem>>, vector<64x128xbf16>
    %178 = arith.extf %177 : vector<64x128xbf16> to vector<64x128xf32>
    %cst_72 = arith.constant dense<0.000000e+00> : vector<8x128xf32>
    %179 = tpu.matmul %176, %178, %cst_72 {dimension_numbers = #tpu.dot_dimension_numbers<[1], [0], [0], [1], [0, 0, 1, 1], [], []>} : vector<8x64xf32>, vector<64x128xf32>, vector<8x128xf32> -> vector<8x128xf32>
    %c0_73 = arith.constant 0 : index
    %c0_74 = arith.constant 0 : index
    %180 = vector.load %arg5[%c0_73, %c0_74] : memref<64x128xbf16, #tpu.memory_space<vmem>>, vector<64x128xbf16>
    %181 = arith.extf %180 : vector<64x128xbf16> to vector<64x128xf32>
    %cst_75 = arith.constant dense<0.000000e+00> : vector<8x128xf32>
    %182 = tpu.matmul %6, %181, %cst_75 {dimension_numbers = #tpu.dot_dimension_numbers<[1], [0], [0], [1], [0, 0, 1, 1], [], []>} : vector<8x64xf32>, vector<64x128xf32>, vector<8x128xf32> -> vector<8x128xf32>
    %183 = vector.extract_strided_slice %182 {offsets = [0, 0], sizes = [8, 64], strides = [1, 1]} : vector<8x128xf32> to vector<8x64xf32>
    %c15 = arith.constant 15 : index
    %c0_76 = arith.constant 0 : index
    %184 = vector.load %arg11[%c15, %c0_76] : memref<35x64xf32, #tpu.memory_space<vmem>>, vector<1x64xf32>
    %185 = vector.broadcast %184 : vector<1x64xf32> to vector<8x64xf32>
    %186 = arith.addf %183, %185 : vector<8x64xf32>
    %187 = arith.addf %6, %186 : vector<8x64xf32>
    %c16 = arith.constant 16 : index
    %c0_77 = arith.constant 0 : index
    %188 = vector.load %arg11[%c16, %c0_77] : memref<35x64xf32, #tpu.memory_space<vmem>>, vector<1x64xf32>
    %c17 = arith.constant 17 : index
    %c0_78 = arith.constant 0 : index
    %189 = vector.load %arg11[%c17, %c0_78] : memref<35x64xf32, #tpu.memory_space<vmem>>, vector<1x64xf32>
    %cst_79 = arith.constant dense<0.000000e+00> : vector<8xf32>
    %190 = vector.multi_reduction <add>, %187, %cst_79 [1] : vector<8x64xf32> to vector<8xf32>
    %191 = vector.shape_cast %190 : vector<8xf32> to vector<8x1xf32>
    %cst_80 = arith.constant 6.400000e+01 : f32
    %192 = vector.broadcast %cst_80 : f32 to vector<8x1xf32>
    %193 = arith.divf %191, %192 : vector<8x1xf32>
    %194 = vector.broadcast %193 : vector<8x1xf32> to vector<8x64xf32>
    %195 = arith.subf %187, %194 : vector<8x64xf32>
    %196 = arith.mulf %195, %195 : vector<8x64xf32>
    %cst_81 = arith.constant dense<0.000000e+00> : vector<8xf32>
    %197 = vector.multi_reduction <add>, %196, %cst_81 [1] : vector<8x64xf32> to vector<8xf32>
    %198 = vector.shape_cast %197 : vector<8xf32> to vector<8x1xf32>
    %cst_82 = arith.constant 6.400000e+01 : f32
    %199 = vector.broadcast %cst_82 : f32 to vector<8x1xf32>
    %200 = arith.divf %198, %199 : vector<8x1xf32>
    %201 = vector.broadcast %193 : vector<8x1xf32> to vector<8x64xf32>
    %202 = arith.subf %187, %201 : vector<8x64xf32>
    %cst_83 = arith.constant 9.99999974E-6 : f32
    %203 = vector.broadcast %cst_83 : f32 to vector<8x1xf32>
    %204 = arith.addf %200, %203 : vector<8x1xf32>
    %205 = math.rsqrt %204 : vector<8x1xf32>
    %206 = vector.broadcast %205 : vector<8x1xf32> to vector<8x64xf32>
    %207 = arith.mulf %202, %206 : vector<8x64xf32>
    %208 = vector.broadcast %188 : vector<1x64xf32> to vector<8x64xf32>
    %209 = arith.mulf %207, %208 : vector<8x64xf32>
    %210 = vector.broadcast %189 : vector<1x64xf32> to vector<8x64xf32>
    %211 = arith.addf %209, %210 : vector<8x64xf32>
    %212 = vector.extract_strided_slice %179 {offsets = [0, 0], sizes = [8, 64], strides = [1, 1]} : vector<8x128xf32> to vector<8x64xf32>
    %c18 = arith.constant 18 : index
    %c0_84 = arith.constant 0 : index
    %213 = vector.load %arg11[%c18, %c0_84] : memref<35x64xf32, #tpu.memory_space<vmem>>, vector<1x64xf32>
    %214 = vector.broadcast %213 : vector<1x64xf32> to vector<8x64xf32>
    %215 = arith.addf %212, %214 : vector<8x64xf32>
    %216 = arith.addf %211, %215 : vector<8x64xf32>
    %c19 = arith.constant 19 : index
    %c0_85 = arith.constant 0 : index
    %217 = vector.load %arg11[%c19, %c0_85] : memref<35x64xf32, #tpu.memory_space<vmem>>, vector<1x64xf32>
    %c20 = arith.constant 20 : index
    %c0_86 = arith.constant 0 : index
    %218 = vector.load %arg11[%c20, %c0_86] : memref<35x64xf32, #tpu.memory_space<vmem>>, vector<1x64xf32>
    %cst_87 = arith.constant dense<0.000000e+00> : vector<8xf32>
    %219 = vector.multi_reduction <add>, %216, %cst_87 [1] : vector<8x64xf32> to vector<8xf32>
    %220 = vector.shape_cast %219 : vector<8xf32> to vector<8x1xf32>
    %cst_88 = arith.constant 6.400000e+01 : f32
    %221 = vector.broadcast %cst_88 : f32 to vector<8x1xf32>
    %222 = arith.divf %220, %221 : vector<8x1xf32>
    %223 = vector.broadcast %222 : vector<8x1xf32> to vector<8x64xf32>
    %224 = arith.subf %216, %223 : vector<8x64xf32>
    %225 = arith.mulf %224, %224 : vector<8x64xf32>
    %cst_89 = arith.constant dense<0.000000e+00> : vector<8xf32>
    %226 = vector.multi_reduction <add>, %225, %cst_89 [1] : vector<8x64xf32> to vector<8xf32>
    %227 = vector.shape_cast %226 : vector<8xf32> to vector<8x1xf32>
    %cst_90 = arith.constant 6.400000e+01 : f32
    %228 = vector.broadcast %cst_90 : f32 to vector<8x1xf32>
    %229 = arith.divf %227, %228 : vector<8x1xf32>
    %230 = vector.broadcast %222 : vector<8x1xf32> to vector<8x64xf32>
    %231 = arith.subf %216, %230 : vector<8x64xf32>
    %cst_91 = arith.constant 9.99999974E-6 : f32
    %232 = vector.broadcast %cst_91 : f32 to vector<8x1xf32>
    %233 = arith.addf %229, %232 : vector<8x1xf32>
    %234 = math.rsqrt %233 : vector<8x1xf32>
    %235 = vector.broadcast %234 : vector<8x1xf32> to vector<8x64xf32>
    %236 = arith.mulf %231, %235 : vector<8x64xf32>
    %237 = vector.broadcast %217 : vector<1x64xf32> to vector<8x64xf32>
    %238 = arith.mulf %236, %237 : vector<8x64xf32>
    %239 = vector.broadcast %218 : vector<1x64xf32> to vector<8x64xf32>
    %240 = arith.addf %238, %239 : vector<8x64xf32>
    %c0_92 = arith.constant 0 : index
    %c0_93 = arith.constant 0 : index
    %c0_94 = arith.constant 0 : index
    %241 = vector.load %arg7[%c0_92, %c0_93, %c0_94] : memref<2x64x2048xbf16, #tpu.memory_space<vmem>>, vector<1x64x2048xbf16>
    %242 = vector.shape_cast %241 : vector<1x64x2048xbf16> to vector<64x2048xbf16>
    %243 = arith.extf %242 : vector<64x2048xbf16> to vector<64x2048xf32>
    %cst_95 = arith.constant dense<0.000000e+00> : vector<8x2048xf32>
    %244 = tpu.matmul %240, %243, %cst_95 {dimension_numbers = #tpu.dot_dimension_numbers<[1], [0], [0], [1], [0, 0, 1, 1], [], []>} : vector<8x64xf32>, vector<64x2048xf32>, vector<8x2048xf32> -> vector<8x2048xf32>
    %c2_96 = arith.constant 2 : index
    %c0_97 = arith.constant 0 : index
    %245 = vector.load %arg12[%c2_96, %c0_97] : memref<4x2048xf32, #tpu.memory_space<vmem>>, vector<1x2048xf32>
    %246 = vector.broadcast %245 : vector<1x2048xf32> to vector<8x2048xf32>
    %247 = arith.addf %244, %246 : vector<8x2048xf32>
    %cst_98 = arith.constant 0.000000e+00 : f32
    %248 = vector.broadcast %cst_98 : f32 to vector<8x2048xf32>
    %249 = arith.maximumf %247, %248 : vector<8x2048xf32>
    %c0_99 = arith.constant 0 : index
    %c0_100 = arith.constant 0 : index
    %250 = vector.load %arg8[%c0_99, %c0_100] : memref<2048x128xbf16, #tpu.memory_space<vmem>>, vector<2048x128xbf16>
    %251 = arith.extf %250 : vector<2048x128xbf16> to vector<2048x128xf32>
    %cst_101 = arith.constant dense<0.000000e+00> : vector<8x128xf32>
    %252 = tpu.matmul %249, %251, %cst_101 {dimension_numbers = #tpu.dot_dimension_numbers<[1], [0], [0], [1], [0, 0, 1, 1], [], []>} : vector<8x2048xf32>, vector<2048x128xf32>, vector<8x128xf32> -> vector<8x128xf32>
    %253 = vector.extract_strided_slice %252 {offsets = [0, 0], sizes = [8, 64], strides = [1, 1]} : vector<8x128xf32> to vector<8x64xf32>
    %c21 = arith.constant 21 : index
    %c0_102 = arith.constant 0 : index
    %254 = vector.load %arg11[%c21, %c0_102] : memref<35x64xf32, #tpu.memory_space<vmem>>, vector<1x64xf32>
    %255 = vector.broadcast %254 : vector<1x64xf32> to vector<8x64xf32>
    %256 = arith.addf %253, %255 : vector<8x64xf32>
    %257 = arith.addf %240, %256 : vector<8x64xf32>
    %c22 = arith.constant 22 : index
    %c0_103 = arith.constant 0 : index
    %258 = vector.load %arg11[%c22, %c0_103] : memref<35x64xf32, #tpu.memory_space<vmem>>, vector<1x64xf32>
    %c23 = arith.constant 23 : index
    %c0_104 = arith.constant 0 : index
    %259 = vector.load %arg11[%c23, %c0_104] : memref<35x64xf32, #tpu.memory_space<vmem>>, vector<1x64xf32>
    %cst_105 = arith.constant dense<0.000000e+00> : vector<8xf32>
    %260 = vector.multi_reduction <add>, %257, %cst_105 [1] : vector<8x64xf32> to vector<8xf32>
    %261 = vector.shape_cast %260 : vector<8xf32> to vector<8x1xf32>
    %cst_106 = arith.constant 6.400000e+01 : f32
    %262 = vector.broadcast %cst_106 : f32 to vector<8x1xf32>
    %263 = arith.divf %261, %262 : vector<8x1xf32>
    %264 = vector.broadcast %263 : vector<8x1xf32> to vector<8x64xf32>
    %265 = arith.subf %257, %264 : vector<8x64xf32>
    %266 = arith.mulf %265, %265 : vector<8x64xf32>
    %cst_107 = arith.constant dense<0.000000e+00> : vector<8xf32>
    %267 = vector.multi_reduction <add>, %266, %cst_107 [1] : vector<8x64xf32> to vector<8xf32>
    %268 = vector.shape_cast %267 : vector<8xf32> to vector<8x1xf32>
    %cst_108 = arith.constant 6.400000e+01 : f32
    %269 = vector.broadcast %cst_108 : f32 to vector<8x1xf32>
    %270 = arith.divf %268, %269 : vector<8x1xf32>
    %271 = vector.broadcast %263 : vector<8x1xf32> to vector<8x64xf32>
    %272 = arith.subf %257, %271 : vector<8x64xf32>
    %cst_109 = arith.constant 9.99999974E-6 : f32
    %273 = vector.broadcast %cst_109 : f32 to vector<8x1xf32>
    %274 = arith.addf %270, %273 : vector<8x1xf32>
    %275 = math.rsqrt %274 : vector<8x1xf32>
    %276 = vector.broadcast %275 : vector<8x1xf32> to vector<8x64xf32>
    %277 = arith.mulf %272, %276 : vector<8x64xf32>
    %278 = vector.broadcast %258 : vector<1x64xf32> to vector<8x64xf32>
    %279 = arith.mulf %277, %278 : vector<8x64xf32>
    %280 = vector.broadcast %259 : vector<1x64xf32> to vector<8x64xf32>
    %281 = arith.addf %279, %280 : vector<8x64xf32>
    %c0_110 = arith.constant 0 : index
    %c0_111 = arith.constant 0 : index
    %282 = vector.load %arg5[%c0_110, %c0_111] : memref<64x128xbf16, #tpu.memory_space<vmem>>, vector<64x128xbf16>
    %283 = arith.extf %282 : vector<64x128xbf16> to vector<64x128xf32>
    %cst_112 = arith.constant dense<0.000000e+00> : vector<8x128xf32>
    %284 = tpu.matmul %281, %283, %cst_112 {dimension_numbers = #tpu.dot_dimension_numbers<[1], [0], [0], [1], [0, 0, 1, 1], [], []>} : vector<8x64xf32>, vector<64x128xf32>, vector<8x128xf32> -> vector<8x128xf32>
    %285 = vector.extract_strided_slice %284 {offsets = [0, 64], sizes = [8, 64], strides = [1, 1]} : vector<8x128xf32> to vector<8x64xf32>
    %c24 = arith.constant 24 : index
    %c0_113 = arith.constant 0 : index
    %286 = vector.load %arg11[%c24, %c0_113] : memref<35x64xf32, #tpu.memory_space<vmem>>, vector<1x64xf32>
    %287 = vector.broadcast %286 : vector<1x64xf32> to vector<8x64xf32>
    %288 = arith.addf %285, %287 : vector<8x64xf32>
    %289 = arith.addf %281, %288 : vector<8x64xf32>
    %c25 = arith.constant 25 : index
    %c0_114 = arith.constant 0 : index
    %290 = vector.load %arg11[%c25, %c0_114] : memref<35x64xf32, #tpu.memory_space<vmem>>, vector<1x64xf32>
    %c26 = arith.constant 26 : index
    %c0_115 = arith.constant 0 : index
    %291 = vector.load %arg11[%c26, %c0_115] : memref<35x64xf32, #tpu.memory_space<vmem>>, vector<1x64xf32>
    %cst_116 = arith.constant dense<0.000000e+00> : vector<8xf32>
    %292 = vector.multi_reduction <add>, %289, %cst_116 [1] : vector<8x64xf32> to vector<8xf32>
    %293 = vector.shape_cast %292 : vector<8xf32> to vector<8x1xf32>
    %cst_117 = arith.constant 6.400000e+01 : f32
    %294 = vector.broadcast %cst_117 : f32 to vector<8x1xf32>
    %295 = arith.divf %293, %294 : vector<8x1xf32>
    %296 = vector.broadcast %295 : vector<8x1xf32> to vector<8x64xf32>
    %297 = arith.subf %289, %296 : vector<8x64xf32>
    %298 = arith.mulf %297, %297 : vector<8x64xf32>
    %cst_118 = arith.constant dense<0.000000e+00> : vector<8xf32>
    %299 = vector.multi_reduction <add>, %298, %cst_118 [1] : vector<8x64xf32> to vector<8xf32>
    %300 = vector.shape_cast %299 : vector<8xf32> to vector<8x1xf32>
    %cst_119 = arith.constant 6.400000e+01 : f32
    %301 = vector.broadcast %cst_119 : f32 to vector<8x1xf32>
    %302 = arith.divf %300, %301 : vector<8x1xf32>
    %303 = vector.broadcast %295 : vector<8x1xf32> to vector<8x64xf32>
    %304 = arith.subf %289, %303 : vector<8x64xf32>
    %cst_120 = arith.constant 9.99999974E-6 : f32
    %305 = vector.broadcast %cst_120 : f32 to vector<8x1xf32>
    %306 = arith.addf %302, %305 : vector<8x1xf32>
    %307 = math.rsqrt %306 : vector<8x1xf32>
    %308 = vector.broadcast %307 : vector<8x1xf32> to vector<8x64xf32>
    %309 = arith.mulf %304, %308 : vector<8x64xf32>
    %310 = vector.broadcast %290 : vector<1x64xf32> to vector<8x64xf32>
    %311 = arith.mulf %309, %310 : vector<8x64xf32>
    %312 = vector.broadcast %291 : vector<1x64xf32> to vector<8x64xf32>
    %313 = arith.addf %311, %312 : vector<8x64xf32>
    %314 = vector.extract_strided_slice %179 {offsets = [0, 64], sizes = [8, 64], strides = [1, 1]} : vector<8x128xf32> to vector<8x64xf32>
    %c27 = arith.constant 27 : index
    %c0_121 = arith.constant 0 : index
    %315 = vector.load %arg11[%c27, %c0_121] : memref<35x64xf32, #tpu.memory_space<vmem>>, vector<1x64xf32>
    %316 = vector.broadcast %315 : vector<1x64xf32> to vector<8x64xf32>
    %317 = arith.addf %314, %316 : vector<8x64xf32>
    %318 = arith.addf %313, %317 : vector<8x64xf32>
    %c28 = arith.constant 28 : index
    %c0_122 = arith.constant 0 : index
    %319 = vector.load %arg11[%c28, %c0_122] : memref<35x64xf32, #tpu.memory_space<vmem>>, vector<1x64xf32>
    %c29 = arith.constant 29 : index
    %c0_123 = arith.constant 0 : index
    %320 = vector.load %arg11[%c29, %c0_123] : memref<35x64xf32, #tpu.memory_space<vmem>>, vector<1x64xf32>
    %cst_124 = arith.constant dense<0.000000e+00> : vector<8xf32>
    %321 = vector.multi_reduction <add>, %318, %cst_124 [1] : vector<8x64xf32> to vector<8xf32>
    %322 = vector.shape_cast %321 : vector<8xf32> to vector<8x1xf32>
    %cst_125 = arith.constant 6.400000e+01 : f32
    %323 = vector.broadcast %cst_125 : f32 to vector<8x1xf32>
    %324 = arith.divf %322, %323 : vector<8x1xf32>
    %325 = vector.broadcast %324 : vector<8x1xf32> to vector<8x64xf32>
    %326 = arith.subf %318, %325 : vector<8x64xf32>
    %327 = arith.mulf %326, %326 : vector<8x64xf32>
    %cst_126 = arith.constant dense<0.000000e+00> : vector<8xf32>
    %328 = vector.multi_reduction <add>, %327, %cst_126 [1] : vector<8x64xf32> to vector<8xf32>
    %329 = vector.shape_cast %328 : vector<8xf32> to vector<8x1xf32>
    %cst_127 = arith.constant 6.400000e+01 : f32
    %330 = vector.broadcast %cst_127 : f32 to vector<8x1xf32>
    %331 = arith.divf %329, %330 : vector<8x1xf32>
    %332 = vector.broadcast %324 : vector<8x1xf32> to vector<8x64xf32>
    %333 = arith.subf %318, %332 : vector<8x64xf32>
    %cst_128 = arith.constant 9.99999974E-6 : f32
    %334 = vector.broadcast %cst_128 : f32 to vector<8x1xf32>
    %335 = arith.addf %331, %334 : vector<8x1xf32>
    %336 = math.rsqrt %335 : vector<8x1xf32>
    %337 = vector.broadcast %336 : vector<8x1xf32> to vector<8x64xf32>
    %338 = arith.mulf %333, %337 : vector<8x64xf32>
    %339 = vector.broadcast %319 : vector<1x64xf32> to vector<8x64xf32>
    %340 = arith.mulf %338, %339 : vector<8x64xf32>
    %341 = vector.broadcast %320 : vector<1x64xf32> to vector<8x64xf32>
    %342 = arith.addf %340, %341 : vector<8x64xf32>
    %c1_129 = arith.constant 1 : index
    %c0_130 = arith.constant 0 : index
    %c0_131 = arith.constant 0 : index
    %343 = vector.load %arg7[%c1_129, %c0_130, %c0_131] : memref<2x64x2048xbf16, #tpu.memory_space<vmem>>, vector<1x64x2048xbf16>
    %344 = vector.shape_cast %343 : vector<1x64x2048xbf16> to vector<64x2048xbf16>
    %345 = arith.extf %344 : vector<64x2048xbf16> to vector<64x2048xf32>
    %cst_132 = arith.constant dense<0.000000e+00> : vector<8x2048xf32>
    %346 = tpu.matmul %342, %345, %cst_132 {dimension_numbers = #tpu.dot_dimension_numbers<[1], [0], [0], [1], [0, 0, 1, 1], [], []>} : vector<8x64xf32>, vector<64x2048xf32>, vector<8x2048xf32> -> vector<8x2048xf32>
    %c3_133 = arith.constant 3 : index
    %c0_134 = arith.constant 0 : index
    %347 = vector.load %arg12[%c3_133, %c0_134] : memref<4x2048xf32, #tpu.memory_space<vmem>>, vector<1x2048xf32>
    %348 = vector.broadcast %347 : vector<1x2048xf32> to vector<8x2048xf32>
    %349 = arith.addf %346, %348 : vector<8x2048xf32>
    %cst_135 = arith.constant 0.000000e+00 : f32
    %350 = vector.broadcast %cst_135 : f32 to vector<8x2048xf32>
    %351 = arith.maximumf %349, %350 : vector<8x2048xf32>
    %c0_136 = arith.constant 0 : index
    %c0_137 = arith.constant 0 : index
    %352 = vector.load %arg8[%c0_136, %c0_137] : memref<2048x128xbf16, #tpu.memory_space<vmem>>, vector<2048x128xbf16>
    %353 = arith.extf %352 : vector<2048x128xbf16> to vector<2048x128xf32>
    %cst_138 = arith.constant dense<0.000000e+00> : vector<8x128xf32>
    %354 = tpu.matmul %351, %353, %cst_138 {dimension_numbers = #tpu.dot_dimension_numbers<[1], [0], [0], [1], [0, 0, 1, 1], [], []>} : vector<8x2048xf32>, vector<2048x128xf32>, vector<8x128xf32> -> vector<8x128xf32>
    %355 = vector.extract_strided_slice %354 {offsets = [0, 64], sizes = [8, 64], strides = [1, 1]} : vector<8x128xf32> to vector<8x64xf32>
    %c30 = arith.constant 30 : index
    %c0_139 = arith.constant 0 : index
    %356 = vector.load %arg11[%c30, %c0_139] : memref<35x64xf32, #tpu.memory_space<vmem>>, vector<1x64xf32>
    %357 = vector.broadcast %356 : vector<1x64xf32> to vector<8x64xf32>
    %358 = arith.addf %355, %357 : vector<8x64xf32>
    %359 = arith.addf %342, %358 : vector<8x64xf32>
    %c31 = arith.constant 31 : index
    %c0_140 = arith.constant 0 : index
    %360 = vector.load %arg11[%c31, %c0_140] : memref<35x64xf32, #tpu.memory_space<vmem>>, vector<1x64xf32>
    %c32 = arith.constant 32 : index
    %c0_141 = arith.constant 0 : index
    %361 = vector.load %arg11[%c32, %c0_141] : memref<35x64xf32, #tpu.memory_space<vmem>>, vector<1x64xf32>
    %cst_142 = arith.constant dense<0.000000e+00> : vector<8xf32>
    %362 = vector.multi_reduction <add>, %359, %cst_142 [1] : vector<8x64xf32> to vector<8xf32>
    %363 = vector.shape_cast %362 : vector<8xf32> to vector<8x1xf32>
    %cst_143 = arith.constant 6.400000e+01 : f32
    %364 = vector.broadcast %cst_143 : f32 to vector<8x1xf32>
    %365 = arith.divf %363, %364 : vector<8x1xf32>
    %366 = vector.broadcast %365 : vector<8x1xf32> to vector<8x64xf32>
    %367 = arith.subf %359, %366 : vector<8x64xf32>
    %368 = arith.mulf %367, %367 : vector<8x64xf32>
    %cst_144 = arith.constant dense<0.000000e+00> : vector<8xf32>
    %369 = vector.multi_reduction <add>, %368, %cst_144 [1] : vector<8x64xf32> to vector<8xf32>
    %370 = vector.shape_cast %369 : vector<8xf32> to vector<8x1xf32>
    %cst_145 = arith.constant 6.400000e+01 : f32
    %371 = vector.broadcast %cst_145 : f32 to vector<8x1xf32>
    %372 = arith.divf %370, %371 : vector<8x1xf32>
    %373 = vector.broadcast %365 : vector<8x1xf32> to vector<8x64xf32>
    %374 = arith.subf %359, %373 : vector<8x64xf32>
    %cst_146 = arith.constant 9.99999974E-6 : f32
    %375 = vector.broadcast %cst_146 : f32 to vector<8x1xf32>
    %376 = arith.addf %372, %375 : vector<8x1xf32>
    %377 = math.rsqrt %376 : vector<8x1xf32>
    %378 = vector.broadcast %377 : vector<8x1xf32> to vector<8x64xf32>
    %379 = arith.mulf %374, %378 : vector<8x64xf32>
    %380 = vector.broadcast %360 : vector<1x64xf32> to vector<8x64xf32>
    %381 = arith.mulf %379, %380 : vector<8x64xf32>
    %382 = vector.broadcast %361 : vector<1x64xf32> to vector<8x64xf32>
    %383 = arith.addf %381, %382 : vector<8x64xf32>
    %c33 = arith.constant 33 : index
    %c0_147 = arith.constant 0 : index
    %384 = vector.load %arg11[%c33, %c0_147] : memref<35x64xf32, #tpu.memory_space<vmem>>, vector<1x64xf32>
    %c34 = arith.constant 34 : index
    %c0_148 = arith.constant 0 : index
    %385 = vector.load %arg11[%c34, %c0_148] : memref<35x64xf32, #tpu.memory_space<vmem>>, vector<1x64xf32>
    %cst_149 = arith.constant dense<0.000000e+00> : vector<8xf32>
    %386 = vector.multi_reduction <add>, %383, %cst_149 [1] : vector<8x64xf32> to vector<8xf32>
    %387 = vector.shape_cast %386 : vector<8xf32> to vector<8x1xf32>
    %cst_150 = arith.constant 6.400000e+01 : f32
    %388 = vector.broadcast %cst_150 : f32 to vector<8x1xf32>
    %389 = arith.divf %387, %388 : vector<8x1xf32>
    %390 = vector.broadcast %389 : vector<8x1xf32> to vector<8x64xf32>
    %391 = arith.subf %383, %390 : vector<8x64xf32>
    %392 = arith.mulf %391, %391 : vector<8x64xf32>
    %cst_151 = arith.constant dense<0.000000e+00> : vector<8xf32>
    %393 = vector.multi_reduction <add>, %392, %cst_151 [1] : vector<8x64xf32> to vector<8xf32>
    %394 = vector.shape_cast %393 : vector<8xf32> to vector<8x1xf32>
    %cst_152 = arith.constant 6.400000e+01 : f32
    %395 = vector.broadcast %cst_152 : f32 to vector<8x1xf32>
    %396 = arith.divf %394, %395 : vector<8x1xf32>
    %397 = vector.broadcast %389 : vector<8x1xf32> to vector<8x64xf32>
    %398 = arith.subf %383, %397 : vector<8x64xf32>
    %cst_153 = arith.constant 9.99999974E-6 : f32
    %399 = vector.broadcast %cst_153 : f32 to vector<8x1xf32>
    %400 = arith.addf %396, %399 : vector<8x1xf32>
    %401 = math.rsqrt %400 : vector<8x1xf32>
    %402 = vector.broadcast %401 : vector<8x1xf32> to vector<8x64xf32>
    %403 = arith.mulf %398, %402 : vector<8x64xf32>
    %404 = vector.broadcast %384 : vector<1x64xf32> to vector<8x64xf32>
    %405 = arith.mulf %403, %404 : vector<8x64xf32>
    %406 = vector.broadcast %385 : vector<1x64xf32> to vector<8x64xf32>
    %407 = arith.addf %405, %406 : vector<8x64xf32>
    %c0_154 = arith.constant 0 : index
    %c0_155 = arith.constant 0 : index
    %408 = vector.load %arg9[%c0_154, %c0_155] : memref<64x128xbf16, #tpu.memory_space<vmem>>, vector<64x128xbf16>
    %409 = arith.extf %408 : vector<64x128xbf16> to vector<64x128xf32>
    %cst_156 = arith.constant dense<0.000000e+00> : vector<8x128xf32>
    %410 = tpu.matmul %407, %409, %cst_156 {dimension_numbers = #tpu.dot_dimension_numbers<[1], [0], [0], [1], [0, 0, 1, 1], [], []>} : vector<8x64xf32>, vector<64x128xf32>, vector<8x128xf32> -> vector<8x128xf32>
    %c0_157 = arith.constant 0 : index
    %c0_158 = arith.constant 0 : index
    %411 = vector.load %arg10[%c0_157, %c0_158] : memref<1x128xf32, #tpu.memory_space<vmem>>, vector<1x128xf32>
    %412 = vector.broadcast %411 : vector<1x128xf32> to vector<8x128xf32>
    %413 = arith.addf %410, %412 : vector<8x128xf32>
    %c0_159 = arith.constant 0 : index
    %c0_160 = arith.constant 0 : index
    %414 = vector.load %arg13[%c0_159, %c0_160] : memref<8x128xf32, #tpu.memory_space<vmem>>, vector<8x128xf32>
    tpu.vector_store %arg13[%c0_159, %c0_160], %413 {strides = array<i32>} : memref<8x128xf32, #tpu.memory_space<vmem>>, vector<8x128xf32>,
    return
  }
}

</mosaic_0001>

<bundles_post_ra>
// kernel: tpu_custom_call.1
= control target key start
LH: loop header
LB: loop body
LE: loop exit
PB: predicated region body
PF: predicated region fallthrough
CT: control target
= control target key end

     0   :  { %18 = vsyncpa [#allocation3], 0  ;;  %s13941_s0 = inlined_call_operand.hbm [shape: f32[8,32], index: 0, kind: input, shape index: {}]   ;;  %s13942_s1 = inlined_call_operand.hbm [shape: bf16[32,64], index: 1, kind: input, shape index: {}]   ;;  %s13943_s2 = inlined_call_operand.hbm [shape: bf16[64,128], index: 2, kind: input, shape index: {}]   ;;  %s13944_s3 = inlined_call_operand.hbm [shape: bf16[2,64,2048], index: 3, kind: input, shape index: {}]   ;;  %s13945_s4 = inlined_call_operand.hbm [shape: bf16[2048,128], index: 4, kind: input, shape index: {}]   ;;  %s13946_s5 = inlined_call_operand.hbm [shape: bf16[64,128], index: 5, kind: input, shape index: {}]   ;;  %s13947_s6 = inlined_call_operand.hbm [shape: bf16[64,128], index: 6, kind: input, shape index: {}]   ;;  %s13948_s7 = inlined_call_operand.hbm [shape: bf16[2,64,2048], index: 7, kind: input, shape index: {}]   ;;  %s13949_s8 = inlined_call_operand.hbm [shape: bf16[2048,128], index: 8, kind: input, shape index: {}]   ;;  %s13950_s9 = inlined_call_operand.hbm [shape: bf16[64,128], index: 9, kind: input, shape index: {}]   ;;  %s13951_s10 = inlined_call_operand.vmem [shape: f32[1,128], index: 10, kind: input, shape index: {}]   ;;  %s13952_s11 = inlined_call_operand.vmem [shape: f32[35,64], index: 11, kind: input, shape index: {}]   ;;  %s13953_s12 = inlined_call_operand.hbm [shape: f32[4,2048], index: 12, kind: input, shape index: {}]   ;;  %s13954_s13 = inlined_call_operand.hbm [shape: f32[8,128], index: 13, kind: output, shape index: {}]  }
   0x1   :  { %19 = vsyncpa [#allocation6], 0 }
   0x2   :  { %20 = vsyncpa [#allocation9], 0 }
   0x3   :  { %21 = vsyncpa [#allocation12], 0 }
   0x4   :  { %22 = vsyncpa [#allocation15], 0 }
   0x5   :  { %23 = vsyncpa [#allocation18], 0 }
   0x6   :  { %24 = vsyncpa [#allocation4], 0  ;;  %s13138_s25 = smov [#allocation5]   ;;  %s12860_s29 = scalar_lea.hbm %s13942_s1, 256 }
   0x7   :  { %s40_s26 = sshll.u32 %s13138_s25, 4  ;;  %p12861_p0 = scmp.ne.s32.totalorder %s13942_s1, %s12860_s29  ;;  %s41_s26 = int_to_ptr.vmem [resolvable:$true] %s40_s26 }
   0x8   :  { %p12864_p1 = scmp.lt.u32.totalorder %s12860_s29, %s13942_s1 }
   0xa   :  { %p12866_p2 = pnand %p12864_p1, %p12861_p0 }
   0xc   :  { %12869 = shalt.err (!%p12866_p2)
}
   0xd   :  { %s12870_s17 = scalar_lea.vmem %s41_s26, 256  ;;  %p12875_p4 = scmp.lt.s32.totalorder %s41_s26, %s41_s26 }
   0xe   :  { %p12871_p3 = scmp.ne.s32.totalorder %s41_s26, %s12870_s17  ;;  %p12876_p5 = scmp.lt.s32.totalorder %s12870_s17, %s12870_s17 }
  0x10   :  { %p12877_p6 = por %p12876_p5, %p12875_p4 }
  0x12   :  { %p12878_p7 = pnand %p12877_p6, %p12871_p3 }
  0x14   :  { %12881 = shalt.err (!%p12878_p7)
}
  0x15   :  { %s13139_s18 = smov 64   ;;  %s13140_s19 = smov 4  }
  0x16   :  { %46 = dma.hbm_to_vmem [thread:$0]  %s13942_s1, 256, %s41_s26, [#allocation6], %s13139_s18, %s13139_s18, %s13140_s19  }
  0x17   :  { %s13141_s22 = smov [#allocation8]   ;;  %s12882_s27 = scalar_lea.hbm %s13944_s3, 16384 }
  0x18   :  { %s64_s23 = sshll.u32 %s13141_s22, 4  ;;  %p12883_p8 = scmp.ne.s32.totalorder %s13944_s3, %s12882_s27  ;;  %s65_s23 = int_to_ptr.vmem [resolvable:$true] %s64_s23 }
  0x19   :  { %p12886_p9 = scmp.lt.u32.totalorder %s12882_s27, %s13944_s3 }
  0x1b   :  { %p12888_p10 = pnand %p12886_p9, %p12883_p8 }
  0x1d   :  { %12891 = shalt.err (!%p12888_p10)
}
  0x1e   :  { %s12892_s15 = scalar_lea.vmem %s65_s23, 16384  ;;  %p12897_p12 = scmp.lt.s32.totalorder %s65_s23, %s65_s23 }
  0x1f   :  { %p12893_p11 = scmp.ne.s32.totalorder %s65_s23, %s12892_s15  ;;  %p12898_p13 = scmp.lt.s32.totalorder %s12892_s15, %s12892_s15 }
  0x21   :  { %p12899_p0 = por %p12898_p13, %p12897_p12 }
  0x23   :  { %p12900_p1 = pnand %p12899_p0, %p12893_p11 }
  0x25   :  { %12903 = shalt.err (!%p12900_p1)
}
  0x26   :  { %s13142_s1 = smov 1024   ;;  %s13143_s17 = smov [#allocation11]  }
  0x27   :  { %70 = dma.hbm_to_vmem [thread:$0]  %s13944_s3, 16384, %s65_s23, [#allocation9], %s13142_s1, %s13142_s1, %s13139_s18  }
  0x28   :  { %s88_s20 = sshll.u32 %s13143_s17, 4  ;;  %s13144_s21 = smov [#allocation14]   ;;  %s89_s20 = int_to_ptr.vmem [resolvable:$true] %s88_s20 }
  0x29   :  { %s112_s22 = sshll.u32 %s13144_s21, 4  ;;  %s12904_s27 = scalar_lea.hbm %s13946_s5, 512  ;;  %s113_s22 = int_to_ptr.vmem [resolvable:$true] %s112_s22 }
  0x2a   :  { %p12905_p2 = scmp.ne.s32.totalorder %s13946_s5, %s12904_s27  ;;  %p12908_p3 = scmp.lt.u32.totalorder %s12904_s27, %s13946_s5 }
  0x2c   :  { %p12910_p4 = pnand %p12908_p3, %p12905_p2 }
  0x2e   :  { %12913 = shalt.err (!%p12910_p4)
}
  0x2f   :  { %s12914_s3 = scalar_lea.vmem %s89_s20, 512  ;;  %p12919_p6 = scmp.lt.s32.totalorder %s89_s20, %s89_s20 }
  0x30   :  { %p12915_p5 = scmp.ne.s32.totalorder %s89_s20, %s12914_s3  ;;  %p12920_p7 = scmp.lt.s32.totalorder %s12914_s3, %s12914_s3 }
  0x32   :  { %p12921_p8 = por %p12920_p7, %p12919_p6 }
  0x34   :  { %p12922_p9 = pnand %p12921_p8, %p12915_p5 }
  0x36   :  { %12925 = shalt.err (!%p12922_p9)
}
  0x37   :  { %94 = dma.hbm_to_vmem [thread:$0]  %s13946_s5, 512, %s89_s20, [#allocation12], %s13139_s18, %s13139_s18, %s13140_s19  }
  0x38   :  { %s12926_s17 = scalar_lea.hbm %s13948_s7, 16384 }
  0x39   :  { %p12927_p10 = scmp.ne.s32.totalorder %s13948_s7, %s12926_s17  ;;  %p12930_p11 = scmp.lt.u32.totalorder %s12926_s17, %s13948_s7 }
  0x3b   :  { %p12932_p12 = pnand %p12930_p11, %p12927_p10 }
  0x3d   :  { %12935 = shalt.err (!%p12932_p12)
}
  0x3e   :  { %s12936_s28 = scalar_lea.vmem %s113_s22, 16384  ;;  %p12941_p0 = scmp.lt.s32.totalorder %s113_s22, %s113_s22 }
  0x3f   :  { %p12937_p13 = scmp.ne.s32.totalorder %s113_s22, %s12936_s28  ;;  %p12942_p1 = scmp.lt.s32.totalorder %s12936_s28, %s12936_s28 }
  0x41   :  { %p12943_p2 = por %p12942_p1, %p12941_p0 }
  0x43   :  { %p12944_p3 = pnand %p12943_p2, %p12937_p13 }
  0x45   :  { %12947 = shalt.err (!%p12944_p3)
}
  0x46   :  { %118 = dma.hbm_to_vmem [thread:$0]  %s13948_s7, 16384, %s113_s22, [#allocation15], %s13142_s1, %s13142_s1, %s13139_s18  }
  0x47   :  { %s13145_s29 = smov [#allocation17]   ;;  %s13146_s14 = smov [#allocation2]  }
  0x48   :  { %s136_s30 = sshll.u32 %s13145_s29, 4  ;;  %s31_s3 = sshll.u32 %s13146_s14, 4  ;;  %s137_s30 = int_to_ptr.vmem [resolvable:$true] %s136_s30  ;;  %s32_s3 = int_to_ptr.vmem [resolvable:$true] %s31_s3 }
  0x49   :  { %s12948_s26 = scalar_lea.hbm %s13950_s9, 512 }
  0x4a   :  { %p12949_p4 = scmp.ne.s32.totalorder %s13950_s9, %s12948_s26  ;;  %p12952_p5 = scmp.lt.u32.totalorder %s12948_s26, %s13950_s9 }
  0x4c   :  { %p12954_p6 = pnand %p12952_p5, %p12949_p4 }
  0x4e   :  { %12957 = shalt.err (!%p12954_p6)
}
  0x4f   :  { %s12958_s7 = scalar_lea.vmem %s137_s30, 512  ;;  %p12963_p8 = scmp.lt.s32.totalorder %s137_s30, %s137_s30 }
  0x50   :  { %p12959_p7 = scmp.ne.s32.totalorder %s137_s30, %s12958_s7  ;;  %p12964_p9 = scmp.lt.s32.totalorder %s12958_s7, %s12958_s7 }
  0x52   :  { %p12965_p10 = por %p12964_p9, %p12963_p8 }
  0x54   :  { %p12966_p11 = pnand %p12965_p10, %p12959_p7 }
  0x56   :  { %12969 = shalt.err (!%p12966_p11)
}
  0x57   :  { %142 = dma.hbm_to_vmem [thread:$0]  %s13950_s9, 512, %s137_s30, [#allocation18], %s13139_s18, %s13139_s18, %s13140_s19  }
  0x58   :  { %s12970_s28 = scalar_lea.hbm %s13941_s0, 128 }
  0x59   :  { %p12971_p12 = scmp.ne.s32.totalorder %s13941_s0, %s12970_s28  ;;  %p12974_p13 = scmp.lt.u32.totalorder %s12970_s28, %s13941_s0 }
  0x5b   :  { %p12976_p0 = pnand %p12974_p13, %p12971_p12 }
  0x5d   :  { %12979 = shalt.err (!%p12976_p0)
}
  0x5e   :  { %s12980_s23 = scalar_lea.vmem %s32_s3, 128  ;;  %p12985_p2 = scmp.lt.s32.totalorder %s32_s3, %s32_s3 }
  0x5f   :  { %p12981_p1 = scmp.ne.s32.totalorder %s32_s3, %s12980_s23  ;;  %p12986_p3 = scmp.lt.s32.totalorder %s12980_s23, %s12980_s23 }
  0x61   :  { %p12987_p4 = por %p12986_p3, %p12985_p2 }
  0x63   :  { %p12988_p5 = pnand %p12987_p4, %p12981_p1 }
  0x65   :  { %12991 = shalt.err (!%p12988_p5)
}
  0x66   :  { %34 = dma.hbm_to_vmem [thread:$0]  %s13941_s0, 128, %s32_s3, [#allocation3]  }
  0x67   :  { %s13147_s15 = smov [#allocation7]   ;;  %s13148_s16 = smov [#allocation10]  }
  0x68   :  { %s52_s26 = sshll.u32 %s13147_s15, 4  ;;  %s76_s17 = sshll.u32 %s13148_s16, 4  ;;  %s53_s26 = int_to_ptr.vmem [resolvable:$true] %s52_s26  ;;  %s77_s17 = int_to_ptr.vmem [resolvable:$true] %s76_s17 }
  0x69   :  { %s12992_s7 = scalar_lea.hbm %s13943_s2, 512 }
  0x6a   :  { %p12993_p6 = scmp.ne.s32.totalorder %s13943_s2, %s12992_s7  ;;  %p12996_p7 = scmp.lt.u32.totalorder %s12992_s7, %s13943_s2 }
  0x6c   :  { %p12998_p8 = pnand %p12996_p7, %p12993_p6 }
  0x6e   :  { %13001 = shalt.err (!%p12998_p8)
}
  0x6f   :  { %s13002_s0 = scalar_lea.vmem %s53_s26, 512  ;;  %p13007_p10 = scmp.lt.s32.totalorder %s53_s26, %s53_s26 }
  0x70   :  { %p13003_p9 = scmp.ne.s32.totalorder %s53_s26, %s13002_s0  ;;  %p13008_p11 = scmp.lt.s32.totalorder %s13002_s0, %s13002_s0 }
  0x72   :  { %p13009_p12 = por %p13008_p11, %p13007_p10 }
  0x74   :  { %p13010_p13 = pnand %p13009_p12, %p13003_p9 }
  0x76   :  { %13013 = shalt.err (!%p13010_p13)
}
  0x77   :  { %58 = dma.hbm_to_vmem [thread:$0]  %s13943_s2, 512, %s53_s26, [#allocation6], %s13139_s18, %s13139_s18, %s13140_s19  }
  0x78   :  { %s13014_s29 = scalar_lea.hbm %s13945_s4, 16384 }
  0x79   :  { %p13015_p0 = scmp.ne.s32.totalorder %s13945_s4, %s13014_s29  ;;  %p13018_p1 = scmp.lt.u32.totalorder %s13014_s29, %s13945_s4 }
  0x7b   :  { %p13020_p2 = pnand %p13018_p1, %p13015_p0 }
  0x7d   :  { %13023 = shalt.err (!%p13020_p2)
}
  0x7e   :  { %s13024_s15 = scalar_lea.vmem %s77_s17, 16384  ;;  %p13029_p4 = scmp.lt.s32.totalorder %s77_s17, %s77_s17 }
  0x7f   :  { %p13025_p3 = scmp.ne.s32.totalorder %s77_s17, %s13024_s15  ;;  %p13030_p5 = scmp.lt.s32.totalorder %s13024_s15, %s13024_s15 }
  0x81   :  { %p13031_p6 = por %p13030_p5, %p13029_p4 }
  0x83   :  { %p13032_p7 = pnand %p13031_p6, %p13025_p3 }
  0x85   :  { %13035 = shalt.err (!%p13032_p7)
}
  0x86   :  { %82 = dma.hbm_to_vmem [thread:$0]  %s13945_s4, 16384, %s77_s17, [#allocation9], %s13139_s18, %s13139_s18, %s13140_s19  }
  0x87   :  { %s13149_s16 = smov [#allocation13]   ;;  %s13150_s24 = smov [#allocation16]  }
  0x88   :  { %s100_s21 = sshll.u32 %s13149_s16, 4  ;;  %s124_s7 = sshll.u32 %s13150_s24, 4  ;;  %s101_s21 = int_to_ptr.vmem [resolvable:$true] %s100_s21  ;;  %s125_s7 = int_to_ptr.vmem [resolvable:$true] %s124_s7 }
  0x89   :  { %s13036_s25 = scalar_lea.hbm %s13947_s6, 512 }
  0x8a   :  { %p13037_p8 = scmp.ne.s32.totalorder %s13947_s6, %s13036_s25  ;;  %p13040_p9 = scmp.lt.u32.totalorder %s13036_s25, %s13947_s6 }
  0x8c   :  { %p13042_p10 = pnand %p13040_p9, %p13037_p8 }
  0x8e   :  { %13045 = shalt.err (!%p13042_p10)
}
  0x8f   :  { %s13046_s4 = scalar_lea.vmem %s101_s21, 512  ;;  %p13051_p12 = scmp.lt.s32.totalorder %s101_s21, %s101_s21 }
  0x90   :  { %p13047_p11 = scmp.ne.s32.totalorder %s101_s21, %s13046_s4  ;;  %p13052_p13 = scmp.lt.s32.totalorder %s13046_s4, %s13046_s4 }
  0x92   :  { %p13053_p0 = por %p13052_p13, %p13051_p12 }
  0x94   :  { %p13054_p1 = pnand %p13053_p0, %p13047_p11 }
  0x96   :  { %13057 = shalt.err (!%p13054_p1)
}
  0x97   :  { %106 = dma.hbm_to_vmem [thread:$0]  %s13947_s6, 512, %s101_s21, [#allocation12], %s13139_s18, %s13139_s18, %s13140_s19  }
  0x98   :  { %s13058_s14 = scalar_lea.hbm %s13949_s8, 16384 }
  0x99   :  { %p13059_p2 = scmp.ne.s32.totalorder %s13949_s8, %s13058_s14  ;;  %p13062_p3 = scmp.lt.u32.totalorder %s13058_s14, %s13949_s8 }
  0x9b   :  { %p13064_p4 = pnand %p13062_p3, %p13059_p2 }
  0x9d   :  { %13067 = shalt.err (!%p13064_p4)
}
  0x9e   :  { %s13068_s2 = scalar_lea.vmem %s125_s7, 16384  ;;  %p13073_p6 = scmp.lt.s32.totalorder %s125_s7, %s125_s7 }
  0x9f   :  { %p13069_p5 = scmp.ne.s32.totalorder %s125_s7, %s13068_s2  ;;  %p13074_p7 = scmp.lt.s32.totalorder %s13068_s2, %s13068_s2 }
  0xa1   :  { %p13075_p8 = por %p13074_p7, %p13073_p6 }
  0xa3   :  { %p13076_p9 = pnand %p13075_p8, %p13069_p5 }
  0xa5   :  { %13079 = shalt.err (!%p13076_p9)
}
  0xa6   :  { %130 = dma.hbm_to_vmem [thread:$0]  %s13949_s8, 16384, %s125_s7, [#allocation15], %s13139_s18, %s13139_s18, %s13140_s19  }
  0xa7   :  { %s13151_s16 = smov [#allocation19]   ;;  %s13080_s22 = scalar_lea.hbm %s13953_s12, 1024 }
  0xa8   :  { %s153_s21 = sshll.u32 %s13151_s16, 4  ;;  %p13081_p10 = scmp.ne.s32.totalorder %s13953_s12, %s13080_s22  ;;  %s154_s21 = int_to_ptr.vmem [resolvable:$true] %s153_s21 }
  0xa9   :  { %p13084_p11 = scmp.lt.u32.totalorder %s13080_s22, %s13953_s12 }
  0xab   :  { %p13086_p12 = pnand %p13084_p11, %p13081_p10 }
  0xad   :  { %13089 = shalt.err (!%p13086_p12)
}
  0xae   :  { %s13090_s28 = scalar_lea.vmem %s154_s21, 1024  ;;  %p13095_p0 = scmp.lt.s32.totalorder %s154_s21, %s154_s21 }
  0xaf   :  { %p13091_p13 = scmp.ne.s32.totalorder %s154_s21, %s13090_s28  ;;  %p13096_p1 = scmp.lt.s32.totalorder %s13090_s28, %s13090_s28 }
  0xb1   :  { %p13097_p2 = por %p13096_p1, %p13095_p0 }
  0xb3   :  { %p13098_p3 = pnand %p13097_p2, %p13091_p13 }
  0xb5   :  { %13101 = shalt.err (!%p13098_p3)
}
  0xb6   :  { %156 = dma.hbm_to_vmem [thread:$0]  %s13953_s12, 1024, %s154_s21, [#allocation18]  }
  0xb7   :  { %13124 = dma.done.wait [#allocation3], 128  }
  0xb8   :  { %13125 = vsyncadd [#allocation3], 4294967168 }
  0xb9   :  { %13126 = dma.done.wait [#allocation6], 768  }
  0xba   :  { %13127 = vsyncadd [#allocation6], 4294966528 }
  0xbb   :  { %13128 = dma.done.wait [#allocation9], 32768  }
  0xbc   :  { %13129 = vsyncadd [#allocation9], 4294934528 }
  0xbd   :  { %13130 = dma.done.wait [#allocation12], 1024  }
  0xbe   :  { %13131 = vsyncadd [#allocation12], 4294966272 }
  0xbf   :  { %13132 = dma.done.wait [#allocation15], 32768  }
  0xc0   :  { %13133 = vsyncadd [#allocation15], 4294934528 }
  0xc1   :  { %13134 = dma.done.wait [#allocation18], 1536  }
  0xc2   :  { %13135 = vsyncadd [#allocation18], 4294965760  ;;  %v13152_v0 = vmov 0.0|0.0   ;;  %vm13153_vm0 = vmmov 0   ;;  %v13154_v1 = vmov 0.0   ;;  %v8018_v2 = vld [vmem:[#allocation5] sm:$0xff]  }
  0xc3   :  { %10684 = vmatprep.subr.bf16.mxu0 %v13152_v0  ;;  %10567 = vmatprep.mubr.msk.f32.mxu0 %vm13153_vm0, %v13154_v1  ;;  %v8026_v3 = vld [vmem:[#allocation7] sm:$0xff]   ;;  %v9113_v4 = vld [vmem:[#allocation5 + $0x8] sm:$0xff]   ;;  %v9114_v5 = vld [vmem:[#allocation7 + $0x8] sm:$0xff]   ;;  %vm204_vm1 = vcmask 261120   ;;  %vm294_vm2 = vcmask 523264   ;;  %s13155_s24 = smov [#allocation20]  }
  0xc4   :  { %10690 = vmatprep.subr.bf16.mxu1 %v13152_v0  ;;  %10586 = vmatprep.mubr.msk.f32.mxu1 %vm13153_vm0, %v13154_v1  ;;  %v190_v6 = vld [vmem:[#allocation2] sm:$0xff]  ;;  %v9115_v7 = vld [vmem:[#allocation7 + $0x10] sm:$0xff]   ;;  %v9116_v8 = vld [vmem:[#allocation7 + $0x18] sm:$0xff]   ;;  %s7928_s1 = sshll.u32 %s13155_s24, 4  ;;  %s7929_s1 = int_to_ptr.vmem [resolvable:$true] %s7928_s1 }
  0xc5   :  { %10686 = vmatpush3.bf16.msra.mxu0 %v8018_v2  ;;  %10692 = vmatpush3.bf16.msra.mxu1 %v8026_v3  ;;  %v7942_v9 = vld [vmem:[%s13952_s11] ss:$0 sm:$0xff]  ;;  %v7945_v13 = vld [vmem:[%s13952_s11 + $0x1] ss:$0 sm:$0xff]  ;;  %v402_v26 = vld [vmem:[#allocation8 + $0x8] sm:$0xff]  ;;  %s13102_s22 = scalar_lea.vmem %s7929_s1, 128  ;;  %p13107_p5 = scmp.lt.s32.totalorder %s7929_s1, %s7929_s1 }
  0xc6   :  { %10687 = vmatprep.subr.bf16.mxu0 %v13152_v0  ;;  %10693 = vmatprep.subr.bf16.mxu1 %v13152_v0  ;;  %v401_v24 = vld [vmem:[#allocation8] sm:$0xff]  ;;  %v410_v28 = vld [vmem:[#allocation8 + $0x48] sm:$0xff]  ;;  %v403_v56 = vld [vmem:[#allocation8 + $0x10] sm:$0xff]  ;;  %p13103_p4 = scmp.ne.s32.totalorder %s7929_s1, %s13102_s22  ;;  %p13108_p6 = scmp.lt.s32.totalorder %s13102_s22, %s13102_s22 }
  0xc7   :  { %v409_v25 = vld [vmem:[#allocation8 + $0x40] sm:$0xff]  ;;  %v12306_v30 = vcombine.high %v402_v26, %v410_v28  ;;  %v12307_v31 = vcombine.low %v402_v26, %v410_v28  ;;  %v418_v34 = vld [vmem:[#allocation8 + $0x88] sm:$0xff]  ;;  %v411_v57 = vld [vmem:[#allocation8 + $0x50] sm:$0xff] }
  0xc8   :  { %v12298_v27 = vcombine.high %v401_v24, %v409_v25  ;;  %v12299_v29 = vcombine.low %v401_v24, %v409_v25  ;;  %v417_v32 = vld [vmem:[#allocation8 + $0x80] sm:$0xff]  ;;  %v426_v36 = vld [vmem:[#allocation8 + $0xc8] sm:$0xff]  ;;  %v404_v58 = vld [vmem:[#allocation8 + $0x18] sm:$0xff]  ;;  %v12314_v59 = vcombine.high %v403_v56, %v411_v57  ;;  %v12315_v61 = vcombine.low %v403_v56, %v411_v57  ;;  %p13109_p7 = por %p13108_p6, %p13107_p5 }
  0xc9   :  { %10689 = vmatpush3.bf16.msra.mxu0 %v9113_v4  ;;  %10695 = vmatpush3.bf16.msra.mxu1 %v9114_v5  ;;  %v425_v33 = vld [vmem:[#allocation8 + $0xc0] sm:$0xff]  ;;  %v12308_v38 = vcombine.high %v418_v34, %v426_v36  ;;  %v12309_v39 = vcombine.low %v418_v34, %v426_v36  ;;  %v434_v42 = vld [vmem:[#allocation8 + $0x108] sm:$0xff]  ;;  %v412_v60 = vld [vmem:[#allocation8 + $0x58] sm:$0xff] }
  0xca   :  { %10696 = vmatprep.subr.bf16.mxu1 %v13152_v0  ;;  %10703 = vmatprep.subr.bf16.mxu0 %v12298_v27  ;;  %v12300_v35 = vcombine.high %v417_v32, %v425_v33  ;;  %v12301_v37 = vcombine.low %v417_v32, %v425_v33  ;;  %v433_v40 = vld [vmem:[#allocation8 + $0x100] sm:$0xff]  ;;  %v442_v44 = vld [vmem:[#allocation8 + $0x148] sm:$0xff]  ;;  %v12322_v62 = vcombine.high %v404_v58, %v412_v60  ;;  %v451_v26 = vld [vmem:[#allocation8 + $0x190] sm:$0xff]  ;;  %p13110_p8 = pnand %p13109_p7, %p13103_p4 }
  0xcb   :  { %v441_v41 = vld [vmem:[#allocation8 + $0x140] sm:$0xff]  ;;  %v12310_v46 = vcombine.high %v434_v42, %v442_v44  ;;  %v12311_v47 = vcombine.low %v434_v42, %v442_v44  ;;  %v450_v50 = vld [vmem:[#allocation8 + $0x188] sm:$0xff]  ;;  %v12323_v63 = vcombine.low %v404_v58, %v412_v60  ;;  %v459_v27 = vld [vmem:[#allocation8 + $0x1d0] sm:$0xff] }
  0xcc   :  { %10568 = vmatmul.mubr.msk.f32.vlgmr.msra.gmra.mrb[0].mxu0 %vm204_vm1, %v190_v6  ;;  %v12302_v43 = vcombine.high %v433_v40, %v441_v41  ;;  %v12303_v45 = vcombine.low %v433_v40, %v441_v41  ;;  %v449_v48 = vld [vmem:[#allocation8 + $0x180] sm:$0xff]  ;;  %v458_v52 = vld [vmem:[#allocation8 + $0x1c8] sm:$0xff]  ;;  %v452_v28 = vld [vmem:[#allocation8 + $0x198] sm:$0xff]  ;;  %v12320_v32 = vcombine.high %v451_v26, %v459_v27 }
  0xcd   :  { %745 = vmatprep.mubr.f32.mxu0 %v13154_v1  ;;  %10698 = vmatpush3.bf16.msra.mxu1 %v9115_v7  ;;  %v457_v49 = vld [vmem:[#allocation8 + $0x1c0] sm:$0xff]  ;;  %v12312_v54 = vcombine.high %v450_v50, %v458_v52  ;;  %v12313_v55 = vcombine.low %v450_v50, %v458_v52  ;;  %v406_v36 = vld [vmem:[#allocation8 + $0x28] sm:$0xff] }
  0xce   :  { %10699 = vmatprep.subr.bf16.mxu1 %v13152_v0  ;;  %10705 = vmatpush1.bf16.msra.mxu0 %v12299_v29  ;;  %v12304_v51 = vcombine.high %v449_v48, %v457_v49  ;;  %v12305_v53 = vcombine.low %v449_v48, %v457_v49  ;;  %v7946_v6 = vld [vmem:[%s13952_s11 + $0x2] ss:$0 sm:$0xff]  ;;  %v7947_v7 = vld [vmem:[%s13952_s11 + $0x3] ss:$0 sm:$0xff]  ;;  %v460_v29 = vld [vmem:[#allocation8 + $0x1d8] sm:$0xff] }
  0xcf   :  { %10707 = vmatprep.subr.bf16.mxu0 %v12300_v35  ;;  %v12328_v33 = vcombine.high %v452_v28, %v460_v29  ;;  %v405_v34 = vld [vmem:[#allocation8 + $0x20] sm:$0xff]  ;;  %v422_v44 = vld [vmem:[#allocation8 + $0xa8] sm:$0xff] }
  0xd0   :  { %v413_v35 = vld [vmem:[#allocation8 + $0x60] sm:$0xff]  ;;  %v438_v52 = vld [vmem:[#allocation8 + $0x128] sm:$0xff] }
  0xd1   :  { %10701 = vmatpush3.bf16.msra.mxu1 %v9116_v8  ;;  %v12330_v40 = vcombine.high %v405_v34, %v413_v35  ;;  %v421_v42 = vld [vmem:[#allocation8 + $0xa0] sm:$0xff]  ;;  %v454_v60 = vld [vmem:[#allocation8 + $0x1a8] sm:$0xff] }
  0xd2   :  { %10719 = vmatprep.subr.bf16.mxu1 %v12306_v30  ;;  %10709 = vmatpush1.bf16.msra.mxu0 %v12301_v37  ;;  %v414_v37 = vld [vmem:[#allocation8 + $0x68] sm:$0xff]  ;;  %v437_v50 = vld [vmem:[#allocation8 + $0x120] sm:$0xff] }
  0xd3   :  { %10711 = vmatprep.subr.bf16.mxu0 %v12302_v43  ;;  %v12338_v41 = vcombine.high %v406_v36, %v414_v37  ;;  %v429_v43 = vld [vmem:[#allocation8 + $0xe0] sm:$0xff] }
  0xd4   :  { %v12332_v48 = vcombine.high %v421_v42, %v429_v43  ;;  %v453_v58 = vld [vmem:[#allocation8 + $0x1a0] sm:$0xff] }
  0xd6   :  { %10713 = vmatpush1.bf16.msra.mxu0 %v12303_v45  ;;  %v430_v45 = vld [vmem:[#allocation8 + $0xe8] sm:$0xff] }
  0xd7   :  { %10715 = vmatprep.subr.bf16.mxu0 %v12304_v51  ;;  %v12340_v49 = vcombine.high %v422_v44, %v430_v45  ;;  %v445_v51 = vld [vmem:[#allocation8 + $0x160] sm:$0xff] }
  0xd8   :  { %v12334_v56 = vcombine.high %v437_v50, %v445_v51 }
  0xda   :  { %10717 = vmatpush1.bf16.msra.mxu0 %v12305_v53  ;;  %v446_v53 = vld [vmem:[#allocation8 + $0x168] sm:$0xff] }
  0xdb   :  { %10735 = vmatprep.subr.bf16.mxu0 %v12314_v59  ;;  %v12342_v57 = vcombine.high %v438_v52, %v446_v53  ;;  %v461_v59 = vld [vmem:[#allocation8 + $0x1e0] sm:$0xff] }
 0x19f   :  { %v274_v10 = vpop.f32.mrb[0].mxu0 }
 0x1a0   :  { %v13399_v11 = vadd.f32 %v7942_v9, %v274_v10  ;;  %v10569_v12 = vpop.f32.mrb[1].mxu0  ;;  %v419_v9 = vld [vmem:[#allocation8 + $0x90] sm:$0xff] }
 0x1a1   :  { %v427_v10 = vld [vmem:[#allocation8 + $0xd0] sm:$0xff]  ;;  %v420_v12 = vld [vmem:[#allocation8 + $0x98] sm:$0xff] }
 0x1a2   :  { %10587 = vmatmul.mubr.msk.f32.vlgmr.msra.gmra.mrb[0].mxu1 %vm294_vm2, %v13399_v11 }
 0x1a3   :  { %816 = vmatprep.mubr.f32.mxu1 %v13154_v1  ;;  %10721 = vmatpush1.bf16.msra.mxu1 %v12307_v31 }
 0x1a4   :  { %10723 = vmatprep.subr.bf16.mxu1 %v12308_v38  ;;  %v12321_v38 = vcombine.low %v451_v26, %v459_v27 }
 0x1a7   :  { %10725 = vmatpush1.bf16.msra.mxu1 %v12309_v39  ;;  %v12329_v39 = vcombine.low %v452_v28, %v460_v29 }
 0x1a8   :  { %10727 = vmatprep.subr.bf16.mxu1 %v12310_v46  ;;  %v12331_v46 = vcombine.low %v405_v34, %v413_v35 }
 0x1ab   :  { %10729 = vmatpush1.bf16.msra.mxu1 %v12311_v47  ;;  %v12339_v47 = vcombine.low %v406_v36, %v414_v37 }
 0x1ac   :  { %10731 = vmatprep.subr.bf16.mxu1 %v12312_v54  ;;  %v12333_v54 = vcombine.low %v421_v42, %v429_v43  ;;  %v8042_v42 = vld [vmem:[#allocation10] sm:$0xff]  }
 0x1ad   :  { %v9132_v43 = vld [vmem:[#allocation10 + $0x80] sm:$0xff]  }
 0x1af   :  { %10733 = vmatpush1.bf16.msra.mxu1 %v12313_v55  ;;  %v12341_v55 = vcombine.low %v422_v44, %v430_v45  ;;  %v9125_v44 = vld [vmem:[#allocation10 + $0x48] sm:$0xff]  }
 0x1b0   :  { %10751 = vmatprep.subr.bf16.mxu1 %v12322_v62  ;;  %v12335_v62 = vcombine.low %v437_v50, %v445_v51  ;;  %v9141_v45 = vld [vmem:[#allocation10 + $0xc8] sm:$0xff]   ;;  %v9118_v50 = vld [vmem:[#allocation10 + $0x10] sm:$0xff]  }
 0x1b1   :  { %v9134_v51 = vld [vmem:[#allocation10 + $0x90] sm:$0xff]  }
 0x275   :  { %v364_v14 = vpop.f32.mrb[0].mxu1 }
 0x276   :  { %v373_v15 = vadd.f32 %v7945_v13, %v364_v14  ;;  %v10588_v16 = vpop.f32.mrb[1].mxu1  ;;  %v428_v13 = vld [vmem:[#allocation8 + $0xd8] sm:$0xff] }
 0x277   :  { %v12316_v16 = vcombine.high %v419_v9, %v427_v10 }
 0x278   :  { %v374_v17 = vadd.f32 %v373_v15, %v13399_v11 }
 0x27a   :  { %v377_v18 = vsel %vm294_vm2, %v374_v17, 0.0 }
 0x27b   :  { %378 = vadd.xlane.f32.xlu0 %v377_v18  ;;  %v435_v18 = vld [vmem:[#allocation8 + $0x110] sm:$0xff] }
 0x308   :  { %v379_v19 = vpop.xlane.xlu0 %378 }
 0x309   :  { %v381_v20 = vmul.f32 0.015625, %v379_v19  ;;  %v443_v19 = vld [vmem:[#allocation8 + $0x150] sm:$0xff] }
 0x30a   :  { %v12318_v24 = vcombine.high %v435_v18, %v443_v19  ;;  %v12319_v30 = vcombine.low %v435_v18, %v443_v19 }
 0x30b   :  { %v13409_v21 = vsub.f32 %v374_v17, %v381_v20  ;;  %v12324_v17 = vcombine.high %v420_v12, %v428_v13  ;;  %v436_v20 = vld [vmem:[#allocation8 + $0x118] sm:$0xff] }
 0x30d   :  { %v383_v22 = vmul.f32 %v13409_v21, %v13409_v21 }
 0x30f   :  { %v384_v23 = vsel %vm294_vm2, %v383_v22, 0.0  ;;  %v444_v22 = vld [vmem:[#allocation8 + $0x158] sm:$0xff] }
 0x310   :  { %385 = vadd.xlane.f32.xlu0 %v384_v23  ;;  %v12325_v23 = vcombine.low %v420_v12, %v428_v13  ;;  %v12326_v25 = vcombine.high %v436_v20, %v444_v22  ;;  %v12327_v31 = vcombine.low %v436_v20, %v444_v22  ;;  %v423_v13 = vld [vmem:[#allocation8 + $0xb0] sm:$0xff] }
 0x39d   :  { %v386_v2 = vpop.xlane.xlu0 %385 }
 0x39e   :  { %v387_v3 = vmul.f32 0.015625, %v386_v2  ;;  %v12336_v2 = vcombine.high %v453_v58, %v461_v59 }
 0x3a0   :  { %v388_v4 = vadd.f32 1e-05, %v387_v3 }
 0x3a2   :  { %12572 = vrsqrt.f32 %v388_v4  ;;  %v407_v4 = vld [vmem:[#allocation8 + $0x30] sm:$0xff] }
 0x3ac   :  { %v12573_v5 = vpop.eup %12572 }
 0x3ad   :  { %v390_v8 = vmul.f32 %v12573_v5, %v13409_v21  ;;  %v12317_v21 = vcombine.low %v419_v9, %v427_v10  ;;  %v415_v5 = vld [vmem:[#allocation8 + $0x70] sm:$0xff] }
 0x3ae   :  { %v12346_v10 = vcombine.high %v407_v4, %v415_v5  ;;  %v12347_v18 = vcombine.low %v407_v4, %v415_v5  ;;  %v9122_v4 = vld [vmem:[#allocation10 + $0x30] sm:$0xff]  }
 0x3af   :  { %v395_v14 = vmul.f32 %v7946_v6, %v390_v8  ;;  %v408_v6 = vld [vmem:[#allocation8 + $0x38] sm:$0xff]  ;;  %v12337_v8 = vcombine.low %v453_v58, %v461_v59  ;;  %v9120_v58 = vld [vmem:[#allocation10 + $0x20] sm:$0xff]   ;;  %v9138_v5 = vld [vmem:[#allocation10 + $0xb0] sm:$0xff]  }
 0x3b0   :  { %v9136_v59 = vld [vmem:[#allocation10 + $0xa0] sm:$0xff]  }
 0x3b1   :  { %v13421_v15 = vadd.f32 %v7947_v7, %v395_v14  ;;  %v416_v7 = vld [vmem:[#allocation8 + $0x78] sm:$0xff]  ;;  %v431_v14 = vld [vmem:[#allocation8 + $0xf0] sm:$0xff] }
 0x3b2   :  { %v12354_v12 = vcombine.high %v408_v6, %v416_v7  ;;  %v12355_v19 = vcombine.low %v408_v6, %v416_v7  ;;  %v12348_v20 = vcombine.high %v423_v13, %v431_v14  ;;  %v12349_v26 = vcombine.low %v423_v13, %v431_v14  ;;  %v9131_v6 = vld [vmem:[#allocation10 + $0x78] sm:$0xff]  }
 0x3b3   :  { %7948 = vmatmul.mubr.msk.f32.vlgmr.msra.gmra.mrb[2].mxu0 %vm294_vm2, %v13421_v15  ;;  %7949 = vmatmul.mubr.msk.f32.vlgmr.msra.gmra.mrb[2].mxu1 %vm294_vm2, %v13421_v15  ;;  %v9147_v7 = vld [vmem:[#allocation10 + $0xf8] sm:$0xff]   ;;  %v598_v13 = vlaneseq }
 0x3b4   :  { %10737 = vmatpush1.bf16.msra.mxu0 %v12315_v61  ;;  %10753 = vmatpush1.bf16.msra.mxu1 %v12323_v63  ;;  %v462_v61 = vld [vmem:[#allocation8 + $0x1e8] sm:$0xff]  ;;  %v12343_v63 = vcombine.low %v438_v52, %v446_v53  ;;  %v9127_v52 = vld [vmem:[#allocation10 + $0x58] sm:$0xff]  }
 0x3b5   :  { %10739 = vmatprep.subr.bf16.mxu0 %v12316_v16  ;;  %10755 = vmatprep.subr.bf16.mxu1 %v12324_v17  ;;  %v12344_v3 = vcombine.high %v454_v60, %v462_v61  ;;  %v12345_v9 = vcombine.low %v454_v60, %v462_v61  ;;  %v424_v16 = vld [vmem:[#allocation8 + $0xb8] sm:$0xff]  ;;  %v9129_v60 = vld [vmem:[#allocation10 + $0x68] sm:$0xff]   ;;  %v13445_v14 = vshrl.u32 %v598_v13, 7  ;;  %v9178_v13 = vld [vmem:[#allocation10 + $0x1f0] sm:$0xff]  }
 0x3b6   :  { %887 = vmatprep.mubr.f32.mxu0 %v13154_v1  ;;  %958 = vmatprep.mubr.f32.mxu1 %v13154_v1  ;;  %v432_v17 = vld [vmem:[#allocation8 + $0xf8] sm:$0xff]  ;;  %v9145_v61 = vld [vmem:[#allocation10 + $0xe8] sm:$0xff]  }
 0x3b7   :  { %v12356_v22 = vcombine.high %v424_v16, %v432_v17  ;;  %v12357_v27 = vcombine.low %v424_v16, %v432_v17  ;;  %v9143_v53 = vld [vmem:[#allocation10 + $0xd8] sm:$0xff]   ;;  %v13448_v16 = vsub.s32 0, %v13445_v14  ;;  %v13451_v17 = vsub.s32 2, %v13445_v14 }
 0x3b8   :  { %10741 = vmatpush1.bf16.msra.mxu0 %v12317_v21  ;;  %10757 = vmatpush1.bf16.msra.mxu1 %v12325_v23  ;;  %v439_v21 = vld [vmem:[#allocation8 + $0x130] sm:$0xff] }
 0x3b9   :  { %10743 = vmatprep.subr.bf16.mxu0 %v12318_v24  ;;  %10759 = vmatprep.subr.bf16.mxu1 %v12326_v25  ;;  %v447_v23 = vld [vmem:[#allocation8 + $0x170] sm:$0xff]  ;;  %v440_v24 = vld [vmem:[#allocation8 + $0x138] sm:$0xff] }
 0x3ba   :  { %v448_v25 = vld [vmem:[#allocation8 + $0x178] sm:$0xff]  ;;  %v12350_v28 = vcombine.high %v439_v21, %v447_v23  ;;  %v12351_v34 = vcombine.low %v439_v21, %v447_v23 }
 0x3bb   :  { %v12358_v29 = vcombine.high %v440_v24, %v448_v25  ;;  %v12359_v35 = vcombine.low %v440_v24, %v448_v25 }
 0x3bc   :  { %10745 = vmatpush1.bf16.msra.mxu0 %v12319_v30  ;;  %10761 = vmatpush1.bf16.msra.mxu1 %v12327_v31  ;;  %v455_v30 = vld [vmem:[#allocation8 + $0x1b0] sm:$0xff] }
 0x3bd   :  { %10747 = vmatprep.subr.bf16.mxu0 %v12320_v32  ;;  %10763 = vmatprep.subr.bf16.mxu1 %v12328_v33  ;;  %v463_v31 = vld [vmem:[#allocation8 + $0x1f0] sm:$0xff]  ;;  %v456_v32 = vld [vmem:[#allocation8 + $0x1b8] sm:$0xff] }
 0x3be   :  { %v464_v33 = vld [vmem:[#allocation8 + $0x1f8] sm:$0xff]  ;;  %v12352_v36 = vcombine.high %v455_v30, %v463_v31 }
 0x3bf   :  { %v12360_v37 = vcombine.high %v456_v32, %v464_v33 }
 0x3c0   :  { %10749 = vmatpush1.bf16.msra.mxu0 %v12321_v38  ;;  %10765 = vmatpush1.bf16.msra.mxu1 %v12329_v39  ;;  %v12353_v38 = vcombine.low %v455_v30, %v463_v31  ;;  %v12361_v39 = vcombine.low %v456_v32, %v464_v33 }
 0x3c1   :  { %10767 = vmatprep.subr.bf16.mxu0 %v12330_v40  ;;  %10783 = vmatprep.subr.bf16.mxu1 %v12338_v41  ;;  %v9124_v40 = vld [vmem:[#allocation10 + $0x40] sm:$0xff]  }
 0x3c2   :  { %v9140_v41 = vld [vmem:[#allocation10 + $0xc0] sm:$0xff]  }
 0x3c3   :  { %7950 = vmatmul.mubr.msk.f32.vlgmr.msra.gmra.mrb[4].mxu0 %vm294_vm2, %v13421_v15  ;;  %7951 = vmatmul.mubr.msk.f32.vlgmr.msra.gmra.mrb[4].mxu1 %vm294_vm2, %v13421_v15 }
 0x3c4   :  { %10769 = vmatpush1.bf16.msra.mxu0 %v12331_v46  ;;  %10785 = vmatpush1.bf16.msra.mxu1 %v12339_v47  ;;  %v9117_v46 = vld [vmem:[#allocation10 + $0x8] sm:$0xff]  }
 0x3c5   :  { %10771 = vmatprep.subr.bf16.mxu0 %v12332_v48  ;;  %10787 = vmatprep.subr.bf16.mxu1 %v12340_v49  ;;  %v9133_v47 = vld [vmem:[#allocation10 + $0x88] sm:$0xff]   ;;  %v9126_v48 = vld [vmem:[#allocation10 + $0x50] sm:$0xff]  }
 0x3c6   :  { %1029 = vmatprep.mubr.f32.mxu0 %v13154_v1  ;;  %1100 = vmatprep.mubr.f32.mxu1 %v13154_v1  ;;  %v9142_v49 = vld [vmem:[#allocation10 + $0xd0] sm:$0xff]  }
 0x3c8   :  { %10773 = vmatpush1.bf16.msra.mxu0 %v12333_v54  ;;  %10789 = vmatpush1.bf16.msra.mxu1 %v12341_v55  ;;  %v9119_v54 = vld [vmem:[#allocation10 + $0x18] sm:$0xff]  }
 0x3c9   :  { %10775 = vmatprep.subr.bf16.mxu0 %v12334_v56  ;;  %10791 = vmatprep.subr.bf16.mxu1 %v12342_v57  ;;  %v9135_v55 = vld [vmem:[#allocation10 + $0x98] sm:$0xff]   ;;  %v9128_v56 = vld [vmem:[#allocation10 + $0x60] sm:$0xff]  }
 0x3ca   :  { %v9144_v57 = vld [vmem:[#allocation10 + $0xe0] sm:$0xff]  }
 0x3cc   :  { %10777 = vmatpush1.bf16.msra.mxu0 %v12335_v62  ;;  %10793 = vmatpush1.bf16.msra.mxu1 %v12343_v63  ;;  %v9121_v62 = vld [vmem:[#allocation10 + $0x28] sm:$0xff]  }
 0x3cd   :  { %10779 = vmatprep.subr.bf16.mxu0 %v12336_v2  ;;  %10795 = vmatprep.subr.bf16.mxu1 %v12344_v3  ;;  %v9137_v63 = vld [vmem:[#allocation10 + $0xa8] sm:$0xff]   ;;  %v9130_v2 = vld [vmem:[#allocation10 + $0x70] sm:$0xff]  }
 0x3ce   :  { %v9146_v3 = vld [vmem:[#allocation10 + $0xf0] sm:$0xff]  }
 0x3d0   :  { %10781 = vmatpush1.bf16.msra.mxu0 %v12337_v8  ;;  %10797 = vmatpush1.bf16.msra.mxu1 %v12345_v9  ;;  %v9123_v8 = vld [vmem:[#allocation10 + $0x38] sm:$0xff]  }
 0x3d1   :  { %10799 = vmatprep.subr.bf16.mxu0 %v12346_v10  ;;  %10815 = vmatprep.subr.bf16.mxu1 %v12354_v12  ;;  %v9139_v9 = vld [vmem:[#allocation10 + $0xb8] sm:$0xff]   ;;  %v9156_v10 = vld [vmem:[#allocation10 + $0x140] sm:$0xff]  }
 0x3d2   :  { %v9172_v12 = vld [vmem:[#allocation10 + $0x1c0] sm:$0xff]  }
 0x3d3   :  { %7952 = vmatmul.mubr.msk.f32.vlgmr.msra.gmra.mrb[6].mxu0 %vm294_vm2, %v13421_v15  ;;  %7953 = vmatmul.mubr.msk.f32.vlgmr.msra.gmra.mrb[6].mxu1 %vm294_vm2, %v13421_v15 }
 0x3d4   :  { %10801 = vmatpush1.bf16.msra.mxu0 %v12347_v18  ;;  %10817 = vmatpush1.bf16.msra.mxu1 %v12355_v19  ;;  %v13453_v18 = vld [vmem:[#allocation19] ss:$4 sm:$0xff]  ;;  %v13456_v19 = vsub.s32 1, %v13445_v14 }
 0x3d5   :  { %10803 = vmatprep.subr.bf16.mxu0 %v12348_v20  ;;  %10819 = vmatprep.subr.bf16.mxu1 %v12356_v22  ;;  %v13459_v20 = vsub.s32 3, %v13445_v14  ;;  %v601_v22 = vrot.slane %v13453_v18, %v13448_v16  ;;  %v609_v21 = vrot.slane %v13453_v18, %v13451_v17 }
 0x3d6   :  { %1171 = vmatprep.mubr.f32.mxu0 %v13154_v1  ;;  %1242 = vmatprep.mubr.f32.mxu1 %v13154_v1  ;;  %v605_v23 = vrot.slane %v13453_v18, %v13456_v19 }
 0x3d7   :  { %v613_v24 = vrot.slane %v13453_v18, %v13459_v20 }
 0x3d8   :  { %10805 = vmatpush1.bf16.msra.mxu0 %v12349_v26  ;;  %10821 = vmatpush1.bf16.msra.mxu1 %v12357_v27 }
 0x3d9   :  { %10807 = vmatprep.subr.bf16.mxu0 %v12350_v28  ;;  %10823 = vmatprep.subr.bf16.mxu1 %v12358_v29 }
 0x3dc   :  { %10809 = vmatpush1.bf16.msra.mxu0 %v12351_v34  ;;  %10825 = vmatpush1.bf16.msra.mxu1 %v12359_v35 }
 0x3dd   :  { %10811 = vmatprep.subr.bf16.mxu0 %v12352_v36  ;;  %10827 = vmatprep.subr.bf16.mxu1 %v12360_v37  ;;  %v9148_v37 = vld [vmem:[#allocation10 + $0x100] sm:$0xff]  }
 0x3e0   :  { %10813 = vmatpush1.bf16.msra.mxu0 %v12353_v38  ;;  %10829 = vmatpush1.bf16.msra.mxu1 %v12361_v39  ;;  %v9164_v38 = vld [vmem:[#allocation10 + $0x180] sm:$0xff]   ;;  %v9157_v39 = vld [vmem:[#allocation10 + $0x148] sm:$0xff]  }
 0x3e1   :  { %10831 = vmatprep.subr.bf16.mxu0 %v9124_v40  ;;  %10863 = vmatprep.subr.bf16.mxu1 %v9140_v41  ;;  %v9173_v40 = vld [vmem:[#allocation10 + $0x1c8] sm:$0xff]  }
 0x3e2   :  { %v9149_v41 = vld [vmem:[#allocation10 + $0x108] sm:$0xff]  }
 0x3e3   :  { %7954 = vmatmul.mubr.msk.f32.vlgmr.msra.gmra.mrb[8].mxu0 %vm294_vm2, %v13421_v15  ;;  %7955 = vmatmul.mubr.msk.f32.vlgmr.msra.gmra.mrb[8].mxu1 %vm294_vm2, %v13421_v15 }
 0x3e4   :  { %10833 = vmatpush3.bf16.msra.mxu0 %v8042_v42  ;;  %10865 = vmatpush3.bf16.msra.mxu1 %v9132_v43  ;;  %v9165_v42 = vld [vmem:[#allocation10 + $0x188] sm:$0xff]   ;;  %v9158_v43 = vld [vmem:[#allocation10 + $0x150] sm:$0xff]  }
 0x3e5   :  { %10835 = vmatprep.subr.bf16.mxu0 %v9125_v44  ;;  %10867 = vmatprep.subr.bf16.mxu1 %v9141_v45  ;;  %v9174_v44 = vld [vmem:[#allocation10 + $0x1d0] sm:$0xff]   ;;  %v13470_v45 = vsub.s32 5, %v13445_v14 }
 0x3e8   :  { %10837 = vmatpush3.bf16.msra.mxu0 %v9117_v46  ;;  %10869 = vmatpush3.bf16.msra.mxu1 %v9133_v47  ;;  %v13473_v46 = vsub.s32 7, %v13445_v14  ;;  %v9150_v47 = vld [vmem:[#allocation10 + $0x110] sm:$0xff]  }
 0x3e9   :  { %10839 = vmatprep.subr.bf16.mxu0 %v9126_v48  ;;  %10871 = vmatprep.subr.bf16.mxu1 %v9142_v49  ;;  %v9166_v48 = vld [vmem:[#allocation10 + $0x190] sm:$0xff]   ;;  %v621_v49 = vrot.slane %v13453_v18, %v13470_v45 }
 0x3ec   :  { %10841 = vmatpush3.bf16.msra.mxu0 %v9118_v50  ;;  %10873 = vmatpush3.bf16.msra.mxu1 %v9134_v51  ;;  %v629_v50 = vrot.slane %v13453_v18, %v13473_v46  ;;  %v9159_v51 = vld [vmem:[#allocation10 + $0x158] sm:$0xff]  }
 0x3ed   :  { %10843 = vmatprep.subr.bf16.mxu0 %v9127_v52  ;;  %10875 = vmatprep.subr.bf16.mxu1 %v9143_v53  ;;  %v9175_v52 = vld [vmem:[#allocation10 + $0x1d8] sm:$0xff]  }
 0x3f0   :  { %10845 = vmatpush3.bf16.msra.mxu0 %v9119_v54  ;;  %10877 = vmatpush3.bf16.msra.mxu1 %v9135_v55 }
 0x3f1   :  { %10847 = vmatprep.subr.bf16.mxu0 %v9128_v56  ;;  %10879 = vmatprep.subr.bf16.mxu1 %v9144_v57  ;;  %v9151_v57 = vld [vmem:[#allocation10 + $0x118] sm:$0xff]  }
 0x3f4   :  { %10849 = vmatpush3.bf16.msra.mxu0 %v9120_v58  ;;  %10881 = vmatpush3.bf16.msra.mxu1 %v9136_v59  ;;  %v9167_v58 = vld [vmem:[#allocation10 + $0x198] sm:$0xff]  }
 0x3f5   :  { %10851 = vmatprep.subr.bf16.mxu0 %v9129_v60  ;;  %10883 = vmatprep.subr.bf16.mxu1 %v9145_v61  ;;  %v9160_v61 = vld [vmem:[#allocation10 + $0x160] sm:$0xff]  }
 0x3f8   :  { %10853 = vmatpush3.bf16.msra.mxu0 %v9121_v62  ;;  %10885 = vmatpush3.bf16.msra.mxu1 %v9137_v63  ;;  %v9176_v62 = vld [vmem:[#allocation10 + $0x1e0] sm:$0xff]  }
 0x3f9   :  { %10855 = vmatprep.subr.bf16.mxu0 %v9130_v2  ;;  %10887 = vmatprep.subr.bf16.mxu1 %v9146_v3  ;;  %v9152_v3 = vld [vmem:[#allocation10 + $0x120] sm:$0xff]  }
 0x3fc   :  { %10857 = vmatpush3.bf16.msra.mxu0 %v9122_v4  ;;  %10889 = vmatpush3.bf16.msra.mxu1 %v9138_v5  ;;  %v9168_v4 = vld [vmem:[#allocation10 + $0x1a0] sm:$0xff]   ;;  %v9161_v5 = vld [vmem:[#allocation10 + $0x168] sm:$0xff]  }
 0x3fd   :  { %10859 = vmatprep.subr.bf16.mxu0 %v9131_v6  ;;  %10891 = vmatprep.subr.bf16.mxu1 %v9147_v7  ;;  %v9177_v6 = vld [vmem:[#allocation10 + $0x1e8] sm:$0xff]   ;;  %v13480_v7 = vsub.s32 4, %v13445_v14 }
 0x400   :  { %10861 = vmatpush3.bf16.msra.mxu0 %v9123_v8  ;;  %10893 = vmatpush3.bf16.msra.mxu1 %v9139_v9  ;;  %v13483_v8 = vsub.s32 6, %v13445_v14  ;;  %v9153_v9 = vld [vmem:[#allocation10 + $0x128] sm:$0xff]   ;;  %v9154_v14 = vld [vmem:[#allocation10 + $0x130] sm:$0xff]  }
 0x401   :  { %10895 = vmatprep.subr.bf16.mxu0 %v9156_v10  ;;  %10927 = vmatprep.subr.bf16.mxu1 %v9172_v12  ;;  %v9169_v10 = vld [vmem:[#allocation10 + $0x1a8] sm:$0xff]   ;;  %v9162_v12 = vld [vmem:[#allocation10 + $0x170] sm:$0xff]  }
 0x486   :  { %v747_v25 = vpop.f32.mrb[2].mxu0  ;;  %v818_v26 = vpop.f32.mrb[2].mxu1 }
 0x487   :  { %v748_v27 = vadd.f32 %v747_v25, %v601_v22  ;;  %v819_v28 = vadd.f32 %v818_v26, %v609_v21  ;;  %v749_v29 = vpop.f32.mrb[3].mxu0  ;;  %v820_v30 = vpop.f32.mrb[3].mxu1  ;;  %v13485_v22 = vld [vmem:[#allocation19 + $0x20] ss:$4 sm:$0xff]  ;;  %v617_v21 = vrot.slane %v13453_v18, %v13480_v7 }
 0x488   :  { %v750_v31 = vadd.f32 %v749_v29, %v605_v23  ;;  %v821_v32 = vadd.f32 %v820_v30, %v613_v24  ;;  %v625_v23 = vrot.slane %v13453_v18, %v13483_v8  ;;  %v9170_v24 = vld [vmem:[#allocation10 + $0x1b0] sm:$0xff]   ;;  %v637_v25 = vrot.slane %v13485_v22, %v13456_v19  ;;  %v9163_v26 = vld [vmem:[#allocation10 + $0x178] sm:$0xff]  }
 0x489   :  { %v1249_v35 = vmax.f32 %v748_v27, 0.0  ;;  %v1251_v36 = vmax.f32 %v819_v28, 0.0  ;;  %v9179_v27 = vld [vmem:[#allocation10 + $0x1f8] sm:$0xff]   ;;  %v645_v28 = vrot.slane %v13485_v22, %v13459_v20 }
 0x48a   :  { %v1250_v33 = vmax.f32 %v750_v31, 0.0  ;;  %v1252_v34 = vmax.f32 %v821_v32, 0.0 }
 0x48c   :  { %1841 = vmatprep.mubr.f32.mxu0 %v1250_v33  ;;  %1911 = vmatprep.mubr.f32.mxu1 %v1252_v34  ;;  %v9155_v34 = vld [vmem:[#allocation10 + $0x138] sm:$0xff]  }
 0x48d   :  { %1842 = vmatmul.mubr.f32.vlgmr.msra.gmra.mrb[10].mxu0 %v1249_v35  ;;  %1912 = vmatmul.mubr.f32.vlgmr.msra.gmra.mrb[10].mxu1 %v1251_v36  ;;  %v9171_v35 = vld [vmem:[#allocation10 + $0x1b8] sm:$0xff]  }
 0x48e   :  { %10897 = vmatpush3.bf16.msra.mxu0 %v9148_v37  ;;  %10929 = vmatpush3.bf16.msra.mxu1 %v9164_v38  ;;  %v9188_v37 = vld [vmem:[#allocation10 + $0x240] sm:$0xff]  }
 0x48f   :  { %10899 = vmatprep.subr.bf16.mxu0 %v9157_v39  ;;  %10931 = vmatprep.subr.bf16.mxu1 %v9173_v40  ;;  %v9204_v38 = vld [vmem:[#allocation10 + $0x2c0] sm:$0xff]  }
 0x492   :  { %10901 = vmatpush3.bf16.msra.mxu0 %v9149_v41  ;;  %10933 = vmatpush3.bf16.msra.mxu1 %v9165_v42  ;;  %v9180_v42 = vld [vmem:[#allocation10 + $0x200] sm:$0xff]  }
 0x493   :  { %10903 = vmatprep.subr.bf16.mxu0 %v9158_v43  ;;  %10935 = vmatprep.subr.bf16.mxu1 %v9174_v44  ;;  %v9196_v44 = vld [vmem:[#allocation10 + $0x280] sm:$0xff]  }
 0x496   :  { %v889_v53 = vpop.f32.mrb[4].mxu0  ;;  %v960_v54 = vpop.f32.mrb[4].mxu1  ;;  %10905 = vmatpush3.bf16.msra.mxu0 %v9150_v47  ;;  %10937 = vmatpush3.bf16.msra.mxu1 %v9166_v48  ;;  %v9189_v48 = vld [vmem:[#allocation10 + $0x248] sm:$0xff]  }
 0x497   :  { %v891_v55 = vpop.f32.mrb[5].mxu0  ;;  %v962_v56 = vpop.f32.mrb[5].mxu1  ;;  %10907 = vmatprep.subr.bf16.mxu0 %v9159_v51  ;;  %10939 = vmatprep.subr.bf16.mxu1 %v9175_v52  ;;  %v890_v31 = vadd.f32 %v889_v53, %v617_v21  ;;  %v961_v18 = vadd.f32 %v960_v54, %v625_v23  ;;  %v9197_v51 = vld [vmem:[#allocation10 + $0x288] sm:$0xff]   ;;  %v9190_v52 = vld [vmem:[#allocation10 + $0x250] sm:$0xff]   ;;  %v657_v54 = vrot.slane %v13485_v22, %v13483_v8 }
 0x498   :  { %v892_v59 = vadd.f32 %v891_v55, %v621_v49  ;;  %v963_v60 = vadd.f32 %v962_v56, %v629_v50  ;;  %v9205_v49 = vld [vmem:[#allocation10 + $0x2c8] sm:$0xff]   ;;  %v9206_v53 = vld [vmem:[#allocation10 + $0x2d0] sm:$0xff]  }
 0x499   :  { %v1253_v40 = vmax.f32 %v890_v31, 0.0  ;;  %v1255_v41 = vmax.f32 %v961_v18, 0.0  ;;  %v9181_v50 = vld [vmem:[#allocation10 + $0x208] sm:$0xff]   ;;  %v9182_v55 = vld [vmem:[#allocation10 + $0x210] sm:$0xff]   ;;  %v653_v31 = vrot.slane %v13485_v22, %v13470_v45  ;;  %v9211_v18 = vld [vmem:[#allocation10 + $0x2f8] sm:$0xff]  }
 0x49a   :  { %v1254_v63 = vmax.f32 %v892_v59, 0.0  ;;  %v1256_v2 = vmax.f32 %v963_v60, 0.0  ;;  %10909 = vmatpush3.bf16.msra.mxu0 %v9151_v57  ;;  %10941 = vmatpush3.bf16.msra.mxu1 %v9167_v58  ;;  %v9198_v56 = vld [vmem:[#allocation10 + $0x290] sm:$0xff]   ;;  %v9191_v57 = vld [vmem:[#allocation10 + $0x258] sm:$0xff]   ;;  %v9201_v21 = vld [vmem:[#allocation10 + $0x2a8] sm:$0xff]  }
 0x49b   :  { %10911 = vmatprep.subr.bf16.mxu0 %v9160_v61  ;;  %10943 = vmatprep.subr.bf16.mxu1 %v9176_v62  ;;  %v9207_v58 = vld [vmem:[#allocation10 + $0x2d8] sm:$0xff]   ;;  %v9194_v23 = vld [vmem:[#allocation10 + $0x270] sm:$0xff]  }
 0x49c   :  { %1981 = vmatprep.mubr.f32.mxu0 %v1254_v63  ;;  %2051 = vmatprep.mubr.f32.mxu1 %v1256_v2  ;;  %v9183_v2 = vld [vmem:[#allocation10 + $0x218] sm:$0xff]  }
 0x49e   :  { %10913 = vmatpush3.bf16.msra.mxu0 %v9152_v3  ;;  %10945 = vmatpush3.bf16.msra.mxu1 %v9168_v4  ;;  %v9199_v3 = vld [vmem:[#allocation10 + $0x298] sm:$0xff]   ;;  %v9192_v4 = vld [vmem:[#allocation10 + $0x260] sm:$0xff]  }
 0x49f   :  { %10915 = vmatprep.subr.bf16.mxu0 %v9161_v5  ;;  %10947 = vmatprep.subr.bf16.mxu1 %v9177_v6  ;;  %v9208_v5 = vld [vmem:[#allocation10 + $0x2e0] sm:$0xff]  }
 0x4a0   :  { %v9184_v6 = vld [vmem:[#allocation10 + $0x220] sm:$0xff]  }
 0x4a2   :  { %10917 = vmatpush3.bf16.msra.mxu0 %v9153_v9  ;;  %10949 = vmatpush3.bf16.msra.mxu1 %v9169_v10  ;;  %v9200_v9 = vld [vmem:[#allocation10 + $0x2a0] sm:$0xff]   ;;  %v9193_v10 = vld [vmem:[#allocation10 + $0x268] sm:$0xff]  }
 0x4a3   :  { %10919 = vmatprep.subr.bf16.mxu0 %v9162_v12  ;;  %10951 = vmatprep.subr.bf16.mxu1 %v9178_v13  ;;  %v9209_v12 = vld [vmem:[#allocation10 + $0x2e8] sm:$0xff]  }
 0x4a4   :  { %v9185_v13 = vld [vmem:[#allocation10 + $0x228] sm:$0xff]  }
 0x4a6   :  { %v13495_v29 = vpop.f32.mrb[6].mxu0  ;;  %v13497_v30 = vpop.f32.mrb[6].mxu1  ;;  %10921 = vmatpush3.bf16.msra.mxu0 %v9154_v14  ;;  %10953 = vmatpush3.bf16.msra.mxu1 %v9170_v24  ;;  %v9210_v14 = vld [vmem:[#allocation10 + $0x2f0] sm:$0xff]   ;;  %v633_v24 = vrot.slane %v13485_v22, %v13448_v16 }
 0x4a7   :  { %v1033_v32 = vpop.f32.mrb[7].mxu0  ;;  %v1104_v33 = vpop.f32.mrb[7].mxu1  ;;  %10923 = vmatprep.subr.bf16.mxu0 %v9163_v26  ;;  %10955 = vmatprep.subr.bf16.mxu1 %v9179_v27  ;;  %v641_v26 = vrot.slane %v13485_v22, %v13451_v17  ;;  %v9202_v27 = vld [vmem:[#allocation10 + $0x2b0] sm:$0xff]  }
 0x4a8   :  { %v1034_v36 = vadd.f32 %v1033_v32, %v637_v25  ;;  %v1105_v39 = vadd.f32 %v1104_v33, %v645_v28  ;;  %v9186_v25 = vld [vmem:[#allocation10 + $0x230] sm:$0xff]   ;;  %v9195_v28 = vld [vmem:[#allocation10 + $0x278] sm:$0xff]   ;;  %v661_v32 = vrot.slane %v13485_v22, %v13473_v46  ;;  %v1032_v33 = vadd.f32 %v13495_v29, %v633_v24 }
 0x4aa   :  { %10925 = vmatpush3.bf16.msra.mxu0 %v9155_v34  ;;  %10957 = vmatpush3.bf16.msra.mxu1 %v9171_v35  ;;  %v1258_v43 = vmax.f32 %v1034_v36, 0.0  ;;  %v1260_v47 = vmax.f32 %v1105_v39, 0.0  ;;  %v9187_v34 = vld [vmem:[#allocation10 + $0x238] sm:$0xff]   ;;  %v1103_v35 = vadd.f32 %v13497_v30, %v641_v26  ;;  %v9236_v39 = vld [vmem:[#allocation10 + $0x3c0] sm:$0xff]   ;;  %v9237_v30 = vld [vmem:[#allocation10 + $0x3c8] sm:$0xff]  }
 0x4ab   :  { %10959 = vmatprep.subr.bf16.mxu0 %v9188_v37  ;;  %10991 = vmatprep.subr.bf16.mxu1 %v9204_v38  ;;  %v9203_v36 = vld [vmem:[#allocation10 + $0x2b8] sm:$0xff]   ;;  %v9220_v37 = vld [vmem:[#allocation10 + $0x340] sm:$0xff]  }
 0x4ac   :  { %v9235_v26 = vld [vmem:[#allocation10 + $0x3b8] sm:$0xff]  }
 0x4ad   :  { %1982 = vmatmul.mubr.f32.vlgmr.msra.gmra.mrb[12].mxu0 %v1253_v40  ;;  %2052 = vmatmul.mubr.f32.vlgmr.msra.gmra.mrb[12].mxu1 %v1255_v41  ;;  %v1257_v41 = vmax.f32 %v1032_v33, 0.0 }
 0x4ae   :  { %10961 = vmatpush3.bf16.msra.mxu0 %v9180_v42  ;;  %2121 = vmatprep.mubr.f32.mxu0 %v1258_v43  ;;  %v9212_v42 = vld [vmem:[#allocation10 + $0x300] sm:$0xff]   ;;  %v1259_v43 = vmax.f32 %v1103_v35, 0.0 }
 0x4af   :  { %10993 = vmatpush3.bf16.msra.mxu1 %v9196_v44  ;;  %2191 = vmatprep.mubr.f32.mxu1 %v1260_v47  ;;  %v9228_v44 = vld [vmem:[#allocation10 + $0x380] sm:$0xff]   ;;  %v9221_v47 = vld [vmem:[#allocation10 + $0x348] sm:$0xff]  }
 0x4b0   :  { %10963 = vmatprep.subr.bf16.mxu0 %v9189_v48  ;;  %10995 = vmatprep.subr.bf16.mxu1 %v9205_v49  ;;  %v9213_v49 = vld [vmem:[#allocation10 + $0x308] sm:$0xff]  }
 0x4b2   :  { %10965 = vmatpush3.bf16.msra.mxu0 %v9181_v50  ;;  %v9229_v50 = vld [vmem:[#allocation10 + $0x388] sm:$0xff]  }
 0x4b3   :  { %10997 = vmatpush3.bf16.msra.mxu1 %v9197_v51  ;;  %10967 = vmatprep.subr.bf16.mxu0 %v9190_v52  ;;  %v9222_v51 = vld [vmem:[#allocation10 + $0x350] sm:$0xff]  }
 0x4b4   :  { %10999 = vmatprep.subr.bf16.mxu1 %v9206_v53  ;;  %v9238_v52 = vld [vmem:[#allocation10 + $0x3d0] sm:$0xff]  }
 0x4b5   :  { %v9214_v53 = vld [vmem:[#allocation10 + $0x310] sm:$0xff]  }
 0x4b6   :  { %v13501_v59 = vpop.f32.mrb[8].mxu0  ;;  %v1244_v60 = vpop.f32.mrb[8].mxu1  ;;  %10969 = vmatpush3.bf16.msra.mxu0 %v9182_v55  ;;  %v9223_v55 = vld [vmem:[#allocation10 + $0x358] sm:$0xff]  }
 0x4b7   :  { %v13503_v61 = vadd.f32 %v1244_v60, %v657_v54  ;;  %11001 = vmatpush3.bf16.msra.mxu1 %v9198_v56  ;;  %v1175_v62 = vpop.f32.mrb[9].mxu0  ;;  %v1246_v63 = vpop.f32.mrb[9].mxu1  ;;  %10971 = vmatprep.subr.bf16.mxu0 %v9191_v57  ;;  %v9230_v54 = vld [vmem:[#allocation10 + $0x390] sm:$0xff]   ;;  %v9239_v56 = vld [vmem:[#allocation10 + $0x3d8] sm:$0xff]   ;;  %v9224_v60 = vld [vmem:[#allocation10 + $0x360] sm:$0xff]  }
 0x4b8   :  { %11003 = vmatprep.subr.bf16.mxu1 %v9207_v58  ;;  %v1176_v38 = vadd.f32 %v1175_v62, %v653_v31  ;;  %v1247_v40 = vadd.f32 %v1246_v63, %v661_v32  ;;  %v9215_v57 = vld [vmem:[#allocation10 + $0x318] sm:$0xff]   ;;  %v9240_v62 = vld [vmem:[#allocation10 + $0x3e0] sm:$0xff]   ;;  %v12598_v31 = vld [vmem:[#allocation7 + $0x10] sm:$0xff]  }
 0x4b9   :  { %v9231_v58 = vld [vmem:[#allocation10 + $0x398] sm:$0xff]   ;;  %v9216_v63 = vld [vmem:[#allocation10 + $0x320] sm:$0xff]  }
 0x4ba   :  { %10973 = vmatpush3.bf16.msra.mxu0 %v9183_v2  ;;  %v1262_v29 = vmax.f32 %v1176_v38, 0.0  ;;  %v1264_v48 = vmax.f32 %v1247_v40, 0.0  ;;  %v9232_v2 = vld [vmem:[#allocation10 + $0x3a0] sm:$0xff]  }
 0x4bb   :  { %11005 = vmatpush3.bf16.msra.mxu1 %v9199_v3  ;;  %10975 = vmatprep.subr.bf16.mxu0 %v9192_v4  ;;  %v9225_v3 = vld [vmem:[#allocation10 + $0x368] sm:$0xff]  }
 0x4bc   :  { %11007 = vmatprep.subr.bf16.mxu1 %v9208_v5  ;;  %v9241_v4 = vld [vmem:[#allocation10 + $0x3e8] sm:$0xff]  }
 0x4bd   :  { %v9217_v5 = vld [vmem:[#allocation10 + $0x328] sm:$0xff]  }
 0x4be   :  { %10977 = vmatpush3.bf16.msra.mxu0 %v9184_v6  ;;  %v9233_v6 = vld [vmem:[#allocation10 + $0x3a8] sm:$0xff]  }
 0x4bf   :  { %11009 = vmatpush3.bf16.msra.mxu1 %v9200_v9  ;;  %10979 = vmatprep.subr.bf16.mxu0 %v9193_v10  ;;  %v9226_v9 = vld [vmem:[#allocation10 + $0x370] sm:$0xff]  }
 0x4c0   :  { %11011 = vmatprep.subr.bf16.mxu1 %v9209_v12  ;;  %v9242_v10 = vld [vmem:[#allocation10 + $0x3f0] sm:$0xff]   ;;  %v649_v12 = vrot.slane %v13485_v22, %v13480_v7  ;;  %v1263_v22 = vmax.f32 %v13503_v61, 0.0  ;;  %v12599_v61 = vld [vmem:[#allocation7 + $0x18] sm:$0xff]  }
 0x4c2   :  { %10981 = vmatpush3.bf16.msra.mxu0 %v9185_v13  ;;  %v9218_v13 = vld [vmem:[#allocation10 + $0x330] sm:$0xff]   ;;  %v1174_v24 = vadd.f32 %v13501_v59, %v649_v12  ;;  %v12597_v59 = vld [vmem:[#allocation7 + $0x8] sm:$0xff]  }
 0x4c3   :  { %11013 = vmatpush3.bf16.msra.mxu1 %v9201_v21  ;;  %10983 = vmatprep.subr.bf16.mxu0 %v9194_v23  ;;  %v9234_v21 = vld [vmem:[#allocation10 + $0x3b0] sm:$0xff]   ;;  %v9227_v23 = vld [vmem:[#allocation10 + $0x378] sm:$0xff]  }
 0x4c4   :  { %11015 = vmatprep.subr.bf16.mxu1 %v9210_v14  ;;  %v9243_v14 = vld [vmem:[#allocation10 + $0x3f8] sm:$0xff]  }
 0x4c6   :  { %10985 = vmatpush3.bf16.msra.mxu0 %v9186_v25  ;;  %v9219_v25 = vld [vmem:[#allocation10 + $0x338] sm:$0xff]  }
 0x4c7   :  { %11017 = vmatpush3.bf16.msra.mxu1 %v9202_v27  ;;  %10987 = vmatprep.subr.bf16.mxu0 %v9195_v28  ;;  %v1261_v27 = vmax.f32 %v1174_v24, 0.0  ;;  %v12596_v28 = vld [vmem:[#allocation7] sm:$0xff]  }
 0x4c8   :  { %11019 = vmatprep.subr.bf16.mxu1 %v9211_v18 }
 0x4ca   :  { %10989 = vmatpush3.bf16.msra.mxu0 %v9187_v34 }
 0x4cb   :  { %11021 = vmatpush3.bf16.msra.mxu1 %v9203_v36  ;;  %11023 = vmatprep.subr.bf16.mxu0 %v9220_v37 }
 0x4cc   :  { %11055 = vmatprep.subr.bf16.mxu1 %v9236_v39 }
 0x4cd   :  { %2122 = vmatmul.mubr.f32.vlgmr.msra.gmra.mrb[14].mxu0 %v1257_v41 }
 0x4ce   :  { %2192 = vmatmul.mubr.f32.vlgmr.msra.gmra.mrb[14].mxu1 %v1259_v43  ;;  %11025 = vmatpush3.bf16.msra.mxu0 %v9212_v42 }
 0x4cf   :  { %2261 = vmatprep.mubr.f32.mxu0 %v1262_v29  ;;  %11057 = vmatpush3.bf16.msra.mxu1 %v9228_v44 }
 0x4d0   :  { %2331 = vmatprep.mubr.f32.mxu1 %v1264_v48  ;;  %11027 = vmatprep.subr.bf16.mxu0 %v9221_v47 }
 0x4d1   :  { %11059 = vmatprep.subr.bf16.mxu1 %v9237_v30 }
 0x4d2   :  { %11029 = vmatpush3.bf16.msra.mxu0 %v9213_v49 }
 0x4d3   :  { %11061 = vmatpush3.bf16.msra.mxu1 %v9229_v50  ;;  %11031 = vmatprep.subr.bf16.mxu0 %v9222_v51 }
 0x4d4   :  { %11063 = vmatprep.subr.bf16.mxu1 %v9238_v52 }
 0x4d6   :  { %11033 = vmatpush3.bf16.msra.mxu0 %v9214_v53 }
 0x4d7   :  { %11065 = vmatpush3.bf16.msra.mxu1 %v9230_v54  ;;  %11035 = vmatprep.subr.bf16.mxu0 %v9223_v55 }
 0x4d8   :  { %11067 = vmatprep.subr.bf16.mxu1 %v9239_v56 }
 0x4da   :  { %11037 = vmatpush3.bf16.msra.mxu0 %v9215_v57 }
 0x4db   :  { %11069 = vmatpush3.bf16.msra.mxu1 %v9231_v58  ;;  %11039 = vmatprep.subr.bf16.mxu0 %v9224_v60 }
 0x4dc   :  { %11071 = vmatprep.subr.bf16.mxu1 %v9240_v62 }
 0x4de   :  { %11041 = vmatpush3.bf16.msra.mxu0 %v9216_v63  ;;  %v7956_v63 = vld [vmem:[%s13952_s11 + $0x4] ss:$0 sm:$0xff] }
 0x4df   :  { %11073 = vmatpush3.bf16.msra.mxu1 %v9232_v2  ;;  %11043 = vmatprep.subr.bf16.mxu0 %v9225_v3 }
 0x4e0   :  { %11075 = vmatprep.subr.bf16.mxu1 %v9241_v4 }
 0x4e2   :  { %11045 = vmatpush3.bf16.msra.mxu0 %v9217_v5 }
 0x4e3   :  { %11077 = vmatpush3.bf16.msra.mxu1 %v9233_v6  ;;  %11047 = vmatprep.subr.bf16.mxu0 %v9226_v9 }
 0x4e4   :  { %11079 = vmatprep.subr.bf16.mxu1 %v9242_v10 }
 0x4e6   :  { %11049 = vmatpush3.bf16.msra.mxu0 %v9218_v13 }
 0x4e7   :  { %11081 = vmatpush3.bf16.msra.mxu1 %v9234_v21  ;;  %11051 = vmatprep.subr.bf16.mxu0 %v9227_v23  ;;  %v7960_v21 = vld [vmem:[%s13952_s11 + $0x7] ss:$0 sm:$0xff] }
 0x4e8   :  { %11083 = vmatprep.subr.bf16.mxu1 %v9243_v14  ;;  %2448 = vrot.lane.b32.xlu0 %v7960_v21, %s13139_s18 }
 0x4ea   :  { %11053 = vmatpush3.bf16.msra.mxu0 %v9219_v25  ;;  %v7957_v25 = vld [vmem:[%s13952_s11 + $0x5] ss:$0 sm:$0xff] }
 0x4eb   :  { %11085 = vmatpush3.bf16.msra.mxu1 %v9235_v26  ;;  %11086 = vmatprep.subr.bf16.mxu0 %v13152_v0 }
 0x4ed   :  { %2262 = vmatmul.mubr.f32.vlgmr.msra.gmra.mrb[16].mxu0 %v1261_v27  ;;  %v7958_v27 = vld [vmem:[%s13952_s11 + $0x6] ss:$0 sm:$0xff] }
 0x4ee   :  { %2332 = vmatmul.mubr.f32.vlgmr.msra.gmra.mrb[16].mxu1 %v1263_v22  ;;  %11088 = vmatpush3.bf16.msra.mxu0 %v12596_v28 }
 0x4ef   :  { %11089 = vmatprep.subr.bf16.mxu0 %v13152_v0  ;;  %10605 = vmatprep.mubr.msk.f32.mxu0 %vm13153_vm0, %v13154_v1 }
 0x4f0   :  { %2828 = vmatprep.mubr.f32.mxu1 %v13154_v1 }
 0x4f2   :  { %11091 = vmatpush3.bf16.msra.mxu0 %v12597_v59 }
 0x4f3   :  { %11092 = vmatprep.subr.bf16.mxu0 %v13152_v0 }
 0x4f6   :  { %11094 = vmatpush3.bf16.msra.mxu0 %v12598_v31 }
 0x4f7   :  { %11095 = vmatprep.subr.bf16.mxu0 %v13152_v0 }
 0x4fa   :  { %11097 = vmatpush3.bf16.msra.mxu0 %v12599_v61 }
 0x55a   :  { %v2449_v59 = vpop.permute.xlu0 %2448 }
 0x560   :  { %v9426_v18 = vpop.f32.mrb[10].mxu0  ;;  %v9461_v32 = vpop.f32.mrb[10].mxu1 }
 0x561   :  { %v9427_v33 = vpop.f32.mrb[11].mxu0  ;;  %v9462_v34 = vpop.f32.mrb[11].mxu1 }
 0x562   :  { %v9428_v35 = vadd.f32 %v9427_v33, %v9426_v18  ;;  %v9463_v36 = vadd.f32 %v9462_v34, %v9461_v32 }
 0x564   :  { %v1914_v37 = vadd.f32 %v9463_v36, %v9428_v35 }
 0x580   :  { %v9496_v38 = vpop.f32.mrb[12].mxu0  ;;  %v9531_v39 = vpop.f32.mrb[12].mxu1 }
 0x581   :  { %v9497_v40 = vpop.f32.mrb[13].mxu0  ;;  %v9532_v41 = vpop.f32.mrb[13].mxu1 }
 0x582   :  { %v9498_v42 = vadd.f32 %v9497_v40, %v9496_v38  ;;  %v9533_v43 = vadd.f32 %v9532_v41, %v9531_v39  ;;  %v2483_v40 = vld [vmem:[#allocation8 + $0x200] sm:$0xff] }
 0x583   :  { %v2491_v41 = vld [vmem:[#allocation8 + $0x240] sm:$0xff] }
 0x584   :  { %v1984_v44 = vadd.f32 %v9498_v42, %v1914_v37  ;;  %v2484_v42 = vld [vmem:[#allocation8 + $0x208] sm:$0xff] }
 0x586   :  { %v2054_v29 = vadd.f32 %v9533_v43, %v1984_v44  ;;  %v12362_v43 = vcombine.high %v2483_v40, %v2491_v41  ;;  %v2492_v44 = vld [vmem:[#allocation8 + $0x248] sm:$0xff] }
 0x588   :  { %11099 = vmatprep.subr.bf16.mxu1 %v12362_v43  ;;  %v2517_v43 = vld [vmem:[#allocation8 + $0x310] sm:$0xff] }
 0x5a0   :  { %v9566_v47 = vpop.f32.mrb[14].mxu0 }
 0x5a1   :  { %v9601_v48 = vpop.f32.mrb[14].mxu1  ;;  %v9567_v30 = vpop.f32.mrb[15].mxu0 }
 0x5a2   :  { %v9568_v49 = vadd.f32 %v9567_v30, %v9566_v47  ;;  %v9602_v50 = vpop.f32.mrb[15].mxu1  ;;  %v12370_v47 = vcombine.high %v2484_v42, %v2492_v44  ;;  %v2499_v30 = vld [vmem:[#allocation8 + $0x280] sm:$0xff] }
 0x5a3   :  { %v9603_v51 = vadd.f32 %v9602_v50, %v9601_v48  ;;  %v12371_v48 = vcombine.low %v2484_v42, %v2492_v44  ;;  %v2500_v50 = vld [vmem:[#allocation8 + $0x288] sm:$0xff]  ;;  %v2525_v44 = vld [vmem:[#allocation8 + $0x350] sm:$0xff] }
 0x5a4   :  { %v2124_v52 = vadd.f32 %v9568_v49, %v2054_v29  ;;  %v12363_v29 = vcombine.low %v2483_v40, %v2491_v41  ;;  %11115 = vmatprep.subr.bf16.mxu0 %v12370_v47  ;;  %v2507_v49 = vld [vmem:[#allocation8 + $0x2c0] sm:$0xff]  ;;  %v2526_v47 = vld [vmem:[#allocation8 + $0x358] sm:$0xff] }
 0x5a6   :  { %v2194_v53 = vadd.f32 %v9603_v51, %v2124_v52  ;;  %11101 = vmatpush1.bf16.msra.mxu1 %v12363_v29  ;;  %v12364_v51 = vcombine.high %v2499_v30, %v2507_v49  ;;  %v2508_v52 = vld [vmem:[#allocation8 + $0x2c8] sm:$0xff]  ;;  %v2518_v29 = vld [vmem:[#allocation8 + $0x318] sm:$0xff] }
 0x5a8   :  { %11103 = vmatprep.subr.bf16.mxu1 %v12364_v51  ;;  %v2541_v51 = vld [vmem:[#allocation8 + $0x3d0] sm:$0xff] }
 0x5c0   :  { %v9636_v54 = vpop.f32.mrb[16].mxu0 }
 0x5c1   :  { %v9671_v55 = vpop.f32.mrb[16].mxu1  ;;  %v9637_v56 = vpop.f32.mrb[17].mxu0 }
 0x5c2   :  { %v9638_v57 = vadd.f32 %v9637_v56, %v9636_v54  ;;  %v9672_v58 = vpop.f32.mrb[17].mxu1  ;;  %v12372_v54 = vcombine.high %v2500_v50, %v2508_v52  ;;  %v2515_v56 = vld [vmem:[#allocation8 + $0x300] sm:$0xff] }
 0x5c3   :  { %v9673_v60 = vadd.f32 %v9672_v58, %v9671_v55  ;;  %v12373_v55 = vcombine.low %v2500_v50, %v2508_v52  ;;  %v2516_v58 = vld [vmem:[#allocation8 + $0x308] sm:$0xff]  ;;  %v2533_v50 = vld [vmem:[#allocation8 + $0x390] sm:$0xff]  ;;  %v2534_v52 = vld [vmem:[#allocation8 + $0x398] sm:$0xff] }
 0x5c4   :  { %v2264_v62 = vadd.f32 %v9638_v57, %v2194_v53  ;;  %v12365_v53 = vcombine.low %v2499_v30, %v2507_v49  ;;  %v2523_v57 = vld [vmem:[#allocation8 + $0x340] sm:$0xff]  ;;  %v12382_v30 = vcombine.high %v2517_v43, %v2525_v44  ;;  %v12390_v49 = vcombine.high %v2518_v29, %v2526_v47 }
 0x5c6   :  { %v2334_v2 = vadd.f32 %v9673_v60, %v2264_v62  ;;  %11105 = vmatpush1.bf16.msra.mxu1 %v12365_v53  ;;  %v12366_v60 = vcombine.high %v2515_v56, %v2523_v57  ;;  %v2524_v62 = vld [vmem:[#allocation8 + $0x348] sm:$0xff]  ;;  %v2542_v53 = vld [vmem:[#allocation8 + $0x3d8] sm:$0xff] }
 0x5c8   :  { %v2342_v3 = vadd.f32 %v7956_v63, %v2334_v2  ;;  %v12367_v63 = vcombine.low %v2515_v56, %v2523_v57  ;;  %v12374_v2 = vcombine.high %v2516_v58, %v2524_v62  ;;  %11107 = vmatprep.subr.bf16.mxu1 %v12366_v60  ;;  %v12384_v56 = vcombine.high %v2533_v50, %v2541_v51  ;;  %v2495_v60 = vld [vmem:[#allocation8 + $0x260] sm:$0xff] }
 0x5c9   :  { %v12392_v57 = vcombine.high %v2534_v52, %v2542_v53 }
 0x5ca   :  { %v2343_v4 = vadd.f32 %v2342_v3, %v13421_v15  ;;  %v12375_v3 = vcombine.low %v2516_v58, %v2524_v62  ;;  %11109 = vmatpush1.bf16.msra.mxu1 %v12367_v63  ;;  %v2487_v58 = vld [vmem:[#allocation8 + $0x220] sm:$0xff]  ;;  %v2488_v62 = vld [vmem:[#allocation8 + $0x228] sm:$0xff] }
 0x5cb   :  { %v2496_v63 = vld [vmem:[#allocation8 + $0x268] sm:$0xff] }
 0x5cc   :  { %v2346_v5 = vsel %vm294_vm2, %v2343_v4, 0.0 }
 0x5cd   :  { %2347 = vadd.xlane.f32.xlu1 %v2346_v5  ;;  %v2539_v5 = vld [vmem:[#allocation8 + $0x3c0] sm:$0xff] }
 0x65a   :  { %v2348_v6 = vpop.xlane.xlu1 %2347 }
 0x65b   :  { %v2349_v9 = vmul.f32 0.015625, %v2348_v6  ;;  %v2532_v6 = vld [vmem:[#allocation8 + $0x388] sm:$0xff] }
 0x65d   :  { %v2350_v10 = vsub.f32 %v2343_v4, %v2349_v9  ;;  %v2531_v4 = vld [vmem:[#allocation8 + $0x380] sm:$0xff] }
 0x65e   :  { %v12368_v9 = vcombine.high %v2531_v4, %v2539_v5 }
 0x65f   :  { %v2351_v12 = vmul.f32 %v2350_v10, %v2350_v10 }
 0x660   :  { %11111 = vmatprep.subr.bf16.mxu1 %v12368_v9  ;;  %v2511_v9 = vld [vmem:[#allocation8 + $0x2e0] sm:$0xff] }
 0x661   :  { %v2352_v13 = vsel %vm294_vm2, %v2351_v12, 0.0  ;;  %v12369_v12 = vcombine.low %v2531_v4, %v2539_v5  ;;  %v12394_v4 = vcombine.high %v2487_v58, %v2495_v60  ;;  %v12402_v5 = vcombine.high %v2488_v62, %v2496_v63 }
 0x662   :  { %2353 = vadd.xlane.f32.xlu1 %v2352_v13 }
 0x663   :  { %11113 = vmatpush1.bf16.msra.mxu1 %v12369_v12  ;;  %v2512_v12 = vld [vmem:[#allocation8 + $0x2e8] sm:$0xff] }
 0x6ef   :  { %v2354_v23 = vpop.xlane.xlu1 %2353 }
 0x6f0   :  { %v2355_v14 = vmul.f32 0.015625, %v2354_v23  ;;  %v2485_v23 = vld [vmem:[#allocation8 + $0x210] sm:$0xff] }
 0x6f2   :  { %v2356_v24 = vadd.f32 1e-05, %v2355_v14  ;;  %v2493_v14 = vld [vmem:[#allocation8 + $0x250] sm:$0xff] }
 0x6f4   :  { %12574 = vrsqrt.f32 %v2356_v24  ;;  %v2486_v24 = vld [vmem:[#allocation8 + $0x218] sm:$0xff] }
 0x6fe   :  { %v12575_v15 = vpop.eup %12574 }
 0x6ff   :  { %v2358_v26 = vmul.f32 %v12575_v15, %v2350_v10  ;;  %v2540_v10 = vld [vmem:[#allocation8 + $0x3c8] sm:$0xff]  ;;  %v12378_v15 = vcombine.high %v2485_v23, %v2493_v14 }
 0x700   :  { %v12376_v13 = vcombine.high %v2532_v6, %v2540_v10  ;;  %v12377_v21 = vcombine.low %v2532_v6, %v2540_v10  ;;  %v2503_v6 = vld [vmem:[#allocation8 + $0x2a0] sm:$0xff]  ;;  %v2504_v10 = vld [vmem:[#allocation8 + $0x2a8] sm:$0xff] }
 0x701   :  { %v2363_v22 = vmul.f32 %v7957_v25, %v2358_v26  ;;  %v12379_v25 = vcombine.low %v2485_v23, %v2493_v14  ;;  %v2494_v26 = vld [vmem:[#allocation8 + $0x258] sm:$0xff]  ;;  %11131 = vmatprep.subr.bf16.mxu1 %v12378_v15  ;;  %v12396_v23 = vcombine.high %v2503_v6, %v2511_v9  ;;  %v12404_v14 = vcombine.high %v2504_v10, %v2512_v12  ;;  %v2527_v15 = vld [vmem:[#allocation8 + $0x360] sm:$0xff] }
 0x703   :  { %v2368_v28 = vadd.f32 %v7958_v27, %v2363_v22  ;;  %v12386_v27 = vcombine.high %v2486_v24, %v2494_v26  ;;  %v12387_v22 = vcombine.low %v2486_v24, %v2494_v26  ;;  %v2519_v24 = vld [vmem:[#allocation8 + $0x320] sm:$0xff]  ;;  %v2528_v26 = vld [vmem:[#allocation8 + $0x368] sm:$0xff] }
 0x705   :  { %10606 = vmatmul.mubr.msk.f32.vlgmr.msra.gmra.mrb[18].mxu0 %vm294_vm2, %v2368_v28 }
 0x706   :  { %2899 = vmatprep.mubr.f32.mxu0 %v13154_v1  ;;  %11117 = vmatpush1.bf16.msra.mxu0 %v12371_v48 }
 0x707   :  { %11119 = vmatprep.subr.bf16.mxu0 %v12372_v54  ;;  %v12383_v54 = vcombine.low %v2517_v43, %v2525_v44 }
 0x70a   :  { %11121 = vmatpush1.bf16.msra.mxu0 %v12373_v55  ;;  %v12391_v55 = vcombine.low %v2518_v29, %v2526_v47 }
 0x70b   :  { %11123 = vmatprep.subr.bf16.mxu0 %v12374_v2  ;;  %v12385_v2 = vcombine.low %v2533_v50, %v2541_v51 }
 0x70e   :  { %11125 = vmatpush1.bf16.msra.mxu0 %v12375_v3  ;;  %v12393_v3 = vcombine.low %v2534_v52, %v2542_v53 }
 0x70f   :  { %11127 = vmatprep.subr.bf16.mxu0 %v12376_v13  ;;  %v12395_v13 = vcombine.low %v2487_v58, %v2495_v60 }
 0x712   :  { %11129 = vmatpush1.bf16.msra.mxu0 %v12377_v21  ;;  %v12403_v21 = vcombine.low %v2488_v62, %v2496_v63 }
 0x713   :  { %11147 = vmatprep.subr.bf16.mxu0 %v12386_v27  ;;  %v12397_v27 = vcombine.low %v2503_v6, %v2511_v9 }
 0x7d8   :  { %v2438_v31 = vpop.f32.mrb[18].mxu0 }
 0x7d9   :  { %v2451_v61 = vadd.f32 %v2449_v59, %v2438_v31  ;;  %v10607_v18 = vpop.f32.mrb[19].mxu0 }
 0x7da   :  { %v7961_v18 = vld [vmem:[%s13952_s11 + $0x8] ss:$0 sm:$0xff] }
 0x7db   :  { %2453 = vrot.lane.b32.xlu1 %v2451_v61, %s13139_s18 }
 0x84d   :  { %v2454_v32 = vpop.permute.xlu1 %2453 }
 0x84e   :  { %v2456_v33 = vadd.f32 %v2454_v32, %v2368_v28  ;;  %v7962_v32 = vld [vmem:[%s13952_s11 + $0x9] ss:$0 sm:$0xff] }
 0x850   :  { %v2459_v34 = vsel %vm294_vm2, %v2456_v33, 0.0 }
 0x851   :  { %2460 = vadd.xlane.f32.xlu1 %v2459_v34  ;;  %v2501_v34 = vld [vmem:[#allocation8 + $0x290] sm:$0xff] }
 0x8de   :  { %v2461_v35 = vpop.xlane.xlu1 %2460 }
 0x8df   :  { %v2462_v36 = vmul.f32 0.015625, %v2461_v35  ;;  %v2509_v35 = vld [vmem:[#allocation8 + $0x2d0] sm:$0xff] }
 0x8e0   :  { %v12380_v41 = vcombine.high %v2501_v34, %v2509_v35 }
 0x8e1   :  { %v13546_v37 = vsub.f32 %v2456_v33, %v2462_v36  ;;  %v2502_v36 = vld [vmem:[#allocation8 + $0x298] sm:$0xff] }
 0x8e3   :  { %v2464_v38 = vmul.f32 %v13546_v37, %v13546_v37 }
 0x8e5   :  { %v2465_v39 = vsel %vm294_vm2, %v2464_v38, 0.0  ;;  %v2510_v38 = vld [vmem:[#allocation8 + $0x2d8] sm:$0xff] }
 0x8e6   :  { %2466 = vadd.xlane.f32.xlu0 %v2465_v39  ;;  %v12388_v42 = vcombine.high %v2502_v36, %v2510_v38  ;;  %v12389_v48 = vcombine.low %v2502_v36, %v2510_v38  ;;  %v2489_v38 = vld [vmem:[#allocation8 + $0x230] sm:$0xff] }
 0x973   :  { %v2467_v28 = vpop.xlane.xlu0 %2466 }
 0x974   :  { %v2468_v59 = vmul.f32 0.015625, %v2467_v28  ;;  %v12398_v28 = vcombine.high %v2519_v24, %v2527_v15 }
 0x976   :  { %v2469_v31 = vadd.f32 1e-05, %v2468_v59 }
 0x978   :  { %12576 = vrsqrt.f32 %v2469_v31  ;;  %v2535_v31 = vld [vmem:[#allocation8 + $0x3a0] sm:$0xff] }
 0x982   :  { %v12577_v61 = vpop.eup %12576 }
 0x983   :  { %v2471_v33 = vmul.f32 %v12577_v61, %v13546_v37  ;;  %v12381_v37 = vcombine.low %v2501_v34, %v2509_v35  ;;  %v2543_v61 = vld [vmem:[#allocation8 + $0x3e0] sm:$0xff] }
 0x984   :  { %v12400_v35 = vcombine.high %v2535_v31, %v2543_v61  ;;  %v12401_v43 = vcombine.low %v2535_v31, %v2543_v61  ;;  %v12610_v31 = vld [vmem:[#allocation10 + $0x10] sm:$0xff]  }
 0x985   :  { %v2476_v39 = vmul.f32 %v7961_v18, %v2471_v33  ;;  %v2536_v18 = vld [vmem:[#allocation8 + $0x3a8] sm:$0xff]  ;;  %v12399_v33 = vcombine.low %v2519_v24, %v2527_v15  ;;  %v12602_v24 = vld [vmem:[#allocation10] sm:$0xff]   ;;  %v12611_v61 = vld [vmem:[#allocation10 + $0x90] sm:$0xff]  }
 0x986   :  { %v12603_v15 = vld [vmem:[#allocation10 + $0x80] sm:$0xff]  }
 0x987   :  { %v13558_v40 = vadd.f32 %v7962_v32, %v2476_v39  ;;  %v2544_v32 = vld [vmem:[#allocation8 + $0x3e8] sm:$0xff]  ;;  %v2497_v39 = vld [vmem:[#allocation8 + $0x270] sm:$0xff] }
 0x988   :  { %v12408_v36 = vcombine.high %v2536_v18, %v2544_v32  ;;  %v12409_v44 = vcombine.low %v2536_v18, %v2544_v32  ;;  %v12410_v29 = vcombine.high %v2489_v38, %v2497_v39  ;;  %v12411_v50 = vcombine.low %v2489_v38, %v2497_v39  ;;  %v12612_v18 = vld [vmem:[#allocation10 + $0x58] sm:$0xff]   ;;  %v12618_v38 = vld [vmem:[#allocation10 + $0x20] sm:$0xff]  }
 0x989   :  { %7963 = vmatmul.mubr.msk.f32.vlgmr.msra.gmra.mrb[18].mxu1 %vm294_vm2, %v13558_v40  ;;  %7964 = vmatmul.mubr.msk.f32.vlgmr.msra.gmra.mrb[20].mxu0 %vm294_vm2, %v13558_v40  ;;  %v12613_v32 = vld [vmem:[#allocation10 + $0xd8] sm:$0xff]   ;;  %v12619_v39 = vld [vmem:[#allocation10 + $0xa0] sm:$0xff]  }
 0x98a   :  { %11133 = vmatpush1.bf16.msra.mxu1 %v12379_v25  ;;  %11149 = vmatpush1.bf16.msra.mxu0 %v12387_v22  ;;  %v2520_v25 = vld [vmem:[#allocation8 + $0x328] sm:$0xff]  ;;  %v12405_v22 = vcombine.low %v2504_v10, %v2512_v12 }
 0x98b   :  { %11135 = vmatprep.subr.bf16.mxu1 %v12380_v41  ;;  %11151 = vmatprep.subr.bf16.mxu0 %v12388_v42  ;;  %v12406_v59 = vcombine.high %v2520_v25, %v2528_v26  ;;  %v12407_v34 = vcombine.low %v2520_v25, %v2528_v26  ;;  %v2490_v41 = vld [vmem:[#allocation8 + $0x238] sm:$0xff]  ;;  %v12604_v25 = vld [vmem:[#allocation10 + $0x48] sm:$0xff]  }
 0x98c   :  { %2970 = vmatprep.mubr.f32.mxu1 %v13154_v1  ;;  %3041 = vmatprep.mubr.f32.mxu0 %v13154_v1  ;;  %v2498_v42 = vld [vmem:[#allocation8 + $0x278] sm:$0xff]  ;;  %v12605_v26 = vld [vmem:[#allocation10 + $0xc8] sm:$0xff]  }
 0x98d   :  { %v12418_v47 = vcombine.high %v2490_v41, %v2498_v42  ;;  %v12419_v51 = vcombine.low %v2490_v41, %v2498_v42  ;;  %v12620_v41 = vld [vmem:[#allocation10 + $0x68] sm:$0xff]  }
 0x98e   :  { %11137 = vmatpush1.bf16.msra.mxu1 %v12381_v37  ;;  %11153 = vmatpush1.bf16.msra.mxu0 %v12389_v48  ;;  %v2505_v37 = vld [vmem:[#allocation8 + $0x2b0] sm:$0xff]  ;;  %v12621_v42 = vld [vmem:[#allocation10 + $0xe8] sm:$0xff]  }
 0x98f   :  { %11139 = vmatprep.subr.bf16.mxu1 %v12382_v30  ;;  %11155 = vmatprep.subr.bf16.mxu0 %v12390_v49  ;;  %v2513_v48 = vld [vmem:[#allocation8 + $0x2f0] sm:$0xff]  ;;  %v2506_v30 = vld [vmem:[#allocation8 + $0x2b8] sm:$0xff] }
 0x990   :  { %v2514_v49 = vld [vmem:[#allocation8 + $0x2f8] sm:$0xff]  ;;  %v12412_v52 = vcombine.high %v2505_v37, %v2513_v48  ;;  %v12413_v58 = vcombine.low %v2505_v37, %v2513_v48  ;;  %v12626_v37 = vld [vmem:[#allocation10 + $0x30] sm:$0xff]  }
 0x991   :  { %v12420_v53 = vcombine.high %v2506_v30, %v2514_v49  ;;  %v12421_v60 = vcombine.low %v2506_v30, %v2514_v49  ;;  %v12627_v48 = vld [vmem:[#allocation10 + $0xb0] sm:$0xff]   ;;  %v12628_v30 = vld [vmem:[#allocation10 + $0x78] sm:$0xff]  }
 0x992   :  { %11141 = vmatpush1.bf16.msra.mxu1 %v12383_v54  ;;  %11157 = vmatpush1.bf16.msra.mxu0 %v12391_v55  ;;  %v2521_v54 = vld [vmem:[#allocation8 + $0x330] sm:$0xff]  ;;  %v12629_v49 = vld [vmem:[#allocation10 + $0xf8] sm:$0xff]  }
 0x993   :  { %11143 = vmatprep.subr.bf16.mxu1 %v12384_v56  ;;  %11159 = vmatprep.subr.bf16.mxu0 %v12392_v57  ;;  %v2529_v55 = vld [vmem:[#allocation8 + $0x370] sm:$0xff]  ;;  %v2522_v56 = vld [vmem:[#allocation8 + $0x338] sm:$0xff] }
 0x994   :  { %v2530_v57 = vld [vmem:[#allocation8 + $0x378] sm:$0xff]  ;;  %v12414_v62 = vcombine.high %v2521_v54, %v2529_v55  ;;  %v12415_v6 = vcombine.low %v2521_v54, %v2529_v55  ;;  %v7971_v54 = vld [vmem:[%s13952_s11 + $0xa] ss:$0 sm:$0xff] }
 0x995   :  { %v12422_v63 = vcombine.high %v2522_v56, %v2530_v57  ;;  %v12423_v9 = vcombine.low %v2522_v56, %v2530_v57  ;;  %3914 = vrot.lane.b32.xlu0 %v7971_v54, %s13139_s18  ;;  %v13586_v55 = vld [vmem:[#allocation19 + $0x1] ss:$4 sm:$0xff] }
 0x996   :  { %11145 = vmatpush1.bf16.msra.mxu1 %v12385_v2  ;;  %11161 = vmatpush1.bf16.msra.mxu0 %v12393_v3  ;;  %v2537_v2 = vld [vmem:[#allocation8 + $0x3b0] sm:$0xff]  ;;  %v2684_v56 = vrot.slane %v13586_v55, %v13448_v16  ;;  %v2692_v57 = vrot.slane %v13586_v55, %v13451_v17  ;;  %v2708_v54 = vrot.slane %v13586_v55, %v13483_v8 }
 0x997   :  { %11163 = vmatprep.subr.bf16.mxu1 %v12394_v4  ;;  %11179 = vmatprep.subr.bf16.mxu0 %v12402_v5  ;;  %v2545_v3 = vld [vmem:[#allocation8 + $0x3f0] sm:$0xff]  ;;  %v2538_v4 = vld [vmem:[#allocation8 + $0x3b8] sm:$0xff] }
 0x998   :  { %v2546_v5 = vld [vmem:[#allocation8 + $0x3f8] sm:$0xff]  ;;  %v12416_v10 = vcombine.high %v2537_v2, %v2545_v3 }
 0x999   :  { %7965 = vmatmul.mubr.msk.f32.vlgmr.msra.gmra.mrb[20].mxu1 %vm294_vm2, %v13558_v40  ;;  %7966 = vmatmul.mubr.msk.f32.vlgmr.msra.gmra.mrb[22].mxu0 %vm294_vm2, %v13558_v40  ;;  %v12424_v12 = vcombine.high %v2538_v4, %v2546_v5 }
 0x99a   :  { %11165 = vmatpush1.bf16.msra.mxu1 %v12395_v13  ;;  %11181 = vmatpush1.bf16.msra.mxu0 %v12403_v21  ;;  %v12417_v13 = vcombine.low %v2537_v2, %v2545_v3  ;;  %v12425_v21 = vcombine.low %v2538_v4, %v2546_v5 }
 0x99b   :  { %11167 = vmatprep.subr.bf16.mxu1 %v12396_v23  ;;  %11183 = vmatprep.subr.bf16.mxu0 %v12404_v14  ;;  %v12600_v23 = vld [vmem:[#allocation10 + $0x40] sm:$0xff]  }
 0x99c   :  { %3112 = vmatprep.mubr.f32.mxu1 %v13154_v1  ;;  %3183 = vmatprep.mubr.f32.mxu0 %v13154_v1  ;;  %v12601_v14 = vld [vmem:[#allocation10 + $0xc0] sm:$0xff]  }
 0x99e   :  { %11169 = vmatpush1.bf16.msra.mxu1 %v12397_v27  ;;  %11185 = vmatpush1.bf16.msra.mxu0 %v12405_v22  ;;  %v12606_v27 = vld [vmem:[#allocation10 + $0x8] sm:$0xff]  }
 0x99f   :  { %11171 = vmatprep.subr.bf16.mxu1 %v12398_v28  ;;  %11187 = vmatprep.subr.bf16.mxu0 %v12406_v59  ;;  %v12607_v22 = vld [vmem:[#allocation10 + $0x88] sm:$0xff]   ;;  %v12608_v28 = vld [vmem:[#allocation10 + $0x50] sm:$0xff]  }
 0x9a0   :  { %v12609_v59 = vld [vmem:[#allocation10 + $0xd0] sm:$0xff]  }
 0x9a2   :  { %11173 = vmatpush1.bf16.msra.mxu1 %v12399_v33  ;;  %11189 = vmatpush1.bf16.msra.mxu0 %v12407_v34  ;;  %v12614_v33 = vld [vmem:[#allocation10 + $0x18] sm:$0xff]  }
 0x9a3   :  { %11175 = vmatprep.subr.bf16.mxu1 %v12400_v35  ;;  %11191 = vmatprep.subr.bf16.mxu0 %v12408_v36  ;;  %v12615_v34 = vld [vmem:[#allocation10 + $0x98] sm:$0xff]   ;;  %v12616_v35 = vld [vmem:[#allocation10 + $0x60] sm:$0xff]  }
 0x9a4   :  { %v12617_v36 = vld [vmem:[#allocation10 + $0xe0] sm:$0xff]  }
 0x9a6   :  { %11177 = vmatpush1.bf16.msra.mxu1 %v12401_v43  ;;  %11193 = vmatpush1.bf16.msra.mxu0 %v12409_v44  ;;  %v12622_v43 = vld [vmem:[#allocation10 + $0x28] sm:$0xff]  }
 0x9a7   :  { %11195 = vmatprep.subr.bf16.mxu1 %v12410_v29  ;;  %11211 = vmatprep.subr.bf16.mxu0 %v12418_v47  ;;  %v12623_v44 = vld [vmem:[#allocation10 + $0xa8] sm:$0xff]   ;;  %v12624_v29 = vld [vmem:[#allocation10 + $0x70] sm:$0xff]  }
 0x9a8   :  { %v12625_v47 = vld [vmem:[#allocation10 + $0xf0] sm:$0xff]  }
 0x9a9   :  { %7967 = vmatmul.mubr.msk.f32.vlgmr.msra.gmra.mrb[22].mxu1 %vm294_vm2, %v13558_v40  ;;  %7968 = vmatmul.mubr.msk.f32.vlgmr.msra.gmra.mrb[24].mxu0 %vm294_vm2, %v13558_v40 }
 0x9aa   :  { %11197 = vmatpush1.bf16.msra.mxu1 %v12411_v50  ;;  %11213 = vmatpush1.bf16.msra.mxu0 %v12419_v51  ;;  %v12630_v50 = vld [vmem:[#allocation10 + $0x38] sm:$0xff]  }
 0x9ab   :  { %11199 = vmatprep.subr.bf16.mxu1 %v12412_v52  ;;  %11215 = vmatprep.subr.bf16.mxu0 %v12420_v53  ;;  %v12631_v51 = vld [vmem:[#allocation10 + $0xb8] sm:$0xff]   ;;  %v12632_v52 = vld [vmem:[#allocation10 + $0x140] sm:$0xff]  }
 0x9ac   :  { %3254 = vmatprep.mubr.f32.mxu1 %v13154_v1  ;;  %3325 = vmatprep.mubr.f32.mxu0 %v13154_v1  ;;  %v12633_v53 = vld [vmem:[#allocation10 + $0x1c0] sm:$0xff]  }
 0x9ae   :  { %11201 = vmatpush1.bf16.msra.mxu1 %v12413_v58  ;;  %11217 = vmatpush1.bf16.msra.mxu0 %v12421_v60  ;;  %v2688_v58 = vrot.slane %v13586_v55, %v13456_v19  ;;  %v2696_v60 = vrot.slane %v13586_v55, %v13459_v20 }
 0x9af   :  { %11203 = vmatprep.subr.bf16.mxu1 %v12414_v62  ;;  %11219 = vmatprep.subr.bf16.mxu0 %v12422_v63 }
 0x9b2   :  { %11205 = vmatpush1.bf16.msra.mxu1 %v12415_v6  ;;  %11221 = vmatpush1.bf16.msra.mxu0 %v12423_v9 }
 0x9b3   :  { %11207 = vmatprep.subr.bf16.mxu1 %v12416_v10  ;;  %11223 = vmatprep.subr.bf16.mxu0 %v12424_v12 }
 0x9b6   :  { %11209 = vmatpush1.bf16.msra.mxu1 %v12417_v13  ;;  %11225 = vmatpush1.bf16.msra.mxu0 %v12425_v21 }
 0x9b7   :  { %11227 = vmatprep.subr.bf16.mxu1 %v12600_v23  ;;  %11259 = vmatprep.subr.bf16.mxu0 %v12601_v14  ;;  %v12634_v23 = vld [vmem:[#allocation10 + $0x100] sm:$0xff]  }
 0x9b8   :  { %v12635_v14 = vld [vmem:[#allocation10 + $0x180] sm:$0xff]  }
 0x9b9   :  { %7969 = vmatmul.mubr.msk.f32.vlgmr.msra.gmra.mrb[24].mxu1 %vm294_vm2, %v13558_v40  ;;  %7970 = vmatmul.mubr.msk.f32.vlgmr.msra.gmra.mrb[26].mxu0 %vm294_vm2, %v13558_v40 }
 0x9ba   :  { %11229 = vmatpush3.bf16.msra.mxu1 %v12602_v24  ;;  %11261 = vmatpush3.bf16.msra.mxu0 %v12603_v15  ;;  %v12636_v24 = vld [vmem:[#allocation10 + $0x148] sm:$0xff]  }
 0x9bb   :  { %11231 = vmatprep.subr.bf16.mxu1 %v12604_v25  ;;  %11263 = vmatprep.subr.bf16.mxu0 %v12605_v26  ;;  %v12637_v15 = vld [vmem:[#allocation10 + $0x1c8] sm:$0xff]  }
 0x9bc   :  { %v12638_v25 = vld [vmem:[#allocation10 + $0x108] sm:$0xff]  }
 0x9bd   :  { %v12639_v26 = vld [vmem:[#allocation10 + $0x188] sm:$0xff]  }
 0x9be   :  { %11233 = vmatpush3.bf16.msra.mxu1 %v12606_v27  ;;  %11265 = vmatpush3.bf16.msra.mxu0 %v12607_v22  ;;  %v12640_v27 = vld [vmem:[#allocation10 + $0x150] sm:$0xff]  }
 0x9bf   :  { %11235 = vmatprep.subr.bf16.mxu1 %v12608_v28  ;;  %11267 = vmatprep.subr.bf16.mxu0 %v12609_v59  ;;  %v12641_v22 = vld [vmem:[#allocation10 + $0x1d0] sm:$0xff]   ;;  %v2704_v28 = vrot.slane %v13586_v55, %v13470_v45  ;;  %v2712_v59 = vrot.slane %v13586_v55, %v13473_v46 }
 0x9c2   :  { %11237 = vmatpush3.bf16.msra.mxu1 %v12610_v31  ;;  %11269 = vmatpush3.bf16.msra.mxu0 %v12611_v61 }
 0x9c3   :  { %11239 = vmatprep.subr.bf16.mxu1 %v12612_v18  ;;  %11271 = vmatprep.subr.bf16.mxu0 %v12613_v32  ;;  %v12642_v18 = vld [vmem:[#allocation10 + $0x110] sm:$0xff]  }
 0x9c4   :  { %v12643_v32 = vld [vmem:[#allocation10 + $0x190] sm:$0xff]  }
 0x9c6   :  { %11241 = vmatpush3.bf16.msra.mxu1 %v12614_v33  ;;  %11273 = vmatpush3.bf16.msra.mxu0 %v12615_v34 }
 0x9c7   :  { %11243 = vmatprep.subr.bf16.mxu1 %v12616_v35  ;;  %11275 = vmatprep.subr.bf16.mxu0 %v12617_v36  ;;  %v12644_v35 = vld [vmem:[#allocation10 + $0x158] sm:$0xff]  }
 0x9c8   :  { %v12645_v36 = vld [vmem:[#allocation10 + $0x1d8] sm:$0xff]  }
 0x9ca   :  { %11245 = vmatpush3.bf16.msra.mxu1 %v12618_v38  ;;  %11277 = vmatpush3.bf16.msra.mxu0 %v12619_v39 }
 0x9cb   :  { %11247 = vmatprep.subr.bf16.mxu1 %v12620_v41  ;;  %11279 = vmatprep.subr.bf16.mxu0 %v12621_v42 }
 0x9ce   :  { %11249 = vmatpush3.bf16.msra.mxu1 %v12622_v43  ;;  %11281 = vmatpush3.bf16.msra.mxu0 %v12623_v44  ;;  %v12646_v43 = vld [vmem:[#allocation10 + $0x118] sm:$0xff]  }
 0x9cf   :  { %11251 = vmatprep.subr.bf16.mxu1 %v12624_v29  ;;  %11283 = vmatprep.subr.bf16.mxu0 %v12625_v47  ;;  %v12647_v44 = vld [vmem:[#allocation10 + $0x198] sm:$0xff]   ;;  %v12648_v29 = vld [vmem:[#allocation10 + $0x160] sm:$0xff]  }
 0x9d0   :  { %v12649_v47 = vld [vmem:[#allocation10 + $0x1e0] sm:$0xff]  }
 0x9d2   :  { %11253 = vmatpush3.bf16.msra.mxu1 %v12626_v37  ;;  %11285 = vmatpush3.bf16.msra.mxu0 %v12627_v48  ;;  %v12650_v37 = vld [vmem:[#allocation10 + $0x120] sm:$0xff]  }
 0x9d3   :  { %11255 = vmatprep.subr.bf16.mxu1 %v12628_v30  ;;  %11287 = vmatprep.subr.bf16.mxu0 %v12629_v49  ;;  %v12651_v48 = vld [vmem:[#allocation10 + $0x1a0] sm:$0xff]   ;;  %v12652_v30 = vld [vmem:[#allocation10 + $0x168] sm:$0xff]  }
 0x9d4   :  { %v12653_v49 = vld [vmem:[#allocation10 + $0x1e8] sm:$0xff]  }
 0x9d6   :  { %11257 = vmatpush3.bf16.msra.mxu1 %v12630_v50  ;;  %11289 = vmatpush3.bf16.msra.mxu0 %v12631_v51  ;;  %v13600_v50 = vld [vmem:[#allocation19 + $0x21] ss:$4 sm:$0xff] }
 0x9d7   :  { %11291 = vmatprep.subr.bf16.mxu1 %v12632_v52  ;;  %11323 = vmatprep.subr.bf16.mxu0 %v12633_v53  ;;  %v12654_v51 = vld [vmem:[#allocation10 + $0x128] sm:$0xff]   ;;  %v2700_v53 = vrot.slane %v13586_v55, %v13480_v7 }
 0x9d8   :  { %v12655_v52 = vld [vmem:[#allocation10 + $0x1a8] sm:$0xff]  }
 0xa5c   :  { %v2830_v62 = vpop.f32.mrb[18].mxu1  ;;  %v2901_v63 = vpop.f32.mrb[20].mxu0 }
 0xa5d   :  { %v2831_v2 = vadd.f32 %v2830_v62, %v2684_v56  ;;  %v2902_v3 = vadd.f32 %v2901_v63, %v2692_v57  ;;  %v2832_v4 = vpop.f32.mrb[19].mxu1  ;;  %v2903_v5 = vpop.f32.mrb[21].mxu0  ;;  %v12656_v56 = vld [vmem:[#allocation10 + $0x170] sm:$0xff]  }
 0xa5e   :  { %v2833_v6 = vadd.f32 %v2832_v4, %v2688_v58  ;;  %v2904_v9 = vadd.f32 %v2903_v5, %v2696_v60  ;;  %v12657_v57 = vld [vmem:[#allocation10 + $0x1f0] sm:$0xff]   ;;  %v2720_v58 = vrot.slane %v13600_v50, %v13456_v19  ;;  %v2728_v60 = vrot.slane %v13600_v50, %v13459_v20 }
 0xa5f   :  { %v3332_v13 = vmax.f32 %v2831_v2, 0.0  ;;  %v3334_v21 = vmax.f32 %v2902_v3, 0.0  ;;  %v12658_v2 = vld [vmem:[#allocation10 + $0x130] sm:$0xff]  }
 0xa60   :  { %v3333_v10 = vmax.f32 %v2833_v6, 0.0  ;;  %v3335_v12 = vmax.f32 %v2904_v9, 0.0  ;;  %v12659_v3 = vld [vmem:[#allocation10 + $0x1b0] sm:$0xff]   ;;  %v12660_v9 = vld [vmem:[#allocation10 + $0x178] sm:$0xff]  }
 0xa62   :  { %3412 = vmatprep.mubr.f32.mxu1 %v3333_v10  ;;  %3482 = vmatprep.mubr.f32.mxu0 %v3335_v12  ;;  %v12661_v10 = vld [vmem:[#allocation10 + $0x1f8] sm:$0xff]  }
 0xa63   :  { %3413 = vmatmul.mubr.f32.vlgmr.msra.gmra.mrb[26].mxu1 %v3332_v13  ;;  %3483 = vmatmul.mubr.f32.vlgmr.msra.gmra.mrb[28].mxu0 %v3334_v21  ;;  %v12662_v21 = vld [vmem:[#allocation10 + $0x138] sm:$0xff]  }
 0xa64   :  { %11293 = vmatpush3.bf16.msra.mxu1 %v12634_v23  ;;  %11325 = vmatpush3.bf16.msra.mxu0 %v12635_v14  ;;  %v12663_v23 = vld [vmem:[#allocation10 + $0x1b8] sm:$0xff]  }
 0xa65   :  { %11295 = vmatprep.subr.bf16.mxu1 %v12636_v24  ;;  %11327 = vmatprep.subr.bf16.mxu0 %v12637_v15  ;;  %v12664_v15 = vld [vmem:[#allocation10 + $0x240] sm:$0xff]  }
 0xa68   :  { %11297 = vmatpush3.bf16.msra.mxu1 %v12638_v25  ;;  %11329 = vmatpush3.bf16.msra.mxu0 %v12639_v26  ;;  %v12665_v25 = vld [vmem:[#allocation10 + $0x2c0] sm:$0xff]  }
 0xa69   :  { %11299 = vmatprep.subr.bf16.mxu1 %v12640_v27  ;;  %11331 = vmatprep.subr.bf16.mxu0 %v12641_v22  ;;  %v12666_v22 = vld [vmem:[#allocation10 + $0x200] sm:$0xff]  }
 0xa6c   :  { %v2972_v31 = vpop.f32.mrb[20].mxu1  ;;  %v3043_v61 = vpop.f32.mrb[22].mxu0  ;;  %11301 = vmatpush3.bf16.msra.mxu1 %v12642_v18  ;;  %11333 = vmatpush3.bf16.msra.mxu0 %v12643_v32  ;;  %v12671_v18 = vld [vmem:[#allocation10 + $0x288] sm:$0xff]   ;;  %v12672_v32 = vld [vmem:[#allocation10 + $0x250] sm:$0xff]  }
 0xa6d   :  { %v2974_v33 = vpop.f32.mrb[21].mxu1  ;;  %v3045_v34 = vpop.f32.mrb[23].mxu0  ;;  %11303 = vmatprep.subr.bf16.mxu1 %v12644_v35  ;;  %11335 = vmatprep.subr.bf16.mxu0 %v12645_v36  ;;  %v2973_v4 = vadd.f32 %v2972_v31, %v2700_v53  ;;  %v3044_v55 = vadd.f32 %v3043_v61, %v2708_v54  ;;  %v12669_v31 = vld [vmem:[#allocation10 + $0x2c8] sm:$0xff]  }
 0xa6e   :  { %v2975_v38 = vadd.f32 %v2974_v33, %v2704_v28  ;;  %v3046_v39 = vadd.f32 %v3045_v34, %v2712_v59  ;;  %v12667_v28 = vld [vmem:[#allocation10 + $0x280] sm:$0xff]   ;;  %v12668_v59 = vld [vmem:[#allocation10 + $0x248] sm:$0xff]   ;;  %v2740_v33 = vrot.slane %v13600_v50, %v13483_v8  ;;  %v12673_v34 = vld [vmem:[#allocation10 + $0x2d0] sm:$0xff]  }
 0xa6f   :  { %v3336_v14 = vmax.f32 %v2973_v4, 0.0  ;;  %v3338_v24 = vmax.f32 %v3044_v55, 0.0  ;;  %v12670_v61 = vld [vmem:[#allocation10 + $0x208] sm:$0xff]   ;;  %v2744_v4 = vrot.slane %v13600_v50, %v13473_v46  ;;  %v12690_v55 = vld [vmem:[#allocation10 + $0x230] sm:$0xff]  }
 0xa70   :  { %v3337_v41 = vmax.f32 %v2975_v38, 0.0  ;;  %v3339_v42 = vmax.f32 %v3046_v39, 0.0  ;;  %11305 = vmatpush3.bf16.msra.mxu1 %v12646_v43  ;;  %11337 = vmatpush3.bf16.msra.mxu0 %v12647_v44  ;;  %v12674_v38 = vld [vmem:[#allocation10 + $0x210] sm:$0xff]   ;;  %v12676_v44 = vld [vmem:[#allocation10 + $0x258] sm:$0xff]   ;;  %v12685_v53 = vld [vmem:[#allocation10 + $0x2e8] sm:$0xff]  }
 0xa71   :  { %11307 = vmatprep.subr.bf16.mxu1 %v12648_v29  ;;  %11339 = vmatprep.subr.bf16.mxu0 %v12649_v47  ;;  %v12677_v29 = vld [vmem:[#allocation10 + $0x2d8] sm:$0xff]   ;;  %v12686_v54 = vld [vmem:[#allocation10 + $0x228] sm:$0xff]  }
 0xa72   :  { %3552 = vmatprep.mubr.f32.mxu1 %v3337_v41  ;;  %3622 = vmatprep.mubr.f32.mxu0 %v3339_v42  ;;  %v12675_v41 = vld [vmem:[#allocation10 + $0x290] sm:$0xff]   ;;  %v12678_v47 = vld [vmem:[#allocation10 + $0x218] sm:$0xff]  }
 0xa74   :  { %11309 = vmatpush3.bf16.msra.mxu1 %v12650_v37  ;;  %11341 = vmatpush3.bf16.msra.mxu0 %v12651_v48  ;;  %v12679_v37 = vld [vmem:[#allocation10 + $0x298] sm:$0xff]   ;;  %v12680_v48 = vld [vmem:[#allocation10 + $0x260] sm:$0xff]  }
 0xa75   :  { %11311 = vmatprep.subr.bf16.mxu1 %v12652_v30  ;;  %11343 = vmatprep.subr.bf16.mxu0 %v12653_v49  ;;  %v12681_v30 = vld [vmem:[#allocation10 + $0x2e0] sm:$0xff]  }
 0xa76   :  { %v12682_v49 = vld [vmem:[#allocation10 + $0x220] sm:$0xff]  }
 0xa78   :  { %11313 = vmatpush3.bf16.msra.mxu1 %v12654_v51  ;;  %11345 = vmatpush3.bf16.msra.mxu0 %v12655_v52  ;;  %v12683_v51 = vld [vmem:[#allocation10 + $0x2a0] sm:$0xff]   ;;  %v12684_v52 = vld [vmem:[#allocation10 + $0x268] sm:$0xff]  }
 0xa79   :  { %11315 = vmatprep.subr.bf16.mxu1 %v12656_v56  ;;  %11347 = vmatprep.subr.bf16.mxu0 %v12657_v57  ;;  %v2716_v56 = vrot.slane %v13600_v50, %v13448_v16  ;;  %v12687_v57 = vld [vmem:[#allocation10 + $0x2a8] sm:$0xff]  }
 0xa7c   :  { %v13610_v62 = vpop.f32.mrb[22].mxu1  ;;  %v13612_v63 = vpop.f32.mrb[24].mxu0  ;;  %11317 = vmatpush3.bf16.msra.mxu1 %v12658_v2  ;;  %11349 = vmatpush3.bf16.msra.mxu0 %v12659_v3  ;;  %v12689_v2 = vld [vmem:[#allocation10 + $0x2f0] sm:$0xff]   ;;  %v2736_v3 = vrot.slane %v13600_v50, %v13470_v45 }
 0xa7d   :  { %v3116_v5 = vpop.f32.mrb[23].mxu1  ;;  %v3187_v6 = vpop.f32.mrb[25].mxu0  ;;  %11319 = vmatprep.subr.bf16.mxu1 %v12660_v9  ;;  %11351 = vmatprep.subr.bf16.mxu0 %v12661_v10  ;;  %v12692_v9 = vld [vmem:[#allocation10 + $0x278] sm:$0xff]  }
 0xa7e   :  { %v3117_v12 = vadd.f32 %v3116_v5, %v2720_v58  ;;  %v3188_v13 = vadd.f32 %v3187_v6, %v2728_v60  ;;  %v12688_v58 = vld [vmem:[#allocation10 + $0x270] sm:$0xff]   ;;  %v2724_v60 = vrot.slane %v13600_v50, %v13451_v17  ;;  %v3115_v5 = vadd.f32 %v13610_v62, %v2716_v56 }
 0xa7f   :  { %v12691_v6 = vld [vmem:[#allocation10 + $0x2b0] sm:$0xff]  }
 0xa80   :  { %11321 = vmatpush3.bf16.msra.mxu1 %v12662_v21  ;;  %11353 = vmatpush3.bf16.msra.mxu0 %v12663_v23  ;;  %v3341_v26 = vmax.f32 %v3117_v12, 0.0  ;;  %v3343_v27 = vmax.f32 %v3188_v13, 0.0  ;;  %v3186_v10 = vadd.f32 %v13612_v63, %v2724_v60  ;;  %v12693_v12 = vld [vmem:[#allocation10 + $0x2f8] sm:$0xff]   ;;  %v12699_v63 = vld [vmem:[#allocation10 + $0x380] sm:$0xff]  }
 0xa81   :  { %11355 = vmatprep.subr.bf16.mxu1 %v12664_v15  ;;  %11387 = vmatprep.subr.bf16.mxu0 %v12665_v25  ;;  %v12694_v23 = vld [vmem:[#allocation10 + $0x238] sm:$0xff]   ;;  %v12696_v15 = vld [vmem:[#allocation10 + $0x340] sm:$0xff]  }
 0xa82   :  { %v3342_v25 = vmax.f32 %v3186_v10, 0.0  ;;  %v12725_v60 = vld [vmem:[#allocation10 + $0x3f8] sm:$0xff]  }
 0xa83   :  { %3553 = vmatmul.mubr.f32.vlgmr.msra.gmra.mrb[28].mxu1 %v3336_v14  ;;  %3623 = vmatmul.mubr.f32.vlgmr.msra.gmra.mrb[30].mxu0 %v3338_v24  ;;  %v3340_v14 = vmax.f32 %v3115_v5, 0.0  ;;  %v12695_v24 = vld [vmem:[#allocation10 + $0x2b8] sm:$0xff]   ;;  %v9248_v5 = vld [vmem:[#allocation11 + $0x10] sm:$0xff]  }
 0xa84   :  { %11357 = vmatpush3.bf16.msra.mxu1 %v12666_v22  ;;  %3692 = vmatprep.mubr.f32.mxu1 %v3341_v26  ;;  %v12697_v26 = vld [vmem:[#allocation10 + $0x3c0] sm:$0xff]  }
 0xa85   :  { %11389 = vmatpush3.bf16.msra.mxu0 %v12667_v28  ;;  %3762 = vmatprep.mubr.f32.mxu0 %v3343_v27  ;;  %v12698_v22 = vld [vmem:[#allocation10 + $0x300] sm:$0xff]   ;;  %v12700_v28 = vld [vmem:[#allocation10 + $0x348] sm:$0xff]  }
 0xa86   :  { %11359 = vmatprep.subr.bf16.mxu1 %v12668_v59  ;;  %11391 = vmatprep.subr.bf16.mxu0 %v12669_v31  ;;  %v12701_v59 = vld [vmem:[#allocation10 + $0x3c8] sm:$0xff]  }
 0xa87   :  { %v12702_v31 = vld [vmem:[#allocation10 + $0x308] sm:$0xff]  }
 0xa88   :  { %11361 = vmatpush3.bf16.msra.mxu1 %v12670_v61  ;;  %v12703_v61 = vld [vmem:[#allocation10 + $0x388] sm:$0xff]  }
 0xa89   :  { %11393 = vmatpush3.bf16.msra.mxu0 %v12671_v18  ;;  %11363 = vmatprep.subr.bf16.mxu1 %v12672_v32  ;;  %v12704_v18 = vld [vmem:[#allocation10 + $0x350] sm:$0xff]  }
 0xa8a   :  { %11395 = vmatprep.subr.bf16.mxu0 %v12673_v34  ;;  %v12705_v32 = vld [vmem:[#allocation10 + $0x3d0] sm:$0xff]  }
 0xa8b   :  { %v12707_v34 = vld [vmem:[#allocation10 + $0x390] sm:$0xff]  }
 0xa8c   :  { %v13616_v35 = vpop.f32.mrb[24].mxu1  ;;  %v3327_v36 = vpop.f32.mrb[26].mxu0  ;;  %11365 = vmatpush3.bf16.msra.mxu1 %v12674_v38  ;;  %v12709_v38 = vld [vmem:[#allocation10 + $0x3d8] sm:$0xff]  }
 0xa8d   :  { %v13618_v39 = vadd.f32 %v3327_v36, %v2740_v33  ;;  %11397 = vmatpush3.bf16.msra.mxu0 %v12675_v41  ;;  %v3258_v42 = vpop.f32.mrb[25].mxu1  ;;  %v3329_v43 = vpop.f32.mrb[27].mxu0  ;;  %11367 = vmatprep.subr.bf16.mxu1 %v12676_v44  ;;  %v12706_v33 = vld [vmem:[#allocation10 + $0x310] sm:$0xff]   ;;  %v12708_v36 = vld [vmem:[#allocation10 + $0x358] sm:$0xff]   ;;  %v12713_v44 = vld [vmem:[#allocation10 + $0x3e0] sm:$0xff]  }
 0xa8e   :  { %11399 = vmatprep.subr.bf16.mxu0 %v12677_v29  ;;  %v3259_v13 = vadd.f32 %v3258_v42, %v2736_v3  ;;  %v3330_v21 = vadd.f32 %v3329_v43, %v2744_v4  ;;  %v12710_v41 = vld [vmem:[#allocation10 + $0x318] sm:$0xff]   ;;  %v12712_v43 = vld [vmem:[#allocation10 + $0x360] sm:$0xff]  }
 0xa8f   :  { %v12711_v42 = vld [vmem:[#allocation10 + $0x398] sm:$0xff]   ;;  %v12714_v29 = vld [vmem:[#allocation10 + $0x320] sm:$0xff]   ;;  %v3346_v4 = vmax.f32 %v13618_v39, 0.0 }
 0xa90   :  { %11369 = vmatpush3.bf16.msra.mxu1 %v12678_v47  ;;  %v3345_v62 = vmax.f32 %v3259_v13, 0.0  ;;  %v3347_v27 = vmax.f32 %v3330_v21, 0.0  ;;  %v12715_v47 = vld [vmem:[#allocation10 + $0x3a0] sm:$0xff]   ;;  %v9249_v39 = vld [vmem:[#allocation11 + $0x18] sm:$0xff]  }
 0xa91   :  { %11401 = vmatpush3.bf16.msra.mxu0 %v12679_v37  ;;  %11371 = vmatprep.subr.bf16.mxu1 %v12680_v48  ;;  %v12716_v37 = vld [vmem:[#allocation10 + $0x368] sm:$0xff]  }
 0xa92   :  { %11403 = vmatprep.subr.bf16.mxu0 %v12681_v30  ;;  %v12717_v48 = vld [vmem:[#allocation10 + $0x3e8] sm:$0xff]  }
 0xa93   :  { %v12718_v30 = vld [vmem:[#allocation10 + $0x328] sm:$0xff]  }
 0xa94   :  { %11373 = vmatpush3.bf16.msra.mxu1 %v12682_v49  ;;  %v2732_v49 = vrot.slane %v13600_v50, %v13480_v7  ;;  %v12727_v50 = vld [vmem:[#allocation10 + $0x3b8] sm:$0xff]  }
 0xa95   :  { %11405 = vmatpush3.bf16.msra.mxu0 %v12683_v51  ;;  %11375 = vmatprep.subr.bf16.mxu1 %v12684_v52  ;;  %v12719_v51 = vld [vmem:[#allocation10 + $0x3a8] sm:$0xff]   ;;  %v12720_v52 = vld [vmem:[#allocation10 + $0x370] sm:$0xff]  }
 0xa96   :  { %11407 = vmatprep.subr.bf16.mxu0 %v12685_v53  ;;  %v12721_v53 = vld [vmem:[#allocation10 + $0x3f0] sm:$0xff]   ;;  %v3257_v56 = vadd.f32 %v13616_v35, %v2732_v49  ;;  %v9247_v35 = vld [vmem:[#allocation11 + $0x8] sm:$0xff]  }
 0xa98   :  { %11377 = vmatpush3.bf16.msra.mxu1 %v12686_v54  ;;  %v12722_v54 = vld [vmem:[#allocation10 + $0x330] sm:$0xff]   ;;  %v3344_v3 = vmax.f32 %v3257_v56, 0.0 }
 0xa99   :  { %11409 = vmatpush3.bf16.msra.mxu0 %v12687_v57  ;;  %11379 = vmatprep.subr.bf16.mxu1 %v12688_v58  ;;  %v12723_v57 = vld [vmem:[#allocation10 + $0x3b0] sm:$0xff]   ;;  %v12724_v58 = vld [vmem:[#allocation10 + $0x378] sm:$0xff]  }
 0xa9a   :  { %11411 = vmatprep.subr.bf16.mxu0 %v12689_v2  ;;  %v12726_v2 = vld [vmem:[#allocation10 + $0x338] sm:$0xff]  }
 0xa9c   :  { %11381 = vmatpush3.bf16.msra.mxu1 %v12690_v55  ;;  %v8570_v55 = vld [vmem:[#allocation11] sm:$0xff]  }
 0xa9d   :  { %11413 = vmatpush3.bf16.msra.mxu0 %v12691_v6  ;;  %11383 = vmatprep.subr.bf16.mxu1 %v12692_v9 }
 0xa9e   :  { %11415 = vmatprep.subr.bf16.mxu0 %v12693_v12 }
 0xaa0   :  { %11385 = vmatpush3.bf16.msra.mxu1 %v12694_v23 }
 0xaa1   :  { %11417 = vmatpush3.bf16.msra.mxu0 %v12695_v24  ;;  %11419 = vmatprep.subr.bf16.mxu1 %v12696_v15 }
 0xaa2   :  { %11451 = vmatprep.subr.bf16.mxu0 %v12697_v26 }
 0xaa3   :  { %3693 = vmatmul.mubr.f32.vlgmr.msra.gmra.mrb[30].mxu1 %v3340_v14 }
 0xaa4   :  { %3763 = vmatmul.mubr.f32.vlgmr.msra.gmra.mrb[32].mxu0 %v3342_v25  ;;  %11421 = vmatpush3.bf16.msra.mxu1 %v12698_v22 }
 0xaa5   :  { %3832 = vmatprep.mubr.f32.mxu1 %v3345_v62  ;;  %11453 = vmatpush3.bf16.msra.mxu0 %v12699_v63 }
 0xaa6   :  { %3902 = vmatprep.mubr.f32.mxu0 %v3347_v27  ;;  %11423 = vmatprep.subr.bf16.mxu1 %v12700_v28 }
 0xaa7   :  { %11455 = vmatprep.subr.bf16.mxu0 %v12701_v59 }
 0xaa8   :  { %11425 = vmatpush3.bf16.msra.mxu1 %v12702_v31 }
 0xaa9   :  { %11457 = vmatpush3.bf16.msra.mxu0 %v12703_v61  ;;  %11427 = vmatprep.subr.bf16.mxu1 %v12704_v18 }
 0xaaa   :  { %11459 = vmatprep.subr.bf16.mxu0 %v12705_v32 }
 0xaac   :  { %11429 = vmatpush3.bf16.msra.mxu1 %v12706_v33 }
 0xaad   :  { %11461 = vmatpush3.bf16.msra.mxu0 %v12707_v34  ;;  %11431 = vmatprep.subr.bf16.mxu1 %v12708_v36 }
 0xaae   :  { %11463 = vmatprep.subr.bf16.mxu0 %v12709_v38 }
 0xab0   :  { %11433 = vmatpush3.bf16.msra.mxu1 %v12710_v41 }
 0xab1   :  { %11465 = vmatpush3.bf16.msra.mxu0 %v12711_v42  ;;  %11435 = vmatprep.subr.bf16.mxu1 %v12712_v43 }
 0xab2   :  { %11467 = vmatprep.subr.bf16.mxu0 %v12713_v44 }
 0xab4   :  { %11437 = vmatpush3.bf16.msra.mxu1 %v12714_v29  ;;  %v3915_v29 = vpop.permute.xlu0 %3914 }
 0xab5   :  { %11469 = vmatpush3.bf16.msra.mxu0 %v12715_v47  ;;  %11439 = vmatprep.subr.bf16.mxu1 %v12716_v37 }
 0xab6   :  { %11471 = vmatprep.subr.bf16.mxu0 %v12717_v48 }
 0xab8   :  { %11441 = vmatpush3.bf16.msra.mxu1 %v12718_v30 }
 0xab9   :  { %11473 = vmatpush3.bf16.msra.mxu0 %v12719_v51  ;;  %11443 = vmatprep.subr.bf16.mxu1 %v12720_v52 }
 0xaba   :  { %11475 = vmatprep.subr.bf16.mxu0 %v12721_v53 }
 0xabc   :  { %11445 = vmatpush3.bf16.msra.mxu1 %v12722_v54 }
 0xabd   :  { %11477 = vmatpush3.bf16.msra.mxu0 %v12723_v57  ;;  %11447 = vmatprep.subr.bf16.mxu1 %v12724_v58 }
 0xabe   :  { %11479 = vmatprep.subr.bf16.mxu0 %v12725_v60 }
 0xac0   :  { %11449 = vmatpush3.bf16.msra.mxu1 %v12726_v2 }
 0xac1   :  { %11481 = vmatpush3.bf16.msra.mxu0 %v12727_v50  ;;  %11482 = vmatprep.subr.bf16.mxu1 %v13152_v0 }
 0xac2   :  { %11494 = vmatprep.subr.bf16.mxu0 %v13152_v0 }
 0xac3   :  { %3833 = vmatmul.mubr.f32.vlgmr.msra.gmra.mrb[32].mxu1 %v3344_v3 }
 0xac4   :  { %3903 = vmatmul.mubr.f32.vlgmr.msra.gmra.mrb[34].mxu0 %v3346_v4  ;;  %10624 = vmatprep.mubr.msk.f32.mxu1 %vm13153_vm0, %v13154_v1  ;;  %v7978_v4 = vld [vmem:[%s13952_s11 + $0xf] ss:$0 sm:$0xff] }
 0xac5   :  { %11496 = vmatpush3.bf16.msra.mxu0 %v8570_v55  ;;  %10643 = vmatprep.mubr.msk.f32.mxu0 %vm13153_vm0, %v13154_v1 }
 0xac6   :  { %11497 = vmatprep.subr.bf16.mxu0 %v13152_v0 }
 0xac9   :  { %11499 = vmatpush3.bf16.msra.mxu0 %v9247_v35  ;;  %v7973_v35 = vld [vmem:[%s13952_s11 + $0xc] ss:$0 sm:$0xff] }
 0xaca   :  { %11500 = vmatprep.subr.bf16.mxu0 %v13152_v0 }
 0xacd   :  { %11502 = vmatpush3.bf16.msra.mxu0 %v9248_v5 }
 0xace   :  { %11503 = vmatprep.subr.bf16.mxu0 %v13152_v0 }
 0xad1   :  { %11505 = vmatpush3.bf16.msra.mxu0 %v9249_v39 }
 0xad4   :  { %10644 = vmatmul.mubr.msk.f32.vlgmr.msra.gmra.mrb[36].mxu0 %vm294_vm2, %v13399_v11 }
 0xad5   :  { %4628 = vmatprep.mubr.f32.mxu0 %v13154_v1 }
 0xb36   :  { %v9715_v6 = vpop.f32.mrb[26].mxu1  ;;  %v9750_v9 = vpop.f32.mrb[28].mxu0 }
 0xb37   :  { %v9716_v10 = vpop.f32.mrb[27].mxu1  ;;  %v9751_v12 = vpop.f32.mrb[29].mxu0 }
 0xb38   :  { %v9717_v13 = vadd.f32 %v9716_v10, %v9715_v6  ;;  %v9752_v21 = vadd.f32 %v9751_v12, %v9750_v9 }
 0xb3a   :  { %v3485_v23 = vadd.f32 %v9752_v21, %v9717_v13 }
 0xb56   :  { %v9785_v14 = vpop.f32.mrb[28].mxu1  ;;  %v9820_v24 = vpop.f32.mrb[30].mxu0 }
 0xb57   :  { %v9786_v15 = vpop.f32.mrb[29].mxu1  ;;  %v9821_v25 = vpop.f32.mrb[31].mxu0 }
 0xb58   :  { %v9787_v26 = vadd.f32 %v9786_v15, %v9785_v14  ;;  %v9822_v62 = vadd.f32 %v9821_v25, %v9820_v24 }
 0xb5a   :  { %v3555_v27 = vadd.f32 %v9787_v26, %v3485_v23 }
 0xb5c   :  { %v3625_v22 = vadd.f32 %v9822_v62, %v3555_v27 }
 0xb76   :  { %v9855_v63 = vpop.f32.mrb[30].mxu1 }
 0xb77   :  { %v9890_v28 = vpop.f32.mrb[32].mxu0  ;;  %v9856_v59 = vpop.f32.mrb[31].mxu1 }
 0xb78   :  { %v9857_v31 = vadd.f32 %v9856_v59, %v9855_v63  ;;  %v9891_v61 = vpop.f32.mrb[33].mxu0  ;;  %v9245_v63 = vld [vmem:[#allocation13 + $0x10] sm:$0xff]  }
 0xb79   :  { %v9892_v18 = vadd.f32 %v9891_v61, %v9890_v28  ;;  %v9246_v28 = vld [vmem:[#allocation13 + $0x18] sm:$0xff]  }
 0xb7a   :  { %v3695_v32 = vadd.f32 %v9857_v31, %v3625_v22  ;;  %v8554_v22 = vld [vmem:[#allocation13] sm:$0xff]  }
 0xb7b   :  { %11484 = vmatpush3.bf16.msra.mxu1 %v8554_v22 }
 0xb7c   :  { %v3765_v33 = vadd.f32 %v9892_v18, %v3695_v32  ;;  %11485 = vmatprep.subr.bf16.mxu1 %v13152_v0  ;;  %v7974_v32 = vld [vmem:[%s13952_s11 + $0xd] ss:$0 sm:$0xff] }
 0xb96   :  { %v9925_v34 = vpop.f32.mrb[32].mxu1 }
 0xb97   :  { %v9960_v36 = vpop.f32.mrb[34].mxu0  ;;  %v9926_v38 = vpop.f32.mrb[33].mxu1 }
 0xb98   :  { %v9927_v41 = vadd.f32 %v9926_v38, %v9925_v34  ;;  %v9961_v42 = vpop.f32.mrb[35].mxu0  ;;  %v7975_v34 = vld [vmem:[%s13952_s11 + $0xe] ss:$0 sm:$0xff] }
 0xb99   :  { %v9962_v43 = vadd.f32 %v9961_v42, %v9960_v36 }
 0xb9a   :  { %v3835_v44 = vadd.f32 %v9927_v41, %v3765_v33 }
 0xb9c   :  { %v3905_v47 = vadd.f32 %v9962_v43, %v3835_v44 }
 0xb9e   :  { %v3917_v37 = vadd.f32 %v3915_v29, %v3905_v47  ;;  %v7979_v47 = vld [vmem:[%s13952_s11 + $0x10] ss:$0 sm:$0xff] }
 0xba0   :  { %3919 = vrot.lane.b32.xlu1 %v3917_v37, %s13139_s18 }
 0xba7   :  { %v4144_v48 = vpop.f32.mrb[36].mxu0 }
 0xba8   :  { %v10645_v30 = vpop.f32.mrb[37].mxu0  ;;  %v4153_v5 = vadd.f32 %v7978_v4, %v4144_v48  ;;  %v7981_v48 = vld [vmem:[%s13952_s11 + $0x12] ss:$0 sm:$0xff]  ;;  %v4220_v4 = vld [vmem:[#allocation14 + $0x40] sm:$0xff] }
 0xba9   :  { %v7980_v30 = vld [vmem:[%s13952_s11 + $0x11] ss:$0 sm:$0xff] }
 0xbaa   :  { %v4154_v10 = vadd.f32 %v4153_v5, %v13399_v11  ;;  %v9244_v11 = vld [vmem:[#allocation13 + $0x8] sm:$0xff]  }
 0xbab   :  { %11487 = vmatpush3.bf16.msra.mxu1 %v9244_v11 }
 0xbac   :  { %v4157_v12 = vsel %vm294_vm2, %v4154_v10, 0.0  ;;  %11488 = vmatprep.subr.bf16.mxu1 %v13152_v0 }
 0xbaf   :  { %11490 = vmatpush3.bf16.msra.mxu1 %v9245_v63 }
 0xbb0   :  { %11491 = vmatprep.subr.bf16.mxu1 %v13152_v0 }
 0xbb3   :  { %11493 = vmatpush3.bf16.msra.mxu1 %v9246_v28  ;;  %v4260_v28 = vld [vmem:[#allocation14 + $0x180] sm:$0xff] }
 0xc12   :  { %v3920_v49 = vpop.permute.xlu1 %3919 }
 0xc13   :  { %v3922_v51 = vadd.f32 %v3920_v49, %v13558_v40  ;;  %v7972_v40 = vld [vmem:[%s13952_s11 + $0xb] ss:$0 sm:$0xff] }
 0xc15   :  { %v3925_v52 = vsel %vm294_vm2, %v3922_v51, 0.0 }
 0xc16   :  { %3926 = vadd.xlane.f32.xlu1 %v3925_v52 }
 0xca3   :  { %v3927_v53 = vpop.xlane.xlu1 %3926 }
 0xca4   :  { %v3928_v54 = vmul.f32 0.015625, %v3927_v53 }
 0xca6   :  { %v3929_v56 = vsub.f32 %v3922_v51, %v3928_v54 }
 0xca8   :  { %v3930_v57 = vmul.f32 %v3929_v56, %v3929_v56 }
 0xcaa   :  { %v3931_v58 = vsel %vm294_vm2, %v3930_v57, 0.0 }
 0xcab   :  { %3932 = vadd.xlane.f32.xlu0 %v3931_v58 }
 0xd38   :  { %v3933_v60 = vpop.xlane.xlu0 %3932 }
 0xd39   :  { %v3934_v2 = vmul.f32 0.015625, %v3933_v60 }
 0xd3b   :  { %v3935_v3 = vadd.f32 1e-05, %v3934_v2 }
 0xd3d   :  { %12578 = vrsqrt.f32 %v3935_v3 }
 0xd47   :  { %v12579_v50 = vpop.eup %12578 }
 0xd48   :  { %v3937_v55 = vmul.f32 %v12579_v50, %v3929_v56  ;;  %v4212_v50 = vld [vmem:[#allocation14] sm:$0xff] }
 0xd49   :  { %v12427_v5 = vcombine.low %v4212_v50, %v4220_v4 }
 0xd4a   :  { %v3942_v39 = vmul.f32 %v7972_v40, %v3937_v55  ;;  %v4213_v40 = vld [vmem:[#allocation14 + $0x8] sm:$0xff]  ;;  %v12426_v55 = vcombine.high %v4212_v50, %v4220_v4 }
 0xd4c   :  { %v3947_v6 = vadd.f32 %v7973_v35, %v3942_v39  ;;  %v4221_v35 = vld [vmem:[#allocation14 + $0x48] sm:$0xff]  ;;  %11507 = vmatprep.subr.bf16.mxu1 %v12426_v55  ;;  %v4246_v55 = vld [vmem:[#allocation14 + $0x110] sm:$0xff] }
 0xd4d   :  { %v12434_v39 = vcombine.high %v4213_v40, %v4221_v35 }
 0xd4e   :  { %v3950_v9 = vsel %vm294_vm2, %v3947_v6, 0.0 }
 0xd4f   :  { %3951 = vadd.xlane.f32.xlu0 %v3950_v9  ;;  %11523 = vmatprep.subr.bf16.mxu0 %v12434_v39  ;;  %v4228_v9 = vld [vmem:[#allocation14 + $0x80] sm:$0xff]  ;;  %v4255_v39 = vld [vmem:[#allocation14 + $0x158] sm:$0xff] }
 0xd53   :  { %4158 = vadd.xlane.f32.xlu0 %v4157_v12  ;;  %v4229_v12 = vld [vmem:[#allocation14 + $0x88] sm:$0xff] }
 0xddc   :  { %v3952_v13 = vpop.xlane.xlu0 %3951 }
 0xddd   :  { %v3953_v21 = vmul.f32 0.015625, %v3952_v13 }
 0xddf   :  { %v3954_v23 = vsub.f32 %v3947_v6, %v3953_v21  ;;  %v12435_v6 = vcombine.low %v4213_v40, %v4221_v35  ;;  %v4237_v21 = vld [vmem:[#allocation14 + $0xc8] sm:$0xff]  ;;  %v4254_v35 = vld [vmem:[#allocation14 + $0x150] sm:$0xff] }
 0xde0   :  { %v4159_v14 = vpop.xlane.xlu0 %4158 }
 0xde1   :  { %v4160_v24 = vmul.f32 0.015625, %v4159_v14  ;;  %v3955_v15 = vmul.f32 %v3954_v23, %v3954_v23  ;;  %11525 = vmatpush1.bf16.msra.mxu0 %v12435_v6  ;;  %v12436_v14 = vcombine.high %v4229_v12, %v4237_v21 }
 0xde3   :  { %v4161_v25 = vsub.f32 %v4154_v10, %v4160_v24  ;;  %v3956_v26 = vsel %vm294_vm2, %v3955_v15, 0.0  ;;  %v4236_v10 = vld [vmem:[#allocation14 + $0xc0] sm:$0xff]  ;;  %v12437_v24 = vcombine.low %v4229_v12, %v4237_v21  ;;  %11527 = vmatprep.subr.bf16.mxu0 %v12436_v14  ;;  %v4262_v12 = vld [vmem:[#allocation14 + $0x190] sm:$0xff]  ;;  %v4263_v21 = vld [vmem:[#allocation14 + $0x198] sm:$0xff]  ;;  %v12447_v14 = vcombine.low %v4246_v55, %v4254_v35 }
 0xde4   :  { %3957 = vadd.xlane.f32.xlu1 %v3956_v26  ;;  %v12428_v13 = vcombine.high %v4228_v9, %v4236_v10  ;;  %v4244_v15 = vld [vmem:[#allocation14 + $0x100] sm:$0xff]  ;;  %v4245_v26 = vld [vmem:[#allocation14 + $0x108] sm:$0xff] }
 0xde5   :  { %v4162_v62 = vmul.f32 %v4161_v25, %v4161_v25  ;;  %11529 = vmatpush1.bf16.msra.mxu0 %v12437_v24 }
 0xde7   :  { %v4163_v27 = vsel %vm294_vm2, %v4162_v62, 0.0 }
 0xde8   :  { %4164 = vadd.xlane.f32.xlu1 %v4163_v27  ;;  %v4253_v27 = vld [vmem:[#allocation14 + $0x148] sm:$0xff] }
 0xde9   :  { %v12438_v11 = vcombine.high %v4245_v26, %v4253_v27  ;;  %v12439_v63 = vcombine.low %v4245_v26, %v4253_v27  ;;  %v4216_v26 = vld [vmem:[#allocation14 + $0x20] sm:$0xff]  ;;  %v4217_v27 = vld [vmem:[#allocation14 + $0x28] sm:$0xff] }
 0xdeb   :  { %11531 = vmatprep.subr.bf16.mxu0 %v12438_v11 }
 0xdec   :  { %11533 = vmatpush1.bf16.msra.mxu0 %v12439_v63 }
 0xe71   :  { %v3958_v59 = vpop.xlane.xlu1 %3957 }
 0xe72   :  { %v3959_v31 = vmul.f32 0.015625, %v3958_v59  ;;  %v4268_v59 = vld [vmem:[#allocation14 + $0x1c0] sm:$0xff] }
 0xe74   :  { %v3960_v61 = vadd.f32 1e-05, %v3959_v31  ;;  %v4261_v31 = vld [vmem:[#allocation14 + $0x188] sm:$0xff] }
 0xe75   :  { %v4165_v41 = vpop.xlane.xlu1 %4164 }
 0xe76   :  { %12580 = vrsqrt.f32 %v3960_v61  ;;  %v4166_v42 = vmul.f32 0.015625, %v4165_v41  ;;  %v12432_v61 = vcombine.high %v4260_v28, %v4268_v59  ;;  %v4215_v41 = vld [vmem:[#allocation14 + $0x18] sm:$0xff] }
 0xe78   :  { %v4167_v43 = vadd.f32 1e-05, %v4166_v42 }
 0xe7a   :  { %12582 = vrsqrt.f32 %v4167_v43 }
 0xe80   :  { %v12581_v18 = vpop.eup %12580 }
 0xe81   :  { %v3962_v33 = vmul.f32 %v12581_v18, %v3954_v23  ;;  %v12429_v23 = vcombine.low %v4228_v9, %v4236_v10  ;;  %v4269_v18 = vld [vmem:[#allocation14 + $0x1c8] sm:$0xff]  ;;  %v12446_v9 = vcombine.high %v4246_v55, %v4254_v35 }
 0xe83   :  { %v3967_v36 = vmul.f32 %v7974_v32, %v3962_v33  ;;  %v12433_v32 = vcombine.low %v4260_v28, %v4268_v59  ;;  %v12440_v33 = vcombine.high %v4261_v31, %v4269_v18 }
 0xe84   :  { %v12583_v44 = vpop.eup %12582 }
 0xe85   :  { %v3972_v38 = vadd.f32 %v7975_v34, %v3967_v36  ;;  %v4169_v29 = vmul.f32 %v12583_v44, %v4161_v25  ;;  %v4252_v25 = vld [vmem:[#allocation14 + $0x140] sm:$0xff]  ;;  %v12441_v34 = vcombine.low %v4261_v31, %v4269_v18  ;;  %11535 = vmatprep.subr.bf16.mxu0 %v12440_v33  ;;  %v4214_v36 = vld [vmem:[#allocation14 + $0x10] sm:$0xff]  ;;  %v4223_v44 = vld [vmem:[#allocation14 + $0x58] sm:$0xff] }
 0xe86   :  { %v12430_v62 = vcombine.high %v4244_v15, %v4252_v25  ;;  %v12431_v22 = vcombine.low %v4244_v15, %v4252_v25  ;;  %v4232_v31 = vld [vmem:[#allocation14 + $0xa0] sm:$0xff]  ;;  %v4233_v18 = vld [vmem:[#allocation14 + $0xa8] sm:$0xff] }
 0xe87   :  { %10625 = vmatmul.mubr.msk.f32.vlgmr.msra.gmra.mrb[34].mxu1 %vm294_vm2, %v3972_v38  ;;  %v4174_v37 = vmul.f32 %v7979_v47, %v4169_v29  ;;  %v4222_v38 = vld [vmem:[#allocation14 + $0x50] sm:$0xff]  ;;  %11537 = vmatpush1.bf16.msra.mxu0 %v12441_v34  ;;  %v12450_v29 = vcombine.high %v4215_v41, %v4223_v44  ;;  %v12451_v47 = vcombine.low %v4215_v41, %v4223_v44  ;;  %v4248_v41 = vld [vmem:[#allocation14 + $0x120] sm:$0xff]  ;;  %v4257_v44 = vld [vmem:[#allocation14 + $0x168] sm:$0xff] }
 0xe88   :  { %4557 = vmatprep.mubr.f32.mxu1 %v13154_v1  ;;  %11509 = vmatpush1.bf16.msra.mxu1 %v12427_v5  ;;  %v12442_v42 = vcombine.high %v4214_v36, %v4222_v38  ;;  %v12443_v43 = vcombine.low %v4214_v36, %v4222_v38  ;;  %v4247_v5 = vld [vmem:[#allocation14 + $0x118] sm:$0xff] }
 0xe89   :  { %v4179_v53 = vadd.f32 %v7980_v30, %v4174_v37  ;;  %11511 = vmatprep.subr.bf16.mxu1 %v12428_v13  ;;  %11555 = vmatprep.subr.bf16.mxu0 %v12450_v29  ;;  %v12454_v10 = vcombine.high %v4247_v5, %v4255_v39  ;;  %v4270_v13 = vld [vmem:[#allocation14 + $0x1d0] sm:$0xff]  ;;  %v12455_v24 = vcombine.low %v4247_v5, %v4255_v39 }
 0xe8a   :  { %v12448_v15 = vcombine.high %v4262_v12, %v4270_v13  ;;  %v12449_v11 = vcombine.low %v4262_v12, %v4270_v13 }
 0xe8c   :  { %11513 = vmatpush1.bf16.msra.mxu1 %v12429_v23  ;;  %v4271_v23 = vld [vmem:[#allocation14 + $0x1d8] sm:$0xff] }
 0xe8d   :  { %11515 = vmatprep.subr.bf16.mxu1 %v12430_v62  ;;  %v12456_v25 = vcombine.high %v4263_v21, %v4271_v23  ;;  %v4224_v62 = vld [vmem:[#allocation14 + $0x60] sm:$0xff]  ;;  %v12457_v63 = vcombine.low %v4263_v21, %v4271_v23 }
 0xe8e   :  { %v12458_v28 = vcombine.high %v4216_v26, %v4224_v62  ;;  %v12459_v33 = vcombine.low %v4216_v26, %v4224_v62 }
 0xe90   :  { %11517 = vmatpush1.bf16.msra.mxu1 %v12431_v22  ;;  %v4225_v22 = vld [vmem:[#allocation14 + $0x68] sm:$0xff] }
 0xe91   :  { %11519 = vmatprep.subr.bf16.mxu1 %v12432_v61  ;;  %v12466_v59 = vcombine.high %v4217_v27, %v4225_v22  ;;  %v4240_v61 = vld [vmem:[#allocation14 + $0xe0] sm:$0xff]  ;;  %v12467_v34 = vcombine.low %v4217_v27, %v4225_v22 }
 0xe92   :  { %v12460_v36 = vcombine.high %v4232_v31, %v4240_v61  ;;  %v12461_v29 = vcombine.low %v4232_v31, %v4240_v61 }
 0xe94   :  { %11521 = vmatpush1.bf16.msra.mxu1 %v12433_v32  ;;  %v4241_v32 = vld [vmem:[#allocation14 + $0xe8] sm:$0xff] }
 0xe95   :  { %11539 = vmatprep.subr.bf16.mxu1 %v12442_v42  ;;  %v12468_v38 = vcombine.high %v4233_v18, %v4241_v32  ;;  %v4256_v42 = vld [vmem:[#allocation14 + $0x160] sm:$0xff] }
 0xf5a   :  { %v13684_v49 = vpop.f32.mrb[34].mxu1 }
 0xf5b   :  { %v4185_v51 = vadd.f32 %v7981_v48, %v13684_v49  ;;  %v10626_v52 = vpop.f32.mrb[35].mxu1 }
 0xf5c   :  { %v7982_v52 = vld [vmem:[%s13952_s11 + $0x13] ss:$0 sm:$0xff] }
 0xf5d   :  { %v4186_v54 = vadd.f32 %v4185_v51, %v4179_v53  ;;  %v7983_v53 = vld [vmem:[%s13952_s11 + $0x14] ss:$0 sm:$0xff] }
 0xf5f   :  { %v4189_v56 = vsel %vm294_vm2, %v4186_v54, 0.0 }
 0xf60   :  { %4190 = vadd.xlane.f32.xlu0 %v4189_v56  ;;  %v4230_v56 = vld [vmem:[#allocation14 + $0x90] sm:$0xff] }
 0xfed   :  { %v4191_v57 = vpop.xlane.xlu0 %4190 }
 0xfee   :  { %v4192_v58 = vmul.f32 0.015625, %v4191_v57  ;;  %v4238_v57 = vld [vmem:[#allocation14 + $0xd0] sm:$0xff] }
 0xfef   :  { %v12444_v4 = vcombine.high %v4230_v56, %v4238_v57 }
 0xff0   :  { %v13688_v60 = vsub.f32 %v4186_v54, %v4192_v58  ;;  %v4231_v58 = vld [vmem:[#allocation14 + $0x98] sm:$0xff] }
 0xff2   :  { %v4194_v2 = vmul.f32 %v13688_v60, %v13688_v60 }
 0xff4   :  { %v4195_v3 = vsel %vm294_vm2, %v4194_v2, 0.0  ;;  %v4239_v2 = vld [vmem:[#allocation14 + $0xd8] sm:$0xff] }
 0xff5   :  { %4196 = vadd.xlane.f32.xlu1 %v4195_v3  ;;  %v12452_v40 = vcombine.high %v4231_v58, %v4239_v2  ;;  %v12453_v6 = vcombine.low %v4231_v58, %v4239_v2  ;;  %v4218_v2 = vld [vmem:[#allocation14 + $0x30] sm:$0xff] }
0x1082   :  { %v4197_v37 = vpop.xlane.xlu1 %4196 }
0x1083   :  { %v4198_v48 = vmul.f32 0.015625, %v4197_v37  ;;  %v12462_v37 = vcombine.high %v4248_v41, %v4256_v42 }
0x1085   :  { %v4199_v30 = vadd.f32 1e-05, %v4198_v48 }
0x1087   :  { %12584 = vrsqrt.f32 %v4199_v30  ;;  %v4264_v30 = vld [vmem:[#allocation14 + $0x1a0] sm:$0xff] }
0x1091   :  { %v12585_v51 = vpop.eup %12584 }
0x1092   :  { %v4201_v54 = vmul.f32 %v12585_v51, %v13688_v60  ;;  %v12445_v60 = vcombine.low %v4230_v56, %v4238_v57  ;;  %v4272_v51 = vld [vmem:[#allocation14 + $0x1e0] sm:$0xff] }
0x1093   :  { %v12464_v57 = vcombine.high %v4264_v30, %v4272_v51  ;;  %v12465_v55 = vcombine.low %v4264_v30, %v4272_v51  ;;  %v9251_v30 = vld [vmem:[#allocation16 + $0x10] sm:$0xff]  }
0x1094   :  { %v4206_v3 = vmul.f32 %v7982_v52, %v4201_v54  ;;  %v4265_v52 = vld [vmem:[#allocation14 + $0x1a8] sm:$0xff]  ;;  %v12463_v54 = vcombine.low %v4248_v41, %v4256_v42  ;;  %v8586_v41 = vld [vmem:[#allocation16] sm:$0xff]   ;;  %v9267_v51 = vld [vmem:[#allocation16 + $0x90] sm:$0xff]  }
0x1095   :  { %v9265_v42 = vld [vmem:[#allocation16 + $0x80] sm:$0xff]  }
0x1096   :  { %v13700_v50 = vadd.f32 %v7983_v53, %v4206_v3  ;;  %v4273_v53 = vld [vmem:[#allocation14 + $0x1e8] sm:$0xff]  ;;  %v4226_v3 = vld [vmem:[#allocation14 + $0x70] sm:$0xff] }
0x1097   :  { %v12472_v58 = vcombine.high %v4265_v52, %v4273_v53  ;;  %v12473_v35 = vcombine.low %v4265_v52, %v4273_v53  ;;  %v12474_v5 = vcombine.high %v4218_v2, %v4226_v3  ;;  %v12475_v12 = vcombine.low %v4218_v2, %v4226_v3  ;;  %v9260_v52 = vld [vmem:[#allocation16 + $0x58] sm:$0xff]   ;;  %v9253_v2 = vld [vmem:[#allocation16 + $0x20] sm:$0xff]  }
0x1098   :  { %7984 = vmatmul.mubr.msk.f32.vlgmr.msra.gmra.mrb[36].mxu1 %vm294_vm2, %v13700_v50  ;;  %7985 = vmatmul.mubr.msk.f32.vlgmr.msra.gmra.mrb[38].mxu0 %vm294_vm2, %v13700_v50  ;;  %v9276_v53 = vld [vmem:[#allocation16 + $0xd8] sm:$0xff]   ;;  %v9269_v3 = vld [vmem:[#allocation16 + $0xa0] sm:$0xff]  }
0x1099   :  { %11541 = vmatpush1.bf16.msra.mxu1 %v12443_v43  ;;  %11557 = vmatpush1.bf16.msra.mxu0 %v12451_v47  ;;  %v4249_v43 = vld [vmem:[#allocation14 + $0x128] sm:$0xff]  ;;  %v12469_v47 = vcombine.low %v4233_v18, %v4241_v32 }
0x109a   :  { %11543 = vmatprep.subr.bf16.mxu1 %v12444_v4  ;;  %11559 = vmatprep.subr.bf16.mxu0 %v12452_v40  ;;  %v12470_v48 = vcombine.high %v4249_v43, %v4257_v44  ;;  %v12471_v56 = vcombine.low %v4249_v43, %v4257_v44  ;;  %v4219_v4 = vld [vmem:[#allocation14 + $0x38] sm:$0xff]  ;;  %v9258_v43 = vld [vmem:[#allocation16 + $0x48] sm:$0xff]  }
0x109b   :  { %4699 = vmatprep.mubr.f32.mxu1 %v13154_v1  ;;  %4770 = vmatprep.mubr.f32.mxu0 %v13154_v1  ;;  %v4227_v40 = vld [vmem:[#allocation14 + $0x78] sm:$0xff]  ;;  %v9274_v44 = vld [vmem:[#allocation16 + $0xc8] sm:$0xff]  }
0x109c   :  { %v12482_v39 = vcombine.high %v4219_v4, %v4227_v40  ;;  %v12483_v13 = vcombine.low %v4219_v4, %v4227_v40  ;;  %v9262_v4 = vld [vmem:[#allocation16 + $0x68] sm:$0xff]  }
0x109d   :  { %11545 = vmatpush1.bf16.msra.mxu1 %v12445_v60  ;;  %11561 = vmatpush1.bf16.msra.mxu0 %v12453_v6  ;;  %v4234_v60 = vld [vmem:[#allocation14 + $0xb0] sm:$0xff]  ;;  %v9278_v40 = vld [vmem:[#allocation16 + $0xe8] sm:$0xff]  }
0x109e   :  { %11547 = vmatprep.subr.bf16.mxu1 %v12446_v9  ;;  %11563 = vmatprep.subr.bf16.mxu0 %v12454_v10  ;;  %v4242_v6 = vld [vmem:[#allocation14 + $0xf0] sm:$0xff]  ;;  %v4235_v9 = vld [vmem:[#allocation14 + $0xb8] sm:$0xff] }
0x109f   :  { %v4243_v10 = vld [vmem:[#allocation14 + $0xf8] sm:$0xff]  ;;  %v12476_v21 = vcombine.high %v4234_v60, %v4242_v6  ;;  %v12477_v26 = vcombine.low %v4234_v60, %v4242_v6  ;;  %v9255_v60 = vld [vmem:[#allocation16 + $0x30] sm:$0xff]  }
0x10a0   :  { %v12484_v23 = vcombine.high %v4235_v9, %v4243_v10  ;;  %v12485_v62 = vcombine.low %v4235_v9, %v4243_v10  ;;  %v9271_v6 = vld [vmem:[#allocation16 + $0xb0] sm:$0xff]   ;;  %v9264_v9 = vld [vmem:[#allocation16 + $0x78] sm:$0xff]  }
0x10a1   :  { %11549 = vmatpush1.bf16.msra.mxu1 %v12447_v14  ;;  %11565 = vmatpush1.bf16.msra.mxu0 %v12455_v24  ;;  %v4250_v14 = vld [vmem:[#allocation14 + $0x130] sm:$0xff]  ;;  %v9280_v10 = vld [vmem:[#allocation16 + $0xf8] sm:$0xff]  }
0x10a2   :  { %11551 = vmatprep.subr.bf16.mxu1 %v12448_v15  ;;  %11567 = vmatprep.subr.bf16.mxu0 %v12456_v25  ;;  %v4258_v24 = vld [vmem:[#allocation14 + $0x170] sm:$0xff]  ;;  %v4251_v15 = vld [vmem:[#allocation14 + $0x138] sm:$0xff] }
0x10a3   :  { %v4259_v25 = vld [vmem:[#allocation14 + $0x178] sm:$0xff]  ;;  %v12478_v27 = vcombine.high %v4250_v14, %v4258_v24  ;;  %v12479_v31 = vcombine.low %v4250_v14, %v4258_v24 }
0x10a4   :  { %v12486_v22 = vcombine.high %v4251_v15, %v4259_v25  ;;  %v12487_v61 = vcombine.low %v4251_v15, %v4259_v25  ;;  %v13724_v14 = vld [vmem:[#allocation19 + $0x2] ss:$4 sm:$0xff] }
0x10a5   :  { %11553 = vmatpush1.bf16.msra.mxu1 %v12449_v11  ;;  %11569 = vmatpush1.bf16.msra.mxu0 %v12457_v63  ;;  %v4266_v11 = vld [vmem:[#allocation14 + $0x1b0] sm:$0xff]  ;;  %v4413_v24 = vrot.slane %v13724_v14, %v13448_v16  ;;  %v4421_v15 = vrot.slane %v13724_v14, %v13451_v17  ;;  %v4417_v25 = vrot.slane %v13724_v14, %v13456_v19 }
0x10a6   :  { %11571 = vmatprep.subr.bf16.mxu1 %v12458_v28  ;;  %11587 = vmatprep.subr.bf16.mxu0 %v12466_v59  ;;  %v4274_v63 = vld [vmem:[#allocation14 + $0x1f0] sm:$0xff]  ;;  %v4267_v28 = vld [vmem:[#allocation14 + $0x1b8] sm:$0xff] }
0x10a7   :  { %v4275_v59 = vld [vmem:[#allocation14 + $0x1f8] sm:$0xff]  ;;  %v12480_v18 = vcombine.high %v4266_v11, %v4274_v63 }
0x10a8   :  { %7986 = vmatmul.mubr.msk.f32.vlgmr.msra.gmra.mrb[38].mxu1 %vm294_vm2, %v13700_v50  ;;  %7987 = vmatmul.mubr.msk.f32.vlgmr.msra.gmra.mrb[40].mxu0 %vm294_vm2, %v13700_v50  ;;  %v12488_v32 = vcombine.high %v4267_v28, %v4275_v59 }
0x10a9   :  { %11573 = vmatpush1.bf16.msra.mxu1 %v12459_v33  ;;  %11589 = vmatpush1.bf16.msra.mxu0 %v12467_v34  ;;  %v12481_v33 = vcombine.low %v4266_v11, %v4274_v63  ;;  %v12489_v34 = vcombine.low %v4267_v28, %v4275_v59 }
0x10aa   :  { %11575 = vmatprep.subr.bf16.mxu1 %v12460_v36  ;;  %11591 = vmatprep.subr.bf16.mxu0 %v12468_v38  ;;  %v9257_v36 = vld [vmem:[#allocation16 + $0x40] sm:$0xff]  }
0x10ab   :  { %4841 = vmatprep.mubr.f32.mxu1 %v13154_v1  ;;  %4912 = vmatprep.mubr.f32.mxu0 %v13154_v1  ;;  %v9273_v38 = vld [vmem:[#allocation16 + $0xc0] sm:$0xff]  }
0x10ad   :  { %11577 = vmatpush1.bf16.msra.mxu1 %v12461_v29  ;;  %11593 = vmatpush1.bf16.msra.mxu0 %v12469_v47  ;;  %v9250_v29 = vld [vmem:[#allocation16 + $0x8] sm:$0xff]  }
0x10ae   :  { %11579 = vmatprep.subr.bf16.mxu1 %v12462_v37  ;;  %11595 = vmatprep.subr.bf16.mxu0 %v12470_v48  ;;  %v9266_v47 = vld [vmem:[#allocation16 + $0x88] sm:$0xff]   ;;  %v9259_v37 = vld [vmem:[#allocation16 + $0x50] sm:$0xff]  }
0x10af   :  { %v9275_v48 = vld [vmem:[#allocation16 + $0xd0] sm:$0xff]  }
0x10b1   :  { %11581 = vmatpush1.bf16.msra.mxu1 %v12463_v54  ;;  %11597 = vmatpush1.bf16.msra.mxu0 %v12471_v56  ;;  %v9252_v54 = vld [vmem:[#allocation16 + $0x18] sm:$0xff]  }
0x10b2   :  { %11583 = vmatprep.subr.bf16.mxu1 %v12464_v57  ;;  %11599 = vmatprep.subr.bf16.mxu0 %v12472_v58  ;;  %v9268_v56 = vld [vmem:[#allocation16 + $0x98] sm:$0xff]   ;;  %v9261_v57 = vld [vmem:[#allocation16 + $0x60] sm:$0xff]  }
0x10b3   :  { %v9277_v58 = vld [vmem:[#allocation16 + $0xe0] sm:$0xff]  }
0x10b5   :  { %11585 = vmatpush1.bf16.msra.mxu1 %v12465_v55  ;;  %11601 = vmatpush1.bf16.msra.mxu0 %v12473_v35  ;;  %v9254_v55 = vld [vmem:[#allocation16 + $0x28] sm:$0xff]  }
0x10b6   :  { %11603 = vmatprep.subr.bf16.mxu1 %v12474_v5  ;;  %11619 = vmatprep.subr.bf16.mxu0 %v12482_v39  ;;  %v9270_v35 = vld [vmem:[#allocation16 + $0xa8] sm:$0xff]   ;;  %v9263_v5 = vld [vmem:[#allocation16 + $0x70] sm:$0xff]  }
0x10b7   :  { %v9279_v39 = vld [vmem:[#allocation16 + $0xf0] sm:$0xff]  }
0x10b8   :  { %7988 = vmatmul.mubr.msk.f32.vlgmr.msra.gmra.mrb[40].mxu1 %vm294_vm2, %v13700_v50  ;;  %7989 = vmatmul.mubr.msk.f32.vlgmr.msra.gmra.mrb[42].mxu0 %vm294_vm2, %v13700_v50 }
0x10b9   :  { %11605 = vmatpush1.bf16.msra.mxu1 %v12475_v12  ;;  %11621 = vmatpush1.bf16.msra.mxu0 %v12483_v13  ;;  %v9256_v12 = vld [vmem:[#allocation16 + $0x38] sm:$0xff]  }
0x10ba   :  { %11607 = vmatprep.subr.bf16.mxu1 %v12476_v21  ;;  %11623 = vmatprep.subr.bf16.mxu0 %v12484_v23  ;;  %v9272_v13 = vld [vmem:[#allocation16 + $0xb8] sm:$0xff]   ;;  %v9289_v21 = vld [vmem:[#allocation16 + $0x140] sm:$0xff]  }
0x10bb   :  { %4983 = vmatprep.mubr.f32.mxu1 %v13154_v1  ;;  %5054 = vmatprep.mubr.f32.mxu0 %v13154_v1  ;;  %v9305_v23 = vld [vmem:[#allocation16 + $0x1c0] sm:$0xff]  }
0x10bd   :  { %11609 = vmatpush1.bf16.msra.mxu1 %v12477_v26  ;;  %11625 = vmatpush1.bf16.msra.mxu0 %v12485_v62  ;;  %v4425_v26 = vrot.slane %v13724_v14, %v13459_v20 }
0x10be   :  { %11611 = vmatprep.subr.bf16.mxu1 %v12478_v27  ;;  %11627 = vmatprep.subr.bf16.mxu0 %v12486_v22 }
0x10c1   :  { %11613 = vmatpush1.bf16.msra.mxu1 %v12479_v31  ;;  %11629 = vmatpush1.bf16.msra.mxu0 %v12487_v61 }
0x10c2   :  { %11615 = vmatprep.subr.bf16.mxu1 %v12480_v18  ;;  %11631 = vmatprep.subr.bf16.mxu0 %v12488_v32 }
0x10c5   :  { %11617 = vmatpush1.bf16.msra.mxu1 %v12481_v33  ;;  %11633 = vmatpush1.bf16.msra.mxu0 %v12489_v34  ;;  %v9281_v34 = vld [vmem:[#allocation16 + $0x100] sm:$0xff]  }
0x10c6   :  { %11635 = vmatprep.subr.bf16.mxu1 %v9257_v36  ;;  %11667 = vmatprep.subr.bf16.mxu0 %v9273_v38  ;;  %v9297_v36 = vld [vmem:[#allocation16 + $0x180] sm:$0xff]   ;;  %v9290_v38 = vld [vmem:[#allocation16 + $0x148] sm:$0xff]  }
0x10c8   :  { %7990 = vmatmul.mubr.msk.f32.vlgmr.msra.gmra.mrb[42].mxu1 %vm294_vm2, %v13700_v50  ;;  %7991 = vmatmul.mubr.msk.f32.vlgmr.msra.gmra.mrb[44].mxu0 %vm294_vm2, %v13700_v50 }
0x10c9   :  { %11637 = vmatpush3.bf16.msra.mxu1 %v8586_v41  ;;  %11669 = vmatpush3.bf16.msra.mxu0 %v9265_v42  ;;  %v9306_v41 = vld [vmem:[#allocation16 + $0x1c8] sm:$0xff]  }
0x10ca   :  { %11639 = vmatprep.subr.bf16.mxu1 %v9258_v43  ;;  %11671 = vmatprep.subr.bf16.mxu0 %v9274_v44  ;;  %v9282_v42 = vld [vmem:[#allocation16 + $0x108] sm:$0xff]   ;;  %v9291_v44 = vld [vmem:[#allocation16 + $0x150] sm:$0xff]  }
0x10cb   :  { %v9298_v43 = vld [vmem:[#allocation16 + $0x188] sm:$0xff]  }
0x10cd   :  { %11641 = vmatpush3.bf16.msra.mxu1 %v9250_v29  ;;  %11673 = vmatpush3.bf16.msra.mxu0 %v9266_v47  ;;  %v9307_v29 = vld [vmem:[#allocation16 + $0x1d0] sm:$0xff]  }
0x10ce   :  { %11643 = vmatprep.subr.bf16.mxu1 %v9259_v37  ;;  %11675 = vmatprep.subr.bf16.mxu0 %v9275_v48  ;;  %v9283_v47 = vld [vmem:[#allocation16 + $0x110] sm:$0xff]   ;;  %v4433_v48 = vrot.slane %v13724_v14, %v13470_v45 }
0x10cf   :  { %v9299_v37 = vld [vmem:[#allocation16 + $0x190] sm:$0xff]  }
0x10d1   :  { %11645 = vmatpush3.bf16.msra.mxu1 %v9251_v30  ;;  %11677 = vmatpush3.bf16.msra.mxu0 %v9267_v51  ;;  %v4441_v30 = vrot.slane %v13724_v14, %v13473_v46  ;;  %v9292_v51 = vld [vmem:[#allocation16 + $0x158] sm:$0xff]  }
0x10d2   :  { %11647 = vmatprep.subr.bf16.mxu1 %v9260_v52  ;;  %11679 = vmatprep.subr.bf16.mxu0 %v9276_v53  ;;  %v9308_v52 = vld [vmem:[#allocation16 + $0x1d8] sm:$0xff]  }
0x10d5   :  { %11649 = vmatpush3.bf16.msra.mxu1 %v9252_v54  ;;  %11681 = vmatpush3.bf16.msra.mxu0 %v9268_v56 }
0x10d6   :  { %11651 = vmatprep.subr.bf16.mxu1 %v9261_v57  ;;  %11683 = vmatprep.subr.bf16.mxu0 %v9277_v58  ;;  %v9284_v58 = vld [vmem:[#allocation16 + $0x118] sm:$0xff]  }
0x10d9   :  { %11653 = vmatpush3.bf16.msra.mxu1 %v9253_v2  ;;  %11685 = vmatpush3.bf16.msra.mxu0 %v9269_v3  ;;  %v9300_v2 = vld [vmem:[#allocation16 + $0x198] sm:$0xff]  }
0x10da   :  { %11655 = vmatprep.subr.bf16.mxu1 %v9262_v4  ;;  %11687 = vmatprep.subr.bf16.mxu0 %v9278_v40  ;;  %v9293_v40 = vld [vmem:[#allocation16 + $0x160] sm:$0xff]  }
0x10dd   :  { %11657 = vmatpush3.bf16.msra.mxu1 %v9254_v55  ;;  %11689 = vmatpush3.bf16.msra.mxu0 %v9270_v35  ;;  %v9309_v55 = vld [vmem:[#allocation16 + $0x1e0] sm:$0xff]  }
0x10de   :  { %11659 = vmatprep.subr.bf16.mxu1 %v9263_v5  ;;  %11691 = vmatprep.subr.bf16.mxu0 %v9279_v39  ;;  %v9285_v39 = vld [vmem:[#allocation16 + $0x120] sm:$0xff]  }
0x10e1   :  { %11661 = vmatpush3.bf16.msra.mxu1 %v9255_v60  ;;  %11693 = vmatpush3.bf16.msra.mxu0 %v9271_v6  ;;  %v9301_v60 = vld [vmem:[#allocation16 + $0x1a0] sm:$0xff]   ;;  %v9294_v6 = vld [vmem:[#allocation16 + $0x168] sm:$0xff]  }
0x10e2   :  { %11663 = vmatprep.subr.bf16.mxu1 %v9264_v9  ;;  %11695 = vmatprep.subr.bf16.mxu0 %v9280_v10  ;;  %v9310_v9 = vld [vmem:[#allocation16 + $0x1e8] sm:$0xff]  }
0x10e3   :  { %v9286_v10 = vld [vmem:[#allocation16 + $0x128] sm:$0xff]  }
0x10e5   :  { %11665 = vmatpush3.bf16.msra.mxu1 %v9256_v12  ;;  %11697 = vmatpush3.bf16.msra.mxu0 %v9272_v13  ;;  %v9302_v12 = vld [vmem:[#allocation16 + $0x1a8] sm:$0xff]   ;;  %v9295_v13 = vld [vmem:[#allocation16 + $0x170] sm:$0xff]  }
0x10e6   :  { %11699 = vmatprep.subr.bf16.mxu1 %v9289_v21  ;;  %11731 = vmatprep.subr.bf16.mxu0 %v9305_v23  ;;  %v9311_v21 = vld [vmem:[#allocation16 + $0x1f0] sm:$0xff]  }
0x10e7   :  { %v13738_v23 = vld [vmem:[#allocation19 + $0x22] ss:$4 sm:$0xff] }
0x116b   :  { %v4559_v62 = vpop.f32.mrb[36].mxu1  ;;  %v4630_v27 = vpop.f32.mrb[38].mxu0 }
0x116c   :  { %v4560_v22 = vadd.f32 %v4559_v62, %v4413_v24  ;;  %v4631_v11 = vadd.f32 %v4630_v27, %v4421_v15  ;;  %v4561_v63 = vpop.f32.mrb[37].mxu1  ;;  %v4632_v28 = vpop.f32.mrb[39].mxu0  ;;  %v4429_v24 = vrot.slane %v13724_v14, %v13480_v7  ;;  %v4437_v15 = vrot.slane %v13724_v14, %v13483_v8  ;;  %v9296_v27 = vld [vmem:[#allocation16 + $0x178] sm:$0xff]  }
0x116d   :  { %v4562_v59 = vadd.f32 %v4561_v63, %v4417_v25  ;;  %v4633_v31 = vadd.f32 %v4632_v28, %v4425_v26  ;;  %v9287_v25 = vld [vmem:[#allocation16 + $0x130] sm:$0xff]   ;;  %v4449_v62 = vrot.slane %v13738_v23, %v13456_v19 }
0x116e   :  { %v5061_v32 = vmax.f32 %v4560_v22, 0.0  ;;  %v5063_v33 = vmax.f32 %v4631_v11, 0.0  ;;  %v9303_v26 = vld [vmem:[#allocation16 + $0x1b0] sm:$0xff]   ;;  %v9312_v22 = vld [vmem:[#allocation16 + $0x1f8] sm:$0xff]   ;;  %v4457_v11 = vrot.slane %v13738_v23, %v13459_v20 }
0x116f   :  { %v5062_v61 = vmax.f32 %v4562_v59, 0.0  ;;  %v5064_v18 = vmax.f32 %v4633_v31, 0.0 }
0x1171   :  { %5653 = vmatprep.mubr.f32.mxu1 %v5062_v61  ;;  %5723 = vmatprep.mubr.f32.mxu0 %v5064_v18  ;;  %v9288_v18 = vld [vmem:[#allocation16 + $0x138] sm:$0xff]  }
0x1172   :  { %5654 = vmatmul.mubr.f32.vlgmr.msra.gmra.mrb[44].mxu1 %v5061_v32  ;;  %5724 = vmatmul.mubr.f32.vlgmr.msra.gmra.mrb[46].mxu0 %v5063_v33  ;;  %v9304_v32 = vld [vmem:[#allocation16 + $0x1b8] sm:$0xff]  }
0x1173   :  { %11701 = vmatpush3.bf16.msra.mxu1 %v9281_v34  ;;  %11733 = vmatpush3.bf16.msra.mxu0 %v9297_v36  ;;  %v9321_v34 = vld [vmem:[#allocation16 + $0x240] sm:$0xff]  }
0x1174   :  { %11703 = vmatprep.subr.bf16.mxu1 %v9290_v38  ;;  %11735 = vmatprep.subr.bf16.mxu0 %v9306_v41  ;;  %v9337_v36 = vld [vmem:[#allocation16 + $0x2c0] sm:$0xff]  }
0x1177   :  { %11705 = vmatpush3.bf16.msra.mxu1 %v9282_v42  ;;  %11737 = vmatpush3.bf16.msra.mxu0 %v9298_v43  ;;  %v9313_v43 = vld [vmem:[#allocation16 + $0x200] sm:$0xff]  }
0x1178   :  { %11707 = vmatprep.subr.bf16.mxu1 %v9291_v44  ;;  %11739 = vmatprep.subr.bf16.mxu0 %v9307_v29  ;;  %v9329_v29 = vld [vmem:[#allocation16 + $0x280] sm:$0xff]  }
0x117b   :  { %v4701_v53 = vpop.f32.mrb[38].mxu1  ;;  %v4772_v54 = vpop.f32.mrb[40].mxu0  ;;  %11709 = vmatpush3.bf16.msra.mxu1 %v9283_v47  ;;  %11741 = vmatpush3.bf16.msra.mxu0 %v9299_v37  ;;  %v9322_v37 = vld [vmem:[#allocation16 + $0x248] sm:$0xff]  }
0x117c   :  { %v4703_v56 = vpop.f32.mrb[39].mxu1  ;;  %v4774_v57 = vpop.f32.mrb[41].mxu0  ;;  %11711 = vmatprep.subr.bf16.mxu1 %v9292_v51  ;;  %11743 = vmatprep.subr.bf16.mxu0 %v9308_v52  ;;  %v4702_v59 = vadd.f32 %v4701_v53, %v4429_v24  ;;  %v4773_v14 = vadd.f32 %v4772_v54, %v4437_v15  ;;  %v9330_v51 = vld [vmem:[#allocation16 + $0x288] sm:$0xff]   ;;  %v9323_v52 = vld [vmem:[#allocation16 + $0x250] sm:$0xff]   ;;  %v4469_v54 = vrot.slane %v13738_v23, %v13483_v8 }
0x117d   :  { %v4704_v3 = vadd.f32 %v4703_v56, %v4433_v48  ;;  %v4775_v4 = vadd.f32 %v4774_v57, %v4441_v30  ;;  %v9338_v48 = vld [vmem:[#allocation16 + $0x2c8] sm:$0xff]   ;;  %v9339_v53 = vld [vmem:[#allocation16 + $0x2d0] sm:$0xff]  }
0x117e   :  { %v5065_v41 = vmax.f32 %v4702_v59, 0.0  ;;  %v5067_v42 = vmax.f32 %v4773_v14, 0.0  ;;  %v9314_v30 = vld [vmem:[#allocation16 + $0x208] sm:$0xff]   ;;  %v9315_v56 = vld [vmem:[#allocation16 + $0x210] sm:$0xff]   ;;  %v4465_v59 = vrot.slane %v13738_v23, %v13470_v45  ;;  %v9344_v14 = vld [vmem:[#allocation16 + $0x2f8] sm:$0xff]  }
0x117f   :  { %v5066_v35 = vmax.f32 %v4704_v3, 0.0  ;;  %v5068_v5 = vmax.f32 %v4775_v4, 0.0  ;;  %11713 = vmatpush3.bf16.msra.mxu1 %v9284_v58  ;;  %11745 = vmatpush3.bf16.msra.mxu0 %v9300_v2  ;;  %v9331_v57 = vld [vmem:[#allocation16 + $0x290] sm:$0xff]   ;;  %v9324_v58 = vld [vmem:[#allocation16 + $0x258] sm:$0xff]   ;;  %v9334_v24 = vld [vmem:[#allocation16 + $0x2a8] sm:$0xff]  }
0x1180   :  { %11715 = vmatprep.subr.bf16.mxu1 %v9293_v40  ;;  %11747 = vmatprep.subr.bf16.mxu0 %v9309_v55  ;;  %v9340_v2 = vld [vmem:[#allocation16 + $0x2d8] sm:$0xff]   ;;  %v9327_v15 = vld [vmem:[#allocation16 + $0x270] sm:$0xff]  }
0x1181   :  { %5793 = vmatprep.mubr.f32.mxu1 %v5066_v35  ;;  %5863 = vmatprep.mubr.f32.mxu0 %v5068_v5  ;;  %v9316_v5 = vld [vmem:[#allocation16 + $0x218] sm:$0xff]  }
0x1183   :  { %11717 = vmatpush3.bf16.msra.mxu1 %v9285_v39  ;;  %11749 = vmatpush3.bf16.msra.mxu0 %v9301_v60  ;;  %v9332_v39 = vld [vmem:[#allocation16 + $0x298] sm:$0xff]   ;;  %v9325_v60 = vld [vmem:[#allocation16 + $0x260] sm:$0xff]  }
0x1184   :  { %11719 = vmatprep.subr.bf16.mxu1 %v9294_v6  ;;  %11751 = vmatprep.subr.bf16.mxu0 %v9310_v9  ;;  %v9341_v6 = vld [vmem:[#allocation16 + $0x2e0] sm:$0xff]  }
0x1185   :  { %v9317_v9 = vld [vmem:[#allocation16 + $0x220] sm:$0xff]  }
0x1187   :  { %11721 = vmatpush3.bf16.msra.mxu1 %v9286_v10  ;;  %11753 = vmatpush3.bf16.msra.mxu0 %v9302_v12  ;;  %v9333_v10 = vld [vmem:[#allocation16 + $0x2a0] sm:$0xff]   ;;  %v9326_v12 = vld [vmem:[#allocation16 + $0x268] sm:$0xff]  }
0x1188   :  { %11723 = vmatprep.subr.bf16.mxu1 %v9295_v13  ;;  %11755 = vmatprep.subr.bf16.mxu0 %v9311_v21  ;;  %v9342_v13 = vld [vmem:[#allocation16 + $0x2e8] sm:$0xff]  }
0x1189   :  { %v9318_v21 = vld [vmem:[#allocation16 + $0x228] sm:$0xff]  }
0x118b   :  { %v13748_v63 = vpop.f32.mrb[40].mxu1  ;;  %v13750_v28 = vpop.f32.mrb[42].mxu0  ;;  %11725 = vmatpush3.bf16.msra.mxu1 %v9287_v25  ;;  %11757 = vmatpush3.bf16.msra.mxu0 %v9303_v26  ;;  %v9343_v25 = vld [vmem:[#allocation16 + $0x2f0] sm:$0xff]   ;;  %v4445_v26 = vrot.slane %v13738_v23, %v13448_v16 }
0x118c   :  { %v4845_v31 = vpop.f32.mrb[41].mxu1  ;;  %v4916_v61 = vpop.f32.mrb[43].mxu0  ;;  %11727 = vmatprep.subr.bf16.mxu1 %v9296_v27  ;;  %11759 = vmatprep.subr.bf16.mxu0 %v9312_v22  ;;  %v4453_v27 = vrot.slane %v13738_v23, %v13451_v17  ;;  %v9335_v22 = vld [vmem:[#allocation16 + $0x2b0] sm:$0xff]  }
0x118d   :  { %v4846_v33 = vadd.f32 %v4845_v31, %v4449_v62  ;;  %v4917_v38 = vadd.f32 %v4916_v61, %v4457_v11  ;;  %v9319_v62 = vld [vmem:[#allocation16 + $0x230] sm:$0xff]   ;;  %v9328_v11 = vld [vmem:[#allocation16 + $0x278] sm:$0xff]   ;;  %v4473_v31 = vrot.slane %v13738_v23, %v13473_v46  ;;  %v4844_v61 = vadd.f32 %v13748_v63, %v4445_v26 }
0x118f   :  { %11729 = vmatpush3.bf16.msra.mxu1 %v9288_v18  ;;  %11761 = vmatpush3.bf16.msra.mxu0 %v9304_v32  ;;  %v5070_v44 = vmax.f32 %v4846_v33, 0.0  ;;  %v5072_v47 = vmax.f32 %v4917_v38, 0.0  ;;  %v9320_v18 = vld [vmem:[#allocation16 + $0x238] sm:$0xff]   ;;  %v4915_v32 = vadd.f32 %v13750_v28, %v4453_v27  ;;  %v9369_v38 = vld [vmem:[#allocation16 + $0x3c0] sm:$0xff]   ;;  %v9370_v28 = vld [vmem:[#allocation16 + $0x3c8] sm:$0xff]  }
0x1190   :  { %11763 = vmatprep.subr.bf16.mxu1 %v9321_v34  ;;  %11795 = vmatprep.subr.bf16.mxu0 %v9337_v36  ;;  %v9336_v33 = vld [vmem:[#allocation16 + $0x2b8] sm:$0xff]   ;;  %v9353_v34 = vld [vmem:[#allocation16 + $0x340] sm:$0xff]  }
0x1191   :  { %v9368_v27 = vld [vmem:[#allocation16 + $0x3b8] sm:$0xff]  }
0x1192   :  { %5794 = vmatmul.mubr.f32.vlgmr.msra.gmra.mrb[46].mxu1 %v5065_v41  ;;  %5864 = vmatmul.mubr.f32.vlgmr.msra.gmra.mrb[48].mxu0 %v5067_v42  ;;  %v5069_v42 = vmax.f32 %v4844_v61, 0.0 }
0x1193   :  { %11765 = vmatpush3.bf16.msra.mxu1 %v9313_v43  ;;  %5933 = vmatprep.mubr.f32.mxu1 %v5070_v44  ;;  %v9345_v43 = vld [vmem:[#allocation16 + $0x300] sm:$0xff]   ;;  %v5071_v44 = vmax.f32 %v4915_v32, 0.0 }
0x1194   :  { %11797 = vmatpush3.bf16.msra.mxu0 %v9329_v29  ;;  %6003 = vmatprep.mubr.f32.mxu0 %v5072_v47  ;;  %v9361_v29 = vld [vmem:[#allocation16 + $0x380] sm:$0xff]   ;;  %v9354_v47 = vld [vmem:[#allocation16 + $0x348] sm:$0xff]  }
0x1195   :  { %11767 = vmatprep.subr.bf16.mxu1 %v9322_v37  ;;  %11799 = vmatprep.subr.bf16.mxu0 %v9338_v48  ;;  %v9346_v48 = vld [vmem:[#allocation16 + $0x308] sm:$0xff]  }
0x1197   :  { %11769 = vmatpush3.bf16.msra.mxu1 %v9314_v30  ;;  %v9362_v30 = vld [vmem:[#allocation16 + $0x388] sm:$0xff]  }
0x1198   :  { %11801 = vmatpush3.bf16.msra.mxu0 %v9330_v51  ;;  %11771 = vmatprep.subr.bf16.mxu1 %v9323_v52  ;;  %v9355_v51 = vld [vmem:[#allocation16 + $0x350] sm:$0xff]  }
0x1199   :  { %11803 = vmatprep.subr.bf16.mxu0 %v9339_v53  ;;  %v9371_v52 = vld [vmem:[#allocation16 + $0x3d0] sm:$0xff]  }
0x119a   :  { %v9347_v53 = vld [vmem:[#allocation16 + $0x310] sm:$0xff]  }
0x119b   :  { %v13754_v3 = vpop.f32.mrb[42].mxu1  ;;  %v5056_v4 = vpop.f32.mrb[44].mxu0  ;;  %11773 = vmatpush3.bf16.msra.mxu1 %v9315_v56  ;;  %v9356_v56 = vld [vmem:[#allocation16 + $0x358] sm:$0xff]  }
0x119c   :  { %v13756_v40 = vadd.f32 %v5056_v4, %v4469_v54  ;;  %11805 = vmatpush3.bf16.msra.mxu0 %v9331_v57  ;;  %v4987_v55 = vpop.f32.mrb[43].mxu1  ;;  %v5058_v35 = vpop.f32.mrb[45].mxu0  ;;  %11775 = vmatprep.subr.bf16.mxu1 %v9324_v58  ;;  %v9363_v54 = vld [vmem:[#allocation16 + $0x390] sm:$0xff]   ;;  %v9372_v57 = vld [vmem:[#allocation16 + $0x3d8] sm:$0xff]   ;;  %v9357_v4 = vld [vmem:[#allocation16 + $0x360] sm:$0xff]  }
0x119d   :  { %11807 = vmatprep.subr.bf16.mxu0 %v9340_v2  ;;  %v4988_v36 = vadd.f32 %v4987_v55, %v4465_v59  ;;  %v5059_v41 = vadd.f32 %v5058_v35, %v4473_v31  ;;  %v9348_v58 = vld [vmem:[#allocation16 + $0x318] sm:$0xff]   ;;  %v9373_v55 = vld [vmem:[#allocation16 + $0x3e0] sm:$0xff]   ;;  %v12730_v59 = vld [vmem:[#allocation11 + $0x10] sm:$0xff]  }
0x119e   :  { %v9364_v2 = vld [vmem:[#allocation16 + $0x398] sm:$0xff]   ;;  %v9349_v35 = vld [vmem:[#allocation16 + $0x320] sm:$0xff]  }
0x119f   :  { %11777 = vmatpush3.bf16.msra.mxu1 %v9316_v5  ;;  %v5074_v63 = vmax.f32 %v4988_v36, 0.0  ;;  %v5076_v37 = vmax.f32 %v5059_v41, 0.0  ;;  %v9365_v5 = vld [vmem:[#allocation16 + $0x3a0] sm:$0xff]  }
0x11a0   :  { %11809 = vmatpush3.bf16.msra.mxu0 %v9332_v39  ;;  %11779 = vmatprep.subr.bf16.mxu1 %v9325_v60  ;;  %v9358_v39 = vld [vmem:[#allocation16 + $0x368] sm:$0xff]  }
0x11a1   :  { %11811 = vmatprep.subr.bf16.mxu0 %v9341_v6  ;;  %v9374_v60 = vld [vmem:[#allocation16 + $0x3e8] sm:$0xff]  }
0x11a2   :  { %v9350_v6 = vld [vmem:[#allocation16 + $0x328] sm:$0xff]  }
0x11a3   :  { %11781 = vmatpush3.bf16.msra.mxu1 %v9317_v9  ;;  %v9366_v9 = vld [vmem:[#allocation16 + $0x3a8] sm:$0xff]  }
0x11a4   :  { %11813 = vmatpush3.bf16.msra.mxu0 %v9333_v10  ;;  %11783 = vmatprep.subr.bf16.mxu1 %v9326_v12  ;;  %v9359_v10 = vld [vmem:[#allocation16 + $0x370] sm:$0xff]  }
0x11a5   :  { %11815 = vmatprep.subr.bf16.mxu0 %v9342_v13  ;;  %v9375_v12 = vld [vmem:[#allocation16 + $0x3f0] sm:$0xff]   ;;  %v4461_v13 = vrot.slane %v13738_v23, %v13480_v7  ;;  %v5075_v23 = vmax.f32 %v13756_v40, 0.0  ;;  %v12731_v40 = vld [vmem:[#allocation11 + $0x18] sm:$0xff]  }
0x11a7   :  { %11785 = vmatpush3.bf16.msra.mxu1 %v9318_v21  ;;  %v9351_v21 = vld [vmem:[#allocation16 + $0x330] sm:$0xff]   ;;  %v4986_v26 = vadd.f32 %v13754_v3, %v4461_v13  ;;  %v12729_v3 = vld [vmem:[#allocation11 + $0x8] sm:$0xff]  }
0x11a8   :  { %11817 = vmatpush3.bf16.msra.mxu0 %v9334_v24  ;;  %11787 = vmatprep.subr.bf16.mxu1 %v9327_v15  ;;  %v9367_v24 = vld [vmem:[#allocation16 + $0x3b0] sm:$0xff]   ;;  %v9360_v15 = vld [vmem:[#allocation16 + $0x378] sm:$0xff]  }
0x11a9   :  { %11819 = vmatprep.subr.bf16.mxu0 %v9343_v25  ;;  %v9376_v25 = vld [vmem:[#allocation16 + $0x3f8] sm:$0xff]  }
0x11ab   :  { %11789 = vmatpush3.bf16.msra.mxu1 %v9319_v62  ;;  %v9352_v62 = vld [vmem:[#allocation16 + $0x338] sm:$0xff]  }
0x11ac   :  { %11821 = vmatpush3.bf16.msra.mxu0 %v9335_v22  ;;  %11791 = vmatprep.subr.bf16.mxu1 %v9328_v11  ;;  %v5073_v22 = vmax.f32 %v4986_v26, 0.0  ;;  %v12728_v11 = vld [vmem:[#allocation11] sm:$0xff]  }
0x11ad   :  { %11823 = vmatprep.subr.bf16.mxu0 %v9344_v14 }
0x11af   :  { %11793 = vmatpush3.bf16.msra.mxu1 %v9320_v18 }
0x11b0   :  { %11825 = vmatpush3.bf16.msra.mxu0 %v9336_v33  ;;  %11827 = vmatprep.subr.bf16.mxu1 %v9353_v34 }
0x11b1   :  { %11859 = vmatprep.subr.bf16.mxu0 %v9369_v38 }
0x11b2   :  { %5934 = vmatmul.mubr.f32.vlgmr.msra.gmra.mrb[48].mxu1 %v5069_v42 }
0x11b3   :  { %6004 = vmatmul.mubr.f32.vlgmr.msra.gmra.mrb[50].mxu0 %v5071_v44  ;;  %11829 = vmatpush3.bf16.msra.mxu1 %v9345_v43 }
0x11b4   :  { %6073 = vmatprep.mubr.f32.mxu1 %v5074_v63  ;;  %11861 = vmatpush3.bf16.msra.mxu0 %v9361_v29 }
0x11b5   :  { %6143 = vmatprep.mubr.f32.mxu0 %v5076_v37  ;;  %11831 = vmatprep.subr.bf16.mxu1 %v9354_v47 }
0x11b6   :  { %11863 = vmatprep.subr.bf16.mxu0 %v9370_v28 }
0x11b7   :  { %11833 = vmatpush3.bf16.msra.mxu1 %v9346_v48 }
0x11b8   :  { %11865 = vmatpush3.bf16.msra.mxu0 %v9362_v30  ;;  %11835 = vmatprep.subr.bf16.mxu1 %v9355_v51 }
0x11b9   :  { %11867 = vmatprep.subr.bf16.mxu0 %v9371_v52 }
0x11bb   :  { %11837 = vmatpush3.bf16.msra.mxu1 %v9347_v53 }
0x11bc   :  { %11869 = vmatpush3.bf16.msra.mxu0 %v9363_v54  ;;  %11839 = vmatprep.subr.bf16.mxu1 %v9356_v56 }
0x11bd   :  { %11871 = vmatprep.subr.bf16.mxu0 %v9372_v57 }
0x11bf   :  { %11841 = vmatpush3.bf16.msra.mxu1 %v9348_v58 }
0x11c0   :  { %11873 = vmatpush3.bf16.msra.mxu0 %v9364_v2  ;;  %11843 = vmatprep.subr.bf16.mxu1 %v9357_v4 }
0x11c1   :  { %11875 = vmatprep.subr.bf16.mxu0 %v9373_v55 }
0x11c3   :  { %11845 = vmatpush3.bf16.msra.mxu1 %v9349_v35  ;;  %v7992_v35 = vld [vmem:[%s13952_s11 + $0x15] ss:$0 sm:$0xff] }
0x11c4   :  { %11877 = vmatpush3.bf16.msra.mxu0 %v9365_v5  ;;  %11847 = vmatprep.subr.bf16.mxu1 %v9358_v39 }
0x11c5   :  { %11879 = vmatprep.subr.bf16.mxu0 %v9374_v60 }
0x11c7   :  { %11849 = vmatpush3.bf16.msra.mxu1 %v9350_v6 }
0x11c8   :  { %11881 = vmatpush3.bf16.msra.mxu0 %v9366_v9  ;;  %11851 = vmatprep.subr.bf16.mxu1 %v9359_v10  ;;  %v7996_v9 = vld [vmem:[%s13952_s11 + $0x18] ss:$0 sm:$0xff]  ;;  %v7999_v10 = vld [vmem:[%s13952_s11 + $0x1b] ss:$0 sm:$0xff] }
0x11c9   :  { %11883 = vmatprep.subr.bf16.mxu0 %v9375_v12 }
0x11cb   :  { %11853 = vmatpush3.bf16.msra.mxu1 %v9351_v21 }
0x11cc   :  { %11885 = vmatpush3.bf16.msra.mxu0 %v9367_v24  ;;  %11855 = vmatprep.subr.bf16.mxu1 %v9360_v15 }
0x11cd   :  { %11887 = vmatprep.subr.bf16.mxu0 %v9376_v25 }
0x11cf   :  { %11857 = vmatpush3.bf16.msra.mxu1 %v9352_v62 }
0x11d0   :  { %11889 = vmatpush3.bf16.msra.mxu0 %v9368_v27  ;;  %11890 = vmatprep.subr.bf16.mxu1 %v13152_v0  ;;  %v7993_v27 = vld [vmem:[%s13952_s11 + $0x16] ss:$0 sm:$0xff] }
0x11d2   :  { %6074 = vmatmul.mubr.f32.vlgmr.msra.gmra.mrb[50].mxu1 %v5073_v22 }
0x11d3   :  { %6144 = vmatmul.mubr.f32.vlgmr.msra.gmra.mrb[52].mxu0 %v5075_v23  ;;  %11892 = vmatpush3.bf16.msra.mxu1 %v12728_v11  ;;  %v7994_v23 = vld [vmem:[%s13952_s11 + $0x17] ss:$0 sm:$0xff] }
0x11d4   :  { %11893 = vmatprep.subr.bf16.mxu1 %v13152_v0  ;;  %10662 = vmatprep.mubr.msk.f32.mxu1 %vm13153_vm0, %v13154_v1 }
0x11d5   :  { %6680 = vmatprep.mubr.f32.mxu0 %v13154_v1 }
0x11d7   :  { %11895 = vmatpush3.bf16.msra.mxu1 %v12729_v3 }
0x11d8   :  { %11896 = vmatprep.subr.bf16.mxu1 %v13152_v0 }
0x11db   :  { %11898 = vmatpush3.bf16.msra.mxu1 %v12730_v59 }
0x11dc   :  { %11899 = vmatprep.subr.bf16.mxu1 %v13152_v0 }
0x11df   :  { %11901 = vmatpush3.bf16.msra.mxu1 %v12731_v40 }
0x1245   :  { %v10013_v14 = vpop.f32.mrb[44].mxu1  ;;  %v10048_v31 = vpop.f32.mrb[46].mxu0 }
0x1246   :  { %v10014_v61 = vpop.f32.mrb[45].mxu1  ;;  %v10049_v18 = vpop.f32.mrb[47].mxu0 }
0x1247   :  { %v10015_v32 = vadd.f32 %v10014_v61, %v10013_v14  ;;  %v10050_v33 = vadd.f32 %v10049_v18, %v10048_v31 }
0x1249   :  { %v5726_v34 = vadd.f32 %v10050_v33, %v10015_v32 }
0x1265   :  { %v10083_v36 = vpop.f32.mrb[46].mxu1  ;;  %v10118_v38 = vpop.f32.mrb[48].mxu0 }
0x1266   :  { %v10084_v41 = vpop.f32.mrb[47].mxu1  ;;  %v10119_v42 = vpop.f32.mrb[49].mxu0 }
0x1267   :  { %v10085_v43 = vadd.f32 %v10084_v41, %v10083_v36  ;;  %v10120_v44 = vadd.f32 %v10119_v42, %v10118_v38 }
0x1269   :  { %v5796_v29 = vadd.f32 %v10085_v43, %v5726_v34 }
0x126b   :  { %v5866_v63 = vadd.f32 %v10120_v44, %v5796_v29 }
0x1285   :  { %v10153_v47 = vpop.f32.mrb[48].mxu1 }
0x1286   :  { %v10188_v37 = vpop.f32.mrb[50].mxu0  ;;  %v10154_v28 = vpop.f32.mrb[49].mxu1 }
0x1287   :  { %v10155_v48 = vadd.f32 %v10154_v28, %v10153_v47  ;;  %v10189_v30 = vpop.f32.mrb[51].mxu0 }
0x1288   :  { %v10190_v51 = vadd.f32 %v10189_v30, %v10188_v37  ;;  %v7997_v37 = vld [vmem:[%s13952_s11 + $0x19] ss:$0 sm:$0xff] }
0x1289   :  { %v5936_v52 = vadd.f32 %v10155_v48, %v5866_v63 }
0x128b   :  { %v6006_v53 = vadd.f32 %v10190_v51, %v5936_v52 }
0x12a5   :  { %v10223_v54 = vpop.f32.mrb[50].mxu1 }
0x12a6   :  { %v10258_v56 = vpop.f32.mrb[52].mxu0  ;;  %v10224_v57 = vpop.f32.mrb[51].mxu1 }
0x12a7   :  { %v10225_v58 = vadd.f32 %v10224_v57, %v10223_v54  ;;  %v10259_v2 = vpop.f32.mrb[53].mxu0 }
0x12a8   :  { %v10260_v4 = vadd.f32 %v10259_v2, %v10258_v56 }
0x12a9   :  { %v6076_v55 = vadd.f32 %v10225_v58, %v6006_v53 }
0x12ab   :  { %v6146_v5 = vadd.f32 %v10260_v4, %v6076_v55  ;;  %v6335_v4 = vld [vmem:[#allocation14 + $0x200] sm:$0xff] }
0x12ac   :  { %v6343_v55 = vld [vmem:[#allocation14 + $0x240] sm:$0xff] }
0x12ad   :  { %v6154_v39 = vadd.f32 %v7992_v35, %v6146_v5  ;;  %v6336_v35 = vld [vmem:[#allocation14 + $0x208] sm:$0xff]  ;;  %v12490_v5 = vcombine.high %v6335_v4, %v6343_v55 }
0x12af   :  { %v6155_v60 = vadd.f32 %v6154_v39, %v13700_v50  ;;  %v6344_v39 = vld [vmem:[#allocation14 + $0x248] sm:$0xff]  ;;  %11903 = vmatprep.subr.bf16.mxu0 %v12490_v5  ;;  %v6377_v5 = vld [vmem:[#allocation14 + $0x350] sm:$0xff] }
0x12b1   :  { %v6158_v6 = vsel %vm294_vm2, %v6155_v60, 0.0 }
0x12b2   :  { %6159 = vadd.xlane.f32.xlu0 %v6158_v6  ;;  %v12498_v6 = vcombine.high %v6336_v35, %v6344_v39 }
0x12b4   :  { %11919 = vmatprep.subr.bf16.mxu1 %v12498_v6 }
0x12c8   :  { %6260 = vrot.lane.b32.xlu0 %v7996_v9, %s13139_s18  ;;  %v12499_v9 = vcombine.low %v6336_v35, %v6344_v39  ;;  %v6369_v35 = vld [vmem:[#allocation14 + $0x310] sm:$0xff]  ;;  %v6370_v39 = vld [vmem:[#allocation14 + $0x318] sm:$0xff] }
0x12cc   :  { %6300 = vrot.lane.b32.xlu0 %v7999_v10, %s13139_s18  ;;  %v6351_v10 = vld [vmem:[#allocation14 + $0x280] sm:$0xff] }
0x133f   :  { %v6160_v12 = vpop.xlane.xlu0 %6159 }
0x1340   :  { %v6161_v13 = vmul.f32 0.015625, %v6160_v12  ;;  %v6359_v12 = vld [vmem:[#allocation14 + $0x2c0] sm:$0xff] }
0x1342   :  { %v6162_v21 = vsub.f32 %v6155_v60, %v6161_v13  ;;  %v12491_v60 = vcombine.low %v6335_v4, %v6343_v55  ;;  %v6352_v13 = vld [vmem:[#allocation14 + $0x288] sm:$0xff] }
0x1343   :  { %v6261_v59 = vpop.permute.xlu0 %6260 }
0x1344   :  { %v6163_v24 = vmul.f32 %v6162_v21, %v6162_v21  ;;  %11905 = vmatpush1.bf16.msra.mxu0 %v12491_v60  ;;  %v6378_v60 = vld [vmem:[#allocation14 + $0x358] sm:$0xff] }
0x1346   :  { %v6164_v50 = vsel %vm294_vm2, %v6163_v24, 0.0  ;;  %v6360_v24 = vld [vmem:[#allocation14 + $0x2c8] sm:$0xff] }
0x1347   :  { %6165 = vadd.xlane.f32.xlu1 %v6164_v50  ;;  %v6301_v33 = vpop.permute.xlu0 %6300  ;;  %v12493_v50 = vcombine.low %v6351_v10, %v6359_v12 }
0x1348   :  { %v6303_v34 = vadd.f32 %v6301_v33, %v13684_v49  ;;  %v7998_v49 = vld [vmem:[%s13952_s11 + $0x1a] ss:$0 sm:$0xff] }
0x13d4   :  { %v6166_v15 = vpop.xlane.xlu1 %6165 }
0x13d5   :  { %v6167_v25 = vmul.f32 0.015625, %v6166_v15  ;;  %v12500_v15 = vcombine.high %v6352_v13, %v6360_v24 }
0x13d7   :  { %v6168_v26 = vadd.f32 1e-05, %v6167_v25  ;;  %v12501_v25 = vcombine.low %v6352_v13, %v6360_v24  ;;  %v6393_v13 = vld [vmem:[#allocation14 + $0x3d0] sm:$0xff]  ;;  %v6394_v24 = vld [vmem:[#allocation14 + $0x3d8] sm:$0xff] }
0x13d9   :  { %12586 = vrsqrt.f32 %v6168_v26  ;;  %v6367_v26 = vld [vmem:[#allocation14 + $0x300] sm:$0xff] }
0x13e3   :  { %v12587_v62 = vpop.eup %12586 }
0x13e4   :  { %v6170_v22 = vmul.f32 %v12587_v62, %v6162_v21  ;;  %v12492_v21 = vcombine.high %v6351_v10, %v6359_v12  ;;  %v6375_v62 = vld [vmem:[#allocation14 + $0x340] sm:$0xff]  ;;  %v12518_v10 = vcombine.high %v6370_v39, %v6378_v60  ;;  %v6385_v12 = vld [vmem:[#allocation14 + $0x390] sm:$0xff] }
0x13e6   :  { %v6175_v11 = vmul.f32 %v7993_v27, %v6170_v22  ;;  %11907 = vmatprep.subr.bf16.mxu0 %v12492_v21  ;;  %v6368_v27 = vld [vmem:[#allocation14 + $0x308] sm:$0xff]  ;;  %v12494_v22 = vcombine.high %v6367_v26, %v6375_v62  ;;  %v6386_v21 = vld [vmem:[#allocation14 + $0x398] sm:$0xff] }
0x13e7   :  { %11909 = vmatpush1.bf16.msra.mxu0 %v12493_v50  ;;  %v12511_v50 = vcombine.low %v6369_v35, %v6377_v5 }
0x13e8   :  { %v6180_v3 = vadd.f32 %v7994_v23, %v6175_v11  ;;  %v6376_v23 = vld [vmem:[#allocation14 + $0x348] sm:$0xff]  ;;  %v12495_v11 = vcombine.low %v6367_v26, %v6375_v62  ;;  %11911 = vmatprep.subr.bf16.mxu0 %v12494_v22  ;;  %v12520_v26 = vcombine.high %v6386_v21, %v6394_v24  ;;  %v6339_v62 = vld [vmem:[#allocation14 + $0x220] sm:$0xff] }
0x13e9   :  { %v6340_v22 = vld [vmem:[#allocation14 + $0x228] sm:$0xff] }
0x13ea   :  { %10663 = vmatmul.mubr.msk.f32.vlgmr.msra.gmra.mrb[52].mxu1 %vm294_vm2, %v6180_v3 }
0x13eb   :  { %6751 = vmatprep.mubr.f32.mxu1 %v13154_v1  ;;  %11921 = vmatpush1.bf16.msra.mxu1 %v12499_v9  ;;  %v12510_v9 = vcombine.high %v6369_v35, %v6377_v5 }
0x13ec   :  { %11923 = vmatprep.subr.bf16.mxu1 %v12500_v15  ;;  %11913 = vmatpush1.bf16.msra.mxu0 %v12495_v11  ;;  %v12519_v15 = vcombine.low %v6370_v39, %v6378_v60  ;;  %v12513_v11 = vcombine.low %v6385_v12, %v6393_v13  ;;  %v6357_v60 = vld [vmem:[#allocation14 + $0x2b0] sm:$0xff] }
0x13ef   :  { %11925 = vmatpush1.bf16.msra.mxu1 %v12501_v25  ;;  %v12512_v25 = vcombine.high %v6385_v12, %v6393_v13 }
0x14bd   :  { %v6250_v40 = vpop.f32.mrb[52].mxu1 }
0x14be   :  { %v6263_v14 = vadd.f32 %v6261_v59, %v6250_v40  ;;  %v10664_v31 = vpop.f32.mrb[53].mxu1  ;;  %v12503_v59 = vcombine.low %v6368_v27, %v6376_v23  ;;  %v6383_v40 = vld [vmem:[#allocation14 + $0x380] sm:$0xff] }
0x14bf   :  { %v6384_v31 = vld [vmem:[#allocation14 + $0x388] sm:$0xff] }
0x14c0   :  { %6265 = vrot.lane.b32.xlu1 %v6263_v14, %s13139_s18  ;;  %v6391_v14 = vld [vmem:[#allocation14 + $0x3c0] sm:$0xff] }
0x1532   :  { %v6266_v61 = vpop.permute.xlu1 %6265 }
0x1533   :  { %v6268_v18 = vadd.f32 %v6266_v61, %v6180_v3  ;;  %v12502_v3 = vcombine.high %v6368_v27, %v6376_v23  ;;  %v12496_v61 = vcombine.high %v6383_v40, %v6391_v14  ;;  %v6347_v27 = vld [vmem:[#allocation14 + $0x260] sm:$0xff]  ;;  %v6348_v23 = vld [vmem:[#allocation14 + $0x268] sm:$0xff] }
0x1535   :  { %v6271_v32 = vsel %vm294_vm2, %v6268_v18, 0.0  ;;  %11927 = vmatprep.subr.bf16.mxu1 %v12502_v3  ;;  %11915 = vmatprep.subr.bf16.mxu0 %v12496_v61  ;;  %v12521_v3 = vcombine.low %v6386_v21, %v6394_v24  ;;  %v6356_v61 = vld [vmem:[#allocation14 + $0x2a8] sm:$0xff]  ;;  %v6373_v24 = vld [vmem:[#allocation14 + $0x330] sm:$0xff] }
0x1536   :  { %6272 = vadd.xlane.f32.xlu1 %v6271_v32  ;;  %11929 = vmatpush1.bf16.msra.mxu1 %v12503_v59  ;;  %v12497_v32 = vcombine.low %v6383_v40, %v6391_v14  ;;  %v12522_v59 = vcombine.high %v6339_v62, %v6347_v27  ;;  %v12530_v40 = vcombine.high %v6340_v22, %v6348_v23  ;;  %v6355_v14 = vld [vmem:[#allocation14 + $0x2a0] sm:$0xff] }
0x1538   :  { %11917 = vmatpush1.bf16.msra.mxu0 %v12497_v32  ;;  %v12523_v32 = vcombine.low %v6339_v62, %v6347_v27 }
0x1547   :  { %6305 = vrot.lane.b32.xlu1 %v6303_v34, %s13139_s18 }
0x15c3   :  { %v6273_v36 = vpop.xlane.xlu1 %6272 }
0x15c4   :  { %v6274_v38 = vmul.f32 0.015625, %v6273_v36  ;;  %v6337_v36 = vld [vmem:[#allocation14 + $0x210] sm:$0xff] }
0x15c6   :  { %v6275_v41 = vsub.f32 %v6268_v18, %v6274_v38  ;;  %v6392_v18 = vld [vmem:[#allocation14 + $0x3c8] sm:$0xff]  ;;  %v6345_v38 = vld [vmem:[#allocation14 + $0x250] sm:$0xff] }
0x15c7   :  { %v6306_v51 = vpop.permute.xlu1 %6305  ;;  %v12504_v33 = vcombine.high %v6384_v31, %v6392_v18  ;;  %v12505_v34 = vcombine.low %v6384_v31, %v6392_v18  ;;  %v6363_v31 = vld [vmem:[#allocation14 + $0x2e0] sm:$0xff]  ;;  %v6364_v18 = vld [vmem:[#allocation14 + $0x2e8] sm:$0xff] }
0x15c8   :  { %v6276_v42 = vmul.f32 %v6275_v41, %v6275_v41 }
0x15c9   :  { %11931 = vmatprep.subr.bf16.mxu1 %v12504_v33  ;;  %v12531_v33 = vcombine.low %v6340_v22, %v6348_v23  ;;  %v6389_v23 = vld [vmem:[#allocation14 + $0x3b0] sm:$0xff] }
0x15ca   :  { %v6277_v43 = vsel %vm294_vm2, %v6276_v42, 0.0  ;;  %11933 = vmatpush1.bf16.msra.mxu1 %v12505_v34  ;;  %v12506_v42 = vcombine.high %v6337_v36, %v6345_v38  ;;  %v12524_v34 = vcombine.high %v6355_v14, %v6363_v31 }
0x15cb   :  { %6278 = vadd.xlane.f32.xlu0 %v6277_v43  ;;  %v12507_v43 = vcombine.low %v6337_v36, %v6345_v38  ;;  %v12532_v36 = vcombine.high %v6356_v61, %v6364_v18  ;;  %v6371_v38 = vld [vmem:[#allocation14 + $0x320] sm:$0xff] }
0x15cc   :  { %11935 = vmatprep.subr.bf16.mxu0 %v12506_v42  ;;  %v6372_v42 = vld [vmem:[#allocation14 + $0x328] sm:$0xff] }
0x1658   :  { %v6279_v44 = vpop.xlane.xlu0 %6278 }
0x1659   :  { %v6280_v29 = vmul.f32 0.015625, %v6279_v44  ;;  %v6346_v44 = vld [vmem:[#allocation14 + $0x258] sm:$0xff] }
0x165b   :  { %v6281_v63 = vadd.f32 1e-05, %v6280_v29 }
0x165d   :  { %12588 = vrsqrt.f32 %v6281_v63 }
0x1667   :  { %v12589_v47 = vpop.eup %12588 }
0x1668   :  { %v6283_v28 = vmul.f32 %v12589_v47, %v6275_v41  ;;  %v6338_v41 = vld [vmem:[#allocation14 + $0x218] sm:$0xff] }
0x1669   :  { %v12514_v29 = vcombine.high %v6338_v41, %v6346_v44  ;;  %v12515_v63 = vcombine.low %v6338_v41, %v6346_v44  ;;  %v6379_v41 = vld [vmem:[#allocation14 + $0x360] sm:$0xff]  ;;  %v12525_v44 = vcombine.low %v6355_v14, %v6363_v31 }
0x166a   :  { %v6288_v48 = vmul.f32 %v7997_v37, %v6283_v28 }
0x166b   :  { %11951 = vmatprep.subr.bf16.mxu1 %v12514_v29  ;;  %v12533_v29 = vcombine.low %v6356_v61, %v6364_v18 }
0x166c   :  { %v6293_v30 = vadd.f32 %v7998_v49, %v6288_v48  ;;  %v8000_v48 = vld [vmem:[%s13952_s11 + $0x1c] ss:$0 sm:$0xff] }
0x166e   :  { %v6308_v52 = vadd.f32 %v6306_v51, %v6293_v30  ;;  %v8001_v30 = vld [vmem:[%s13952_s11 + $0x1d] ss:$0 sm:$0xff] }
0x1670   :  { %v6311_v53 = vsel %vm294_vm2, %v6308_v52, 0.0 }
0x1671   :  { %6312 = vadd.xlane.f32.xlu0 %v6311_v53  ;;  %v6361_v53 = vld [vmem:[#allocation14 + $0x2d0] sm:$0xff] }
0x16fe   :  { %v6313_v54 = vpop.xlane.xlu0 %6312 }
0x16ff   :  { %v6314_v56 = vmul.f32 0.015625, %v6313_v54  ;;  %v6354_v54 = vld [vmem:[#allocation14 + $0x298] sm:$0xff] }
0x1701   :  { %v13813_v57 = vsub.f32 %v6308_v52, %v6314_v56  ;;  %v6353_v52 = vld [vmem:[#allocation14 + $0x290] sm:$0xff]  ;;  %v6362_v56 = vld [vmem:[#allocation14 + $0x2d8] sm:$0xff] }
0x1702   :  { %v12508_v4 = vcombine.high %v6353_v52, %v6361_v53  ;;  %v12516_v55 = vcombine.high %v6354_v54, %v6362_v56  ;;  %v12517_v6 = vcombine.low %v6354_v54, %v6362_v56  ;;  %v6341_v54 = vld [vmem:[#allocation14 + $0x230] sm:$0xff] }
0x1703   :  { %v6316_v58 = vmul.f32 %v13813_v57, %v13813_v57  ;;  %v6349_v56 = vld [vmem:[#allocation14 + $0x270] sm:$0xff] }
0x1704   :  { %v12538_v5 = vcombine.high %v6341_v54, %v6349_v56 }
0x1705   :  { %v6317_v2 = vsel %vm294_vm2, %v6316_v58, 0.0 }
0x1706   :  { %6318 = vadd.xlane.f32.xlu0 %v6317_v2 }
0x1793   :  { %v6319_v47 = vpop.xlane.xlu0 %6318 }
0x1794   :  { %v6320_v37 = vmul.f32 0.015625, %v6319_v47 }
0x1796   :  { %v6321_v28 = vadd.f32 1e-05, %v6320_v37  ;;  %v6387_v37 = vld [vmem:[#allocation14 + $0x3a0] sm:$0xff] }
0x1798   :  { %12590 = vrsqrt.f32 %v6321_v28  ;;  %v6395_v28 = vld [vmem:[#allocation14 + $0x3e0] sm:$0xff] }
0x17a2   :  { %v12591_v49 = vpop.eup %12590 }
0x17a3   :  { %v6323_v51 = vmul.f32 %v12591_v49, %v13813_v57  ;;  %v12509_v57 = vcombine.low %v6353_v52, %v6361_v53  ;;  %v6388_v49 = vld [vmem:[#allocation14 + $0x3a8] sm:$0xff]  ;;  %v12528_v52 = vcombine.high %v6387_v37, %v6395_v28 }
0x17a5   :  { %v6328_v58 = vmul.f32 %v8000_v48, %v6323_v51  ;;  %v6396_v48 = vld [vmem:[#allocation14 + $0x3e8] sm:$0xff] }
0x17a6   :  { %v12536_v53 = vcombine.high %v6388_v49, %v6396_v48  ;;  %v12537_v35 = vcombine.low %v6388_v49, %v6396_v48  ;;  %v12745_v49 = vld [vmem:[#allocation16 + $0xd8] sm:$0xff]  }
0x17a7   :  { %v13825_v2 = vadd.f32 %v8001_v30, %v6328_v58  ;;  %v12527_v30 = vcombine.low %v6371_v38, %v6379_v41  ;;  %v6342_v58 = vld [vmem:[#allocation14 + $0x238] sm:$0xff] }
0x17a8   :  { %v12746_v48 = vld [vmem:[#allocation16 + $0x18] sm:$0xff]  }
0x17a9   :  { %8002 = vmatmul.mubr.msk.f32.vlgmr.msra.gmra.mrb[54].mxu0 %vm294_vm2, %v13825_v2  ;;  %8003 = vmatmul.mubr.msk.f32.vlgmr.msra.gmra.mrb[54].mxu1 %vm294_vm2, %v13825_v2 }
0x17aa   :  { %11937 = vmatpush1.bf16.msra.mxu0 %v12507_v43  ;;  %11953 = vmatpush1.bf16.msra.mxu1 %v12515_v63  ;;  %v6380_v43 = vld [vmem:[#allocation14 + $0x368] sm:$0xff]  ;;  %v12526_v63 = vcombine.high %v6371_v38, %v6379_v41  ;;  %v12735_v38 = vld [vmem:[#allocation16 + $0x80] sm:$0xff]  }
0x17ab   :  { %11939 = vmatprep.subr.bf16.mxu0 %v12508_v4  ;;  %11955 = vmatprep.subr.bf16.mxu1 %v12516_v55  ;;  %v12534_v47 = vcombine.high %v6372_v42, %v6380_v43  ;;  %v12535_v51 = vcombine.low %v6372_v42, %v6380_v43  ;;  %v6350_v4 = vld [vmem:[#allocation14 + $0x278] sm:$0xff]  ;;  %v12529_v55 = vcombine.low %v6387_v37, %v6395_v28  ;;  %v12736_v41 = vld [vmem:[#allocation16 + $0x48] sm:$0xff]   ;;  %v12743_v37 = vld [vmem:[#allocation16 + $0x90] sm:$0xff]  }
0x17ac   :  { %6822 = vmatprep.mubr.f32.mxu0 %v13154_v1  ;;  %6893 = vmatprep.mubr.f32.mxu1 %v13154_v1  ;;  %v12546_v39 = vcombine.high %v6342_v58, %v6350_v4  ;;  %v12547_v12 = vcombine.low %v6342_v58, %v6350_v4  ;;  %v12737_v42 = vld [vmem:[#allocation16 + $0xc8] sm:$0xff]   ;;  %v12744_v28 = vld [vmem:[#allocation16 + $0x58] sm:$0xff]  }
0x17ad   :  { %v12738_v43 = vld [vmem:[#allocation16 + $0x8] sm:$0xff]  }
0x17ae   :  { %11941 = vmatpush1.bf16.msra.mxu0 %v12509_v57  ;;  %11957 = vmatpush1.bf16.msra.mxu1 %v12517_v6  ;;  %v6365_v57 = vld [vmem:[#allocation14 + $0x2f0] sm:$0xff]  ;;  %v6358_v6 = vld [vmem:[#allocation14 + $0x2b8] sm:$0xff]  ;;  %v12753_v58 = vld [vmem:[#allocation16 + $0xe8] sm:$0xff]  }
0x17af   :  { %11943 = vmatprep.subr.bf16.mxu0 %v12510_v9  ;;  %11959 = vmatprep.subr.bf16.mxu1 %v12518_v10  ;;  %v6366_v9 = vld [vmem:[#allocation14 + $0x2f8] sm:$0xff]  ;;  %v12539_v10 = vcombine.low %v6341_v54, %v6349_v56  ;;  %v12540_v13 = vcombine.high %v6357_v60, %v6365_v57  ;;  %v12751_v54 = vld [vmem:[#allocation16 + $0xa0] sm:$0xff]   ;;  %v12752_v56 = vld [vmem:[#allocation16 + $0x68] sm:$0xff]  }
0x17b0   :  { %v12548_v21 = vcombine.high %v6358_v6, %v6366_v9  ;;  %v12549_v62 = vcombine.low %v6358_v6, %v6366_v9  ;;  %v12754_v4 = vld [vmem:[#allocation16 + $0x28] sm:$0xff]   ;;  %v12761_v6 = vld [vmem:[#allocation16 + $0xf8] sm:$0xff]  }
0x17b1   :  { %v12762_v9 = vld [vmem:[#allocation16 + $0x38] sm:$0xff]  }
0x17b2   :  { %11945 = vmatpush1.bf16.msra.mxu0 %v12511_v50  ;;  %11961 = vmatpush1.bf16.msra.mxu1 %v12519_v15  ;;  %v6381_v50 = vld [vmem:[#allocation14 + $0x370] sm:$0xff]  ;;  %v6374_v15 = vld [vmem:[#allocation14 + $0x338] sm:$0xff] }
0x17b3   :  { %11947 = vmatprep.subr.bf16.mxu0 %v12512_v25  ;;  %11963 = vmatprep.subr.bf16.mxu1 %v12520_v26  ;;  %v6382_v25 = vld [vmem:[#allocation14 + $0x378] sm:$0xff]  ;;  %v12541_v26 = vcombine.low %v6357_v60, %v6365_v57  ;;  %v12542_v27 = vcombine.high %v6373_v24, %v6381_v50  ;;  %v12759_v60 = vld [vmem:[#allocation16 + $0xb0] sm:$0xff]  }
0x17b4   :  { %v12550_v22 = vcombine.high %v6374_v15, %v6382_v25  ;;  %v12551_v14 = vcombine.low %v6374_v15, %v6382_v25  ;;  %v12760_v57 = vld [vmem:[#allocation16 + $0x78] sm:$0xff]  }
0x17b6   :  { %11949 = vmatpush1.bf16.msra.mxu0 %v12513_v11  ;;  %11965 = vmatpush1.bf16.msra.mxu1 %v12521_v3  ;;  %v6397_v11 = vld [vmem:[#allocation14 + $0x3f0] sm:$0xff]  ;;  %v6390_v3 = vld [vmem:[#allocation14 + $0x3b8] sm:$0xff] }
0x17b7   :  { %11967 = vmatprep.subr.bf16.mxu0 %v12522_v59  ;;  %11983 = vmatprep.subr.bf16.mxu1 %v12530_v40  ;;  %v6398_v59 = vld [vmem:[#allocation14 + $0x3f8] sm:$0xff]  ;;  %v12543_v40 = vcombine.low %v6373_v24, %v6381_v50  ;;  %v12544_v31 = vcombine.high %v6389_v23, %v6397_v11  ;;  %v12545_v18 = vcombine.low %v6389_v23, %v6397_v11 }
0x17b8   :  { %v12552_v61 = vcombine.high %v6390_v3, %v6398_v59  ;;  %v13853_v24 = vld [vmem:[#allocation19 + $0x3] ss:$4 sm:$0xff] }
0x17b9   :  { %8004 = vmatmul.mubr.msk.f32.vlgmr.msra.gmra.mrb[56].mxu0 %vm294_vm2, %v13825_v2  ;;  %8005 = vmatmul.mubr.msk.f32.vlgmr.msra.gmra.mrb[56].mxu1 %vm294_vm2, %v13825_v2  ;;  %v6536_v50 = vrot.slane %v13853_v24, %v13448_v16  ;;  %v6544_v15 = vrot.slane %v13853_v24, %v13451_v17  ;;  %v6540_v25 = vrot.slane %v13853_v24, %v13456_v19 }
0x17ba   :  { %11969 = vmatpush1.bf16.msra.mxu0 %v12523_v32  ;;  %11985 = vmatpush1.bf16.msra.mxu1 %v12531_v33  ;;  %v12553_v32 = vcombine.low %v6390_v3, %v6398_v59  ;;  %v12732_v33 = vld [vmem:[#allocation16 + $0x40] sm:$0xff]  }
0x17bb   :  { %11971 = vmatprep.subr.bf16.mxu0 %v12524_v34  ;;  %11987 = vmatprep.subr.bf16.mxu1 %v12532_v36  ;;  %v12733_v34 = vld [vmem:[#allocation16 + $0xc0] sm:$0xff]  }
0x17bc   :  { %6964 = vmatprep.mubr.f32.mxu0 %v13154_v1  ;;  %7035 = vmatprep.mubr.f32.mxu1 %v13154_v1  ;;  %v12734_v36 = vld [vmem:[#allocation16] sm:$0xff]  }
0x17be   :  { %11973 = vmatpush1.bf16.msra.mxu0 %v12525_v44  ;;  %11989 = vmatpush1.bf16.msra.mxu1 %v12533_v29  ;;  %v12739_v44 = vld [vmem:[#allocation16 + $0x88] sm:$0xff]   ;;  %v12740_v29 = vld [vmem:[#allocation16 + $0x50] sm:$0xff]  }
0x17bf   :  { %11975 = vmatprep.subr.bf16.mxu0 %v12526_v63  ;;  %11991 = vmatprep.subr.bf16.mxu1 %v12534_v47  ;;  %v12741_v63 = vld [vmem:[#allocation16 + $0xd0] sm:$0xff]  }
0x17c0   :  { %v12742_v47 = vld [vmem:[#allocation16 + $0x10] sm:$0xff]  }
0x17c2   :  { %11977 = vmatpush1.bf16.msra.mxu0 %v12527_v30  ;;  %11993 = vmatpush1.bf16.msra.mxu1 %v12535_v51  ;;  %v12747_v30 = vld [vmem:[#allocation16 + $0x98] sm:$0xff]   ;;  %v12748_v51 = vld [vmem:[#allocation16 + $0x60] sm:$0xff]  }
0x17c3   :  { %11979 = vmatprep.subr.bf16.mxu0 %v12528_v52  ;;  %11995 = vmatprep.subr.bf16.mxu1 %v12536_v53  ;;  %v12749_v52 = vld [vmem:[#allocation16 + $0xe0] sm:$0xff]  }
0x17c4   :  { %v12750_v53 = vld [vmem:[#allocation16 + $0x20] sm:$0xff]  }
0x17c6   :  { %11981 = vmatpush1.bf16.msra.mxu0 %v12529_v55  ;;  %11997 = vmatpush1.bf16.msra.mxu1 %v12537_v35  ;;  %v12755_v55 = vld [vmem:[#allocation16 + $0xa8] sm:$0xff]   ;;  %v12756_v35 = vld [vmem:[#allocation16 + $0x70] sm:$0xff]  }
0x17c7   :  { %11999 = vmatprep.subr.bf16.mxu0 %v12538_v5  ;;  %12015 = vmatprep.subr.bf16.mxu1 %v12546_v39  ;;  %v12757_v5 = vld [vmem:[#allocation16 + $0xf0] sm:$0xff]  }
0x17c8   :  { %v12758_v39 = vld [vmem:[#allocation16 + $0x30] sm:$0xff]  }
0x17c9   :  { %8006 = vmatmul.mubr.msk.f32.vlgmr.msra.gmra.mrb[58].mxu0 %vm294_vm2, %v13825_v2  ;;  %8007 = vmatmul.mubr.msk.f32.vlgmr.msra.gmra.mrb[58].mxu1 %vm294_vm2, %v13825_v2 }
0x17ca   :  { %12001 = vmatpush1.bf16.msra.mxu0 %v12539_v10  ;;  %12017 = vmatpush1.bf16.msra.mxu1 %v12547_v12  ;;  %v12763_v10 = vld [vmem:[#allocation16 + $0xb8] sm:$0xff]   ;;  %v12764_v12 = vld [vmem:[#allocation16 + $0x140] sm:$0xff]  }
0x17cb   :  { %12003 = vmatprep.subr.bf16.mxu0 %v12540_v13  ;;  %12019 = vmatprep.subr.bf16.mxu1 %v12548_v21  ;;  %v12765_v13 = vld [vmem:[#allocation16 + $0x1c0] sm:$0xff]   ;;  %v8010_v21 = vld [vmem:[%s13952_s11 + $0x1e] ss:$0 sm:$0xff] }
0x17cc   :  { %7106 = vmatprep.mubr.f32.mxu0 %v13154_v1  ;;  %7177 = vmatprep.mubr.f32.mxu1 %v13154_v1 }
0x17cd   :  { %7766 = vrot.lane.b32.xlu0 %v8010_v21, %s13139_s18  ;;  %v12788_v21 = vld [vmem:[#allocation16 + $0x170] sm:$0xff]  }
0x17ce   :  { %12005 = vmatpush1.bf16.msra.mxu0 %v12541_v26  ;;  %12021 = vmatpush1.bf16.msra.mxu1 %v12549_v62  ;;  %v6548_v26 = vrot.slane %v13853_v24, %v13459_v20 }
0x17cf   :  { %12007 = vmatprep.subr.bf16.mxu0 %v12542_v27  ;;  %12023 = vmatprep.subr.bf16.mxu1 %v12550_v22 }
0x17d2   :  { %12009 = vmatpush1.bf16.msra.mxu0 %v12543_v40  ;;  %12025 = vmatpush1.bf16.msra.mxu1 %v12551_v14 }
0x17d3   :  { %12011 = vmatprep.subr.bf16.mxu0 %v12544_v31  ;;  %12027 = vmatprep.subr.bf16.mxu1 %v12552_v61 }
0x17d6   :  { %12013 = vmatpush1.bf16.msra.mxu0 %v12545_v18  ;;  %12029 = vmatpush1.bf16.msra.mxu1 %v12553_v32  ;;  %v12766_v32 = vld [vmem:[#allocation16 + $0x100] sm:$0xff]  }
0x17d7   :  { %12031 = vmatprep.subr.bf16.mxu0 %v12732_v33  ;;  %12063 = vmatprep.subr.bf16.mxu1 %v12733_v34  ;;  %v12767_v33 = vld [vmem:[#allocation16 + $0x180] sm:$0xff]   ;;  %v12768_v34 = vld [vmem:[#allocation16 + $0x148] sm:$0xff]  }
0x17d9   :  { %8008 = vmatmul.mubr.msk.f32.vlgmr.msra.gmra.mrb[60].mxu0 %vm294_vm2, %v13825_v2  ;;  %8009 = vmatmul.mubr.msk.f32.vlgmr.msra.gmra.mrb[60].mxu1 %vm294_vm2, %v13825_v2 }
0x17da   :  { %12033 = vmatpush3.bf16.msra.mxu0 %v12734_v36  ;;  %12065 = vmatpush3.bf16.msra.mxu1 %v12735_v38  ;;  %v12769_v36 = vld [vmem:[#allocation16 + $0x1c8] sm:$0xff]  }
0x17db   :  { %12035 = vmatprep.subr.bf16.mxu0 %v12736_v41  ;;  %12067 = vmatprep.subr.bf16.mxu1 %v12737_v42  ;;  %v12770_v38 = vld [vmem:[#allocation16 + $0x108] sm:$0xff]   ;;  %v12772_v42 = vld [vmem:[#allocation16 + $0x150] sm:$0xff]  }
0x17dc   :  { %v12771_v41 = vld [vmem:[#allocation16 + $0x188] sm:$0xff]  }
0x17de   :  { %12037 = vmatpush3.bf16.msra.mxu0 %v12738_v43  ;;  %12069 = vmatpush3.bf16.msra.mxu1 %v12739_v44  ;;  %v12773_v43 = vld [vmem:[#allocation16 + $0x1d0] sm:$0xff]   ;;  %v6556_v44 = vrot.slane %v13853_v24, %v13470_v45 }
0x17df   :  { %12039 = vmatprep.subr.bf16.mxu0 %v12740_v29  ;;  %12071 = vmatprep.subr.bf16.mxu1 %v12741_v63  ;;  %v6564_v29 = vrot.slane %v13853_v24, %v13473_v46 }
0x17e2   :  { %12041 = vmatpush3.bf16.msra.mxu0 %v12742_v47  ;;  %12073 = vmatpush3.bf16.msra.mxu1 %v12743_v37  ;;  %v12774_v37 = vld [vmem:[#allocation16 + $0x110] sm:$0xff]  }
0x17e3   :  { %12043 = vmatprep.subr.bf16.mxu0 %v12744_v28  ;;  %12075 = vmatprep.subr.bf16.mxu1 %v12745_v49  ;;  %v12775_v28 = vld [vmem:[#allocation16 + $0x190] sm:$0xff]  }
0x17e6   :  { %12045 = vmatpush3.bf16.msra.mxu0 %v12746_v48  ;;  %12077 = vmatpush3.bf16.msra.mxu1 %v12747_v30  ;;  %v12776_v30 = vld [vmem:[#allocation16 + $0x158] sm:$0xff]  }
0x17e7   :  { %12047 = vmatprep.subr.bf16.mxu0 %v12748_v51  ;;  %12079 = vmatprep.subr.bf16.mxu1 %v12749_v52  ;;  %v12777_v51 = vld [vmem:[#allocation16 + $0x1d8] sm:$0xff]  }
0x17ea   :  { %12049 = vmatpush3.bf16.msra.mxu0 %v12750_v53  ;;  %12081 = vmatpush3.bf16.msra.mxu1 %v12751_v54 }
0x17eb   :  { %12051 = vmatprep.subr.bf16.mxu0 %v12752_v56  ;;  %12083 = vmatprep.subr.bf16.mxu1 %v12753_v58  ;;  %v12778_v58 = vld [vmem:[#allocation16 + $0x118] sm:$0xff]  }
0x17ee   :  { %12053 = vmatpush3.bf16.msra.mxu0 %v12754_v4  ;;  %12085 = vmatpush3.bf16.msra.mxu1 %v12755_v55  ;;  %v12779_v4 = vld [vmem:[#allocation16 + $0x198] sm:$0xff]   ;;  %v12780_v55 = vld [vmem:[#allocation16 + $0x160] sm:$0xff]  }
0x17ef   :  { %12055 = vmatprep.subr.bf16.mxu0 %v12756_v35  ;;  %12087 = vmatprep.subr.bf16.mxu1 %v12757_v5  ;;  %v12781_v35 = vld [vmem:[#allocation16 + $0x1e0] sm:$0xff]  }
0x17f0   :  { %v12782_v5 = vld [vmem:[#allocation16 + $0x120] sm:$0xff]  }
0x17f2   :  { %12057 = vmatpush3.bf16.msra.mxu0 %v12758_v39  ;;  %12089 = vmatpush3.bf16.msra.mxu1 %v12759_v60  ;;  %v12783_v39 = vld [vmem:[#allocation16 + $0x1a0] sm:$0xff]   ;;  %v12784_v60 = vld [vmem:[#allocation16 + $0x168] sm:$0xff]  }
0x17f3   :  { %12059 = vmatprep.subr.bf16.mxu0 %v12760_v57  ;;  %12091 = vmatprep.subr.bf16.mxu1 %v12761_v6  ;;  %v12785_v57 = vld [vmem:[#allocation16 + $0x1e8] sm:$0xff]  }
0x17f4   :  { %v13867_v6 = vld [vmem:[#allocation19 + $0x23] ss:$4 sm:$0xff] }
0x17f6   :  { %12061 = vmatpush3.bf16.msra.mxu0 %v12762_v9  ;;  %12093 = vmatpush3.bf16.msra.mxu1 %v12763_v10  ;;  %v12786_v9 = vld [vmem:[#allocation16 + $0x128] sm:$0xff]  }
0x17f7   :  { %12095 = vmatprep.subr.bf16.mxu0 %v12764_v12  ;;  %12127 = vmatprep.subr.bf16.mxu1 %v12765_v13  ;;  %v12787_v10 = vld [vmem:[#allocation16 + $0x1a8] sm:$0xff]   ;;  %v6552_v12 = vrot.slane %v13853_v24, %v13480_v7  ;;  %v6560_v13 = vrot.slane %v13853_v24, %v13483_v8 }
0x187c   :  { %v6682_v62 = vpop.f32.mrb[54].mxu0  ;;  %v6753_v27 = vpop.f32.mrb[54].mxu1 }
0x187d   :  { %v6683_v22 = vadd.f32 %v6682_v62, %v6536_v50  ;;  %v6754_v23 = vadd.f32 %v6753_v27, %v6544_v15  ;;  %v6684_v11 = vpop.f32.mrb[55].mxu0  ;;  %v6755_v3 = vpop.f32.mrb[55].mxu1  ;;  %v12789_v50 = vld [vmem:[#allocation16 + $0x1f0] sm:$0xff]   ;;  %v6572_v15 = vrot.slane %v13867_v6, %v13456_v19 }
0x187e   :  { %v6685_v59 = vadd.f32 %v6684_v11, %v6540_v25  ;;  %v6756_v40 = vadd.f32 %v6755_v3, %v6548_v26  ;;  %v6580_v25 = vrot.slane %v13867_v6, %v13459_v20  ;;  %v12790_v27 = vld [vmem:[#allocation16 + $0x130] sm:$0xff]   ;;  %v12795_v20 = vld [vmem:[#allocation16 + $0x1b8] sm:$0xff]  }
0x187f   :  { %v7184_v61 = vmax.f32 %v6683_v22, 0.0  ;;  %v7186_v18 = vmax.f32 %v6754_v23, 0.0  ;;  %v12791_v22 = vld [vmem:[#allocation16 + $0x1b0] sm:$0xff]  }
0x1880   :  { %v7185_v14 = vmax.f32 %v6685_v59, 0.0  ;;  %v7187_v31 = vmax.f32 %v6756_v40, 0.0  ;;  %v12792_v59 = vld [vmem:[#allocation16 + $0x178] sm:$0xff]  }
0x1881   :  { %v12793_v40 = vld [vmem:[#allocation16 + $0x1f8] sm:$0xff]  }
0x1882   :  { %7264 = vmatprep.mubr.f32.mxu0 %v7185_v14  ;;  %7334 = vmatprep.mubr.f32.mxu1 %v7187_v31  ;;  %v12794_v31 = vld [vmem:[#allocation16 + $0x138] sm:$0xff]  }
0x1883   :  { %7265 = vmatmul.mubr.f32.vlgmr.msra.gmra.mrb[62].mxu0 %v7184_v61  ;;  %7335 = vmatmul.mubr.f32.vlgmr.msra.gmra.mrb[62].mxu1 %v7186_v18 }
0x1884   :  { %12097 = vmatpush3.bf16.msra.mxu0 %v12766_v32  ;;  %12129 = vmatpush3.bf16.msra.mxu1 %v12767_v33  ;;  %v12796_v32 = vld [vmem:[#allocation16 + $0x240] sm:$0xff]  }
0x1885   :  { %12099 = vmatprep.subr.bf16.mxu0 %v12768_v34  ;;  %12131 = vmatprep.subr.bf16.mxu1 %v12769_v36  ;;  %v12797_v33 = vld [vmem:[#allocation16 + $0x2c0] sm:$0xff]  }
0x1888   :  { %12101 = vmatpush3.bf16.msra.mxu0 %v12770_v38  ;;  %12133 = vmatpush3.bf16.msra.mxu1 %v12771_v41  ;;  %v12798_v38 = vld [vmem:[#allocation16 + $0x200] sm:$0xff]  }
0x1889   :  { %12103 = vmatprep.subr.bf16.mxu0 %v12772_v42  ;;  %12135 = vmatprep.subr.bf16.mxu1 %v12773_v43  ;;  %v12799_v41 = vld [vmem:[#allocation16 + $0x280] sm:$0xff]   ;;  %v12800_v42 = vld [vmem:[#allocation16 + $0x248] sm:$0xff]  }
0x188a   :  { %v12801_v43 = vld [vmem:[#allocation16 + $0x2c8] sm:$0xff]  }
0x188c   :  { %v6824_v63 = vpop.f32.mrb[56].mxu0  ;;  %v6895_v47 = vpop.f32.mrb[56].mxu1  ;;  %12105 = vmatpush3.bf16.msra.mxu0 %v12774_v37  ;;  %12137 = vmatpush3.bf16.msra.mxu1 %v12775_v28  ;;  %v12805_v37 = vld [vmem:[#allocation16 + $0x2d0] sm:$0xff]  }
0x188d   :  { %v6826_v49 = vpop.f32.mrb[57].mxu0  ;;  %v6897_v48 = vpop.f32.mrb[57].mxu1  ;;  %12107 = vmatprep.subr.bf16.mxu0 %v12776_v30  ;;  %12139 = vmatprep.subr.bf16.mxu1 %v12777_v51  ;;  %v6825_v23 = vadd.f32 %v6824_v63, %v6552_v12  ;;  %v6896_v24 = vadd.f32 %v6895_v47, %v6560_v13  ;;  %v12804_v63 = vld [vmem:[#allocation16 + $0x250] sm:$0xff]   ;;  %v6592_v47 = vrot.slane %v13867_v6, %v13483_v8  ;;  %v12811_v8 = vld [vmem:[#allocation16 + $0x298] sm:$0xff]  }
0x188e   :  { %v6827_v52 = vadd.f32 %v6826_v49, %v6556_v44  ;;  %v6898_v53 = vadd.f32 %v6897_v48, %v6564_v29  ;;  %v12802_v44 = vld [vmem:[#allocation16 + $0x208] sm:$0xff]   ;;  %v12806_v48 = vld [vmem:[#allocation16 + $0x210] sm:$0xff]   ;;  %v6576_v13 = vrot.slane %v13867_v6, %v13451_v17 }
0x188f   :  { %v7188_v61 = vmax.f32 %v6825_v23, 0.0  ;;  %v7190_v18 = vmax.f32 %v6896_v24, 0.0  ;;  %v12803_v29 = vld [vmem:[#allocation16 + $0x288] sm:$0xff]   ;;  %v12807_v51 = vld [vmem:[#allocation16 + $0x290] sm:$0xff]   ;;  %v12825_v24 = vld [vmem:[#allocation16 + $0x2f8] sm:$0xff]  }
0x1890   :  { %v7189_v54 = vmax.f32 %v6827_v52, 0.0  ;;  %v7191_v56 = vmax.f32 %v6898_v53, 0.0  ;;  %12109 = vmatpush3.bf16.msra.mxu0 %v12778_v58  ;;  %12141 = vmatpush3.bf16.msra.mxu1 %v12779_v4  ;;  %v12810_v58 = vld [vmem:[#allocation16 + $0x218] sm:$0xff]   ;;  %v12812_v4 = vld [vmem:[#allocation16 + $0x260] sm:$0xff]   ;;  %v12820_v12 = vld [vmem:[#allocation16 + $0x270] sm:$0xff]  }
0x1891   :  { %12111 = vmatprep.subr.bf16.mxu0 %v12780_v55  ;;  %12143 = vmatprep.subr.bf16.mxu1 %v12781_v35  ;;  %v12813_v55 = vld [vmem:[#allocation16 + $0x2e0] sm:$0xff]  }
0x1892   :  { %7404 = vmatprep.mubr.f32.mxu0 %v7189_v54  ;;  %7474 = vmatprep.mubr.f32.mxu1 %v7191_v56  ;;  %v12808_v54 = vld [vmem:[#allocation16 + $0x258] sm:$0xff]   ;;  %v12814_v35 = vld [vmem:[#allocation16 + $0x220] sm:$0xff]  }
0x1893   :  { %v12809_v56 = vld [vmem:[#allocation16 + $0x2d8] sm:$0xff]  }
0x1894   :  { %12113 = vmatpush3.bf16.msra.mxu0 %v12782_v5  ;;  %12145 = vmatpush3.bf16.msra.mxu1 %v12783_v39  ;;  %v12815_v5 = vld [vmem:[#allocation16 + $0x2a0] sm:$0xff]   ;;  %v12816_v39 = vld [vmem:[#allocation16 + $0x268] sm:$0xff]  }
0x1895   :  { %12115 = vmatprep.subr.bf16.mxu0 %v12784_v60  ;;  %12147 = vmatprep.subr.bf16.mxu1 %v12785_v57  ;;  %v12817_v60 = vld [vmem:[#allocation16 + $0x2e8] sm:$0xff]  }
0x1896   :  { %v12818_v57 = vld [vmem:[#allocation16 + $0x228] sm:$0xff]  }
0x1898   :  { %12117 = vmatpush3.bf16.msra.mxu0 %v12786_v9  ;;  %12149 = vmatpush3.bf16.msra.mxu1 %v12787_v10  ;;  %v6568_v9 = vrot.slane %v13867_v6, %v13448_v16  ;;  %v12819_v10 = vld [vmem:[#allocation16 + $0x2a8] sm:$0xff]   ;;  %v12823_v16 = vld [vmem:[#allocation16 + $0x2b0] sm:$0xff]  }
0x1899   :  { %12119 = vmatprep.subr.bf16.mxu0 %v12788_v21  ;;  %12151 = vmatprep.subr.bf16.mxu1 %v12789_v50  ;;  %v12821_v21 = vld [vmem:[#allocation16 + $0x2f0] sm:$0xff]   ;;  %v6588_v50 = vrot.slane %v13867_v6, %v13470_v45 }
0x189c   :  { %v13877_v26 = vpop.f32.mrb[58].mxu0  ;;  %v13879_v62 = vpop.f32.mrb[58].mxu1  ;;  %12121 = vmatpush3.bf16.msra.mxu0 %v12790_v27  ;;  %12153 = vmatpush3.bf16.msra.mxu1 %v12791_v22  ;;  %v12824_v22 = vld [vmem:[#allocation16 + $0x278] sm:$0xff]  }
0x189d   :  { %v6968_v11 = vpop.f32.mrb[59].mxu0  ;;  %v7039_v3 = vpop.f32.mrb[59].mxu1  ;;  %12123 = vmatprep.subr.bf16.mxu0 %v12792_v59  ;;  %12155 = vmatprep.subr.bf16.mxu1 %v12793_v40  ;;  %v6967_v27 = vadd.f32 %v13877_v26, %v6568_v9  ;;  %v7038_v23 = vadd.f32 %v13879_v62, %v6576_v13  ;;  %v12827_v59 = vld [vmem:[#allocation16 + $0x2b8] sm:$0xff]   ;;  %v12831_v62 = vld [vmem:[#allocation16 + $0x380] sm:$0xff]  }
0x189e   :  { %v6969_v19 = vadd.f32 %v6968_v11, %v6572_v15  ;;  %v7040_v14 = vadd.f32 %v7039_v3, %v6580_v25  ;;  %v6596_v15 = vrot.slane %v13867_v6, %v13473_v46  ;;  %v12822_v25 = vld [vmem:[#allocation16 + $0x230] sm:$0xff]   ;;  %v12826_v3 = vld [vmem:[#allocation16 + $0x238] sm:$0xff]   ;;  %v12828_v46 = vld [vmem:[#allocation16 + $0x340] sm:$0xff]  }
0x189f   :  { %v7192_v45 = vmax.f32 %v6967_v27, 0.0  ;;  %v7194_v40 = vmax.f32 %v7038_v23, 0.0 }
0x18a0   :  { %12125 = vmatpush3.bf16.msra.mxu0 %v12794_v31  ;;  %12157 = vmatpush3.bf16.msra.mxu1 %v12795_v20  ;;  %v7193_v34 = vmax.f32 %v6969_v19, 0.0  ;;  %v7195_v36 = vmax.f32 %v7040_v14, 0.0  ;;  %v12829_v19 = vld [vmem:[#allocation16 + $0x3c0] sm:$0xff]   ;;  %v12832_v20 = vld [vmem:[#allocation16 + $0x348] sm:$0xff]  }
0x18a1   :  { %12159 = vmatprep.subr.bf16.mxu0 %v12796_v32  ;;  %12191 = vmatprep.subr.bf16.mxu1 %v12797_v33  ;;  %v12830_v31 = vld [vmem:[#allocation16 + $0x300] sm:$0xff]   ;;  %v12835_v32 = vld [vmem:[#allocation16 + $0x388] sm:$0xff]   ;;  %v12836_v33 = vld [vmem:[#allocation16 + $0x350] sm:$0xff]  }
0x18a3   :  { %7405 = vmatmul.mubr.f32.vlgmr.msra.gmra.mrb[64].mxu0 %v7188_v61  ;;  %7475 = vmatmul.mubr.f32.vlgmr.msra.gmra.mrb[64].mxu1 %v7190_v18  ;;  %v12833_v61 = vld [vmem:[#allocation16 + $0x3c8] sm:$0xff]  }
0x18a4   :  { %12161 = vmatpush3.bf16.msra.mxu0 %v12798_v38  ;;  %7544 = vmatprep.mubr.f32.mxu0 %v7193_v34  ;;  %v12834_v18 = vld [vmem:[#allocation16 + $0x308] sm:$0xff]   ;;  %v12837_v34 = vld [vmem:[#allocation16 + $0x3d0] sm:$0xff]  }
0x18a5   :  { %12193 = vmatpush3.bf16.msra.mxu1 %v12799_v41  ;;  %7614 = vmatprep.mubr.f32.mxu1 %v7195_v36  ;;  %v12838_v36 = vld [vmem:[#allocation16 + $0x310] sm:$0xff]   ;;  %v12840_v41 = vld [vmem:[#allocation16 + $0x358] sm:$0xff]  }
0x18a6   :  { %12163 = vmatprep.subr.bf16.mxu0 %v12800_v42  ;;  %12195 = vmatprep.subr.bf16.mxu1 %v12801_v43  ;;  %v12839_v38 = vld [vmem:[#allocation16 + $0x390] sm:$0xff]   ;;  %v12841_v42 = vld [vmem:[#allocation16 + $0x3d8] sm:$0xff]  }
0x18a7   :  { %v12842_v43 = vld [vmem:[#allocation16 + $0x318] sm:$0xff]  }
0x18a8   :  { %12165 = vmatpush3.bf16.msra.mxu0 %v12802_v44  ;;  %v12843_v44 = vld [vmem:[#allocation16 + $0x398] sm:$0xff]  }
0x18a9   :  { %12197 = vmatpush3.bf16.msra.mxu1 %v12803_v29  ;;  %12167 = vmatprep.subr.bf16.mxu0 %v12804_v63  ;;  %v12844_v29 = vld [vmem:[#allocation16 + $0x360] sm:$0xff]  }
0x18aa   :  { %12199 = vmatprep.subr.bf16.mxu1 %v12805_v37  ;;  %v12845_v63 = vld [vmem:[#allocation16 + $0x3e0] sm:$0xff]  }
0x18ab   :  { %v12847_v37 = vld [vmem:[#allocation16 + $0x3a0] sm:$0xff]  }
0x18ac   :  { %v13883_v28 = vpop.f32.mrb[60].mxu0  ;;  %v7179_v49 = vpop.f32.mrb[60].mxu1  ;;  %12169 = vmatpush3.bf16.msra.mxu0 %v12806_v48  ;;  %v12849_v48 = vld [vmem:[#allocation16 + $0x3e8] sm:$0xff]  }
0x18ad   :  { %v13885_v30 = vadd.f32 %v7179_v49, %v6592_v47  ;;  %12201 = vmatpush3.bf16.msra.mxu1 %v12807_v51  ;;  %v7110_v52 = vpop.f32.mrb[61].mxu0  ;;  %v7181_v53 = vpop.f32.mrb[61].mxu1  ;;  %12171 = vmatprep.subr.bf16.mxu0 %v12808_v54  ;;  %v12846_v47 = vld [vmem:[#allocation16 + $0x320] sm:$0xff]   ;;  %v12848_v49 = vld [vmem:[#allocation16 + $0x368] sm:$0xff]   ;;  %v12852_v54 = vld [vmem:[#allocation16 + $0x370] sm:$0xff]  }
0x18ae   :  { %12203 = vmatprep.subr.bf16.mxu1 %v12809_v56  ;;  %v7111_v17 = vadd.f32 %v7110_v52, %v6588_v50  ;;  %v7182_v11 = vadd.f32 %v7181_v53, %v6596_v15  ;;  %v12850_v51 = vld [vmem:[#allocation16 + $0x328] sm:$0xff]   ;;  %v6584_v52 = vrot.slane %v13867_v6, %v13480_v7  ;;  %v12853_v56 = vld [vmem:[#allocation16 + $0x3f0] sm:$0xff]   ;;  %v12859_v7 = vld [vmem:[#allocation16 + $0x3b8] sm:$0xff]  }
0x18af   :  { %v12851_v53 = vld [vmem:[#allocation16 + $0x3a8] sm:$0xff]   ;;  %v7198_v6 = vmax.f32 %v13885_v30, 0.0 }
0x18b0   :  { %12173 = vmatpush3.bf16.msra.mxu0 %v12810_v58  ;;  %v7197_v26 = vmax.f32 %v7111_v17, 0.0  ;;  %v7199_v14 = vmax.f32 %v7182_v11, 0.0  ;;  %v12854_v58 = vld [vmem:[#allocation16 + $0x330] sm:$0xff]  }
0x18b1   :  { %12205 = vmatpush3.bf16.msra.mxu1 %v12811_v8  ;;  %12175 = vmatprep.subr.bf16.mxu0 %v12812_v4  ;;  %v7109_v8 = vadd.f32 %v13883_v28, %v6584_v52  ;;  %v12855_v4 = vld [vmem:[#allocation16 + $0x3b0] sm:$0xff]  }
0x18b2   :  { %12207 = vmatprep.subr.bf16.mxu1 %v12813_v55  ;;  %v12856_v55 = vld [vmem:[#allocation16 + $0x378] sm:$0xff]  }
0x18b4   :  { %12177 = vmatpush3.bf16.msra.mxu0 %v12814_v35  ;;  %v12857_v35 = vld [vmem:[#allocation16 + $0x3f8] sm:$0xff]  }
0x18b5   :  { %12209 = vmatpush3.bf16.msra.mxu1 %v12815_v5  ;;  %12179 = vmatprep.subr.bf16.mxu0 %v12816_v39  ;;  %v12858_v5 = vld [vmem:[#allocation16 + $0x338] sm:$0xff]   ;;  %v7196_v39 = vmax.f32 %v7109_v8, 0.0 }
0x18b6   :  { %12211 = vmatprep.subr.bf16.mxu1 %v12817_v60 }
0x18b8   :  { %12181 = vmatpush3.bf16.msra.mxu0 %v12818_v57 }
0x18b9   :  { %12213 = vmatpush3.bf16.msra.mxu1 %v12819_v10  ;;  %12183 = vmatprep.subr.bf16.mxu0 %v12820_v12 }
0x18ba   :  { %12215 = vmatprep.subr.bf16.mxu1 %v12821_v21 }
0x18bc   :  { %12185 = vmatpush3.bf16.msra.mxu0 %v12822_v25 }
0x18bd   :  { %12217 = vmatpush3.bf16.msra.mxu1 %v12823_v16  ;;  %12187 = vmatprep.subr.bf16.mxu0 %v12824_v22 }
0x18be   :  { %12219 = vmatprep.subr.bf16.mxu1 %v12825_v24 }
0x18c0   :  { %12189 = vmatpush3.bf16.msra.mxu0 %v12826_v3 }
0x18c1   :  { %12221 = vmatpush3.bf16.msra.mxu1 %v12827_v59  ;;  %12223 = vmatprep.subr.bf16.mxu0 %v12828_v46 }
0x18c2   :  { %12255 = vmatprep.subr.bf16.mxu1 %v12829_v19 }
0x18c3   :  { %7545 = vmatmul.mubr.f32.vlgmr.msra.gmra.mrb[66].mxu0 %v7192_v45 }
0x18c4   :  { %7615 = vmatmul.mubr.f32.vlgmr.msra.gmra.mrb[66].mxu1 %v7194_v40  ;;  %12225 = vmatpush3.bf16.msra.mxu0 %v12830_v31 }
0x18c5   :  { %7684 = vmatprep.mubr.f32.mxu0 %v7197_v26  ;;  %12257 = vmatpush3.bf16.msra.mxu1 %v12831_v62 }
0x18c6   :  { %7754 = vmatprep.mubr.f32.mxu1 %v7199_v14  ;;  %12227 = vmatprep.subr.bf16.mxu0 %v12832_v20  ;;  %v7767_v20 = vpop.permute.xlu0 %7766 }
0x18c7   :  { %12259 = vmatprep.subr.bf16.mxu1 %v12833_v61 }
0x18c8   :  { %12229 = vmatpush3.bf16.msra.mxu0 %v12834_v18 }
0x18c9   :  { %12261 = vmatpush3.bf16.msra.mxu1 %v12835_v32  ;;  %12231 = vmatprep.subr.bf16.mxu0 %v12836_v33 }
0x18ca   :  { %12263 = vmatprep.subr.bf16.mxu1 %v12837_v34 }
0x18cc   :  { %12233 = vmatpush3.bf16.msra.mxu0 %v12838_v36 }
0x18cd   :  { %12265 = vmatpush3.bf16.msra.mxu1 %v12839_v38  ;;  %12235 = vmatprep.subr.bf16.mxu0 %v12840_v41 }
0x18ce   :  { %12267 = vmatprep.subr.bf16.mxu1 %v12841_v42 }
0x18d0   :  { %12237 = vmatpush3.bf16.msra.mxu0 %v12842_v43 }
0x18d1   :  { %12269 = vmatpush3.bf16.msra.mxu1 %v12843_v44  ;;  %12239 = vmatprep.subr.bf16.mxu0 %v12844_v29 }
0x18d2   :  { %12271 = vmatprep.subr.bf16.mxu1 %v12845_v63 }
0x18d4   :  { %12241 = vmatpush3.bf16.msra.mxu0 %v12846_v47 }
0x18d5   :  { %12273 = vmatpush3.bf16.msra.mxu1 %v12847_v37  ;;  %12243 = vmatprep.subr.bf16.mxu0 %v12848_v49  ;;  %v8011_v37 = vld [vmem:[%s13952_s11 + $0x1f] ss:$0 sm:$0xff]  ;;  %v8012_v49 = vld [vmem:[%s13952_s11 + $0x20] ss:$0 sm:$0xff] }
0x18d6   :  { %12275 = vmatprep.subr.bf16.mxu1 %v12849_v48 }
0x18d8   :  { %12245 = vmatpush3.bf16.msra.mxu0 %v12850_v51 }
0x18d9   :  { %12277 = vmatpush3.bf16.msra.mxu1 %v12851_v53  ;;  %12247 = vmatprep.subr.bf16.mxu0 %v12852_v54 }
0x18da   :  { %12279 = vmatprep.subr.bf16.mxu1 %v12853_v56 }
0x18dc   :  { %12249 = vmatpush3.bf16.msra.mxu0 %v12854_v58 }
0x18dd   :  { %12281 = vmatpush3.bf16.msra.mxu1 %v12855_v4  ;;  %12251 = vmatprep.subr.bf16.mxu0 %v12856_v55  ;;  %v9098_v4 = vld [vmem:[#allocation17] sm:$0xff]   ;;  %v9377_v55 = vld [vmem:[#allocation17 + $0x8] sm:$0xff]  }
0x18de   :  { %12283 = vmatprep.subr.bf16.mxu1 %v12857_v35  ;;  %v9378_v35 = vld [vmem:[#allocation17 + $0x10] sm:$0xff]  }
0x18e0   :  { %12253 = vmatpush3.bf16.msra.mxu0 %v12858_v5  ;;  %v9379_v5 = vld [vmem:[#allocation17 + $0x18] sm:$0xff]  }
0x18e1   :  { %12285 = vmatpush3.bf16.msra.mxu1 %v12859_v7  ;;  %12286 = vmatprep.subr.bf16.mxu0 %v13152_v0 }
0x18e3   :  { %7685 = vmatmul.mubr.f32.vlgmr.msra.gmra.mrb[68].mxu0 %v7196_v39 }
0x18e4   :  { %7755 = vmatmul.mubr.f32.vlgmr.msra.gmra.mrb[68].mxu1 %v7198_v6  ;;  %10681 = vmatprep.mubr.msk.f32.mxu0 %vm13153_vm0, %v13154_v1 }
0x18e5   :  { %12288 = vmatpush3.bf16.msra.mxu0 %v9098_v4 }
0x18e6   :  { %12289 = vmatprep.subr.bf16.mxu0 %v13152_v0 }
0x18e9   :  { %12291 = vmatpush3.bf16.msra.mxu0 %v9377_v55 }
0x18ea   :  { %12292 = vmatprep.subr.bf16.mxu0 %v13152_v0 }
0x18ed   :  { %12294 = vmatpush3.bf16.msra.mxu0 %v9378_v35 }
0x18ee   :  { %12295 = vmatprep.subr.bf16.mxu0 %v13152_v0  ;;  %v8015_v0 = vld [vmem:[%s13951_s10] ss:$0 sm:$0xff] }
0x18f1   :  { %12297 = vmatpush3.bf16.msra.mxu0 %v9379_v5 }
0x1956   :  { %v10302_v28 = vpop.f32.mrb[62].mxu0  ;;  %v10337_v60 = vpop.f32.mrb[62].mxu1 }
0x1957   :  { %v10303_v57 = vpop.f32.mrb[63].mxu0  ;;  %v10338_v9 = vpop.f32.mrb[63].mxu1 }
0x1958   :  { %v10304_v10 = vadd.f32 %v10303_v57, %v10302_v28  ;;  %v10339_v12 = vadd.f32 %v10338_v9, %v10337_v60  ;;  %v8013_v60 = vld [vmem:[%s13952_s11 + $0x21] ss:$0 sm:$0xff]  ;;  %v8014_v9 = vld [vmem:[%s13952_s11 + $0x22] ss:$0 sm:$0xff] }
0x195a   :  { %v7337_v13 = vadd.f32 %v10339_v12, %v10304_v10 }
0x1976   :  { %v10372_v21 = vpop.f32.mrb[64].mxu0  ;;  %v10407_v50 = vpop.f32.mrb[64].mxu1 }
0x1977   :  { %v10373_v15 = vpop.f32.mrb[65].mxu0  ;;  %v10408_v25 = vpop.f32.mrb[65].mxu1 }
0x1978   :  { %v10374_v27 = vadd.f32 %v10373_v15, %v10372_v21  ;;  %v10409_v16 = vadd.f32 %v10408_v25, %v10407_v50 }
0x197a   :  { %v7407_v22 = vadd.f32 %v10374_v27, %v7337_v13 }
0x197c   :  { %v7477_v30 = vadd.f32 %v10409_v16, %v7407_v22 }
0x1996   :  { %v10442_v23 = vpop.f32.mrb[66].mxu0 }
0x1997   :  { %v10477_v24 = vpop.f32.mrb[66].mxu1  ;;  %v10443_v17 = vpop.f32.mrb[67].mxu0 }
0x1998   :  { %v10444_v11 = vadd.f32 %v10443_v17, %v10442_v23  ;;  %v10478_v1 = vpop.f32.mrb[67].mxu1 }
0x1999   :  { %v10479_v3 = vadd.f32 %v10478_v1, %v10477_v24 }
0x199a   :  { %v7547_v45 = vadd.f32 %v10444_v11, %v7477_v30 }
0x199c   :  { %v7617_v59 = vadd.f32 %v10479_v3, %v7547_v45 }
0x19b6   :  { %v10512_v46 = vpop.f32.mrb[68].mxu0 }
0x19b7   :  { %v10547_v40 = vpop.f32.mrb[68].mxu1  ;;  %v10513_v19 = vpop.f32.mrb[69].mxu0 }
0x19b8   :  { %v10514_v26 = vadd.f32 %v10513_v19, %v10512_v46  ;;  %v10548_v14 = vpop.f32.mrb[69].mxu1 }
0x19b9   :  { %v10549_v31 = vadd.f32 %v10548_v14, %v10547_v40 }
0x19ba   :  { %v7687_v62 = vadd.f32 %v10514_v26, %v7617_v59 }
0x19bc   :  { %v7757_v61 = vadd.f32 %v10549_v31, %v7687_v62 }
0x19be   :  { %v7769_v18 = vadd.f32 %v7767_v20, %v7757_v61 }
0x19c0   :  { %7771 = vrot.lane.b32.xlu1 %v7769_v18, %s13139_s18 }
0x1a32   :  { %v7772_v32 = vpop.permute.xlu1 %7771 }
0x1a33   :  { %v7774_v33 = vadd.f32 %v7772_v32, %v13825_v2 }
0x1a35   :  { %v7777_v34 = vsel %vm294_vm2, %v7774_v33, 0.0 }
0x1a36   :  { %7778 = vadd.xlane.f32.xlu1 %v7777_v34 }
0x1ac3   :  { %v7779_v36 = vpop.xlane.xlu1 %7778 }
0x1ac4   :  { %v7780_v38 = vmul.f32 0.015625, %v7779_v36 }
0x1ac6   :  { %v7781_v41 = vsub.f32 %v7774_v33, %v7780_v38 }
0x1ac8   :  { %v7782_v42 = vmul.f32 %v7781_v41, %v7781_v41 }
0x1aca   :  { %v7783_v43 = vsel %vm294_vm2, %v7782_v42, 0.0 }
0x1acb   :  { %7784 = vadd.xlane.f32.xlu0 %v7783_v43 }
0x1b58   :  { %v7785_v44 = vpop.xlane.xlu0 %7784 }
0x1b59   :  { %v7786_v29 = vmul.f32 0.015625, %v7785_v44 }
0x1b5b   :  { %v7787_v63 = vadd.f32 1e-05, %v7786_v29 }
0x1b5d   :  { %12592 = vrsqrt.f32 %v7787_v63 }
0x1b67   :  { %v12593_v47 = vpop.eup %12592 }
0x1b68   :  { %v7789_v2 = vmul.f32 %v12593_v47, %v7781_v41 }
0x1b6a   :  { %v7794_v48 = vmul.f32 %v8011_v37, %v7789_v2 }
0x1b6c   :  { %v7799_v51 = vadd.f32 %v8012_v49, %v7794_v48 }
0x1b6e   :  { %v7802_v52 = vsel %vm294_vm2, %v7799_v51, 0.0 }
0x1b6f   :  { %7803 = vadd.xlane.f32.xlu1 %v7802_v52 }
0x1bfc   :  { %v7804_v53 = vpop.xlane.xlu1 %7803 }
0x1bfd   :  { %v7805_v54 = vmul.f32 0.015625, %v7804_v53 }
0x1bff   :  { %v7806_v56 = vsub.f32 %v7799_v51, %v7805_v54 }
0x1c01   :  { %v7807_v58 = vmul.f32 %v7806_v56, %v7806_v56 }
0x1c03   :  { %v7808_v8 = vsel %vm294_vm2, %v7807_v58, 0.0 }
0x1c04   :  { %7809 = vadd.xlane.f32.xlu1 %v7808_v8 }
0x1c91   :  { %v7810_v39 = vpop.xlane.xlu1 %7809 }
0x1c92   :  { %v7811_v7 = vmul.f32 0.015625, %v7810_v39 }
0x1c94   :  { %v7812_v6 = vadd.f32 1e-05, %v7811_v7 }
0x1c96   :  { %12594 = vrsqrt.f32 %v7812_v6 }
0x1ca0   :  { %v12595_v28 = vpop.eup %12594 }
0x1ca1   :  { %v7814_v57 = vmul.f32 %v12595_v28, %v7806_v56 }
0x1ca3   :  { %v7819_v10 = vmul.f32 %v8013_v60, %v7814_v57 }
0x1ca5   :  { %v7824_v12 = vadd.f32 %v8014_v9, %v7819_v10 }
0x1ca7   :  { %10682 = vmatmul.mubr.msk.f32.vlgmr.msra.gmra.mrb[70].mxu0 %vm294_vm2, %v7824_v12 }
0x1d7a   :  { %v7917_v13 = vpop.f32.mrb[70].mxu0 }
0x1d7b   :  { %v7918_v21 = vadd.f32 %v8015_v0, %v7917_v13  ;;  %v10683_v50 = vpop.f32.mrb[71].mxu0 }
0x1d7d   :  { %7921 = vst [vmem:[#allocation20] sm:$0xff] %v7918_v21 }
0x1d7e   :  { %13113 = shalt.err (!%p13110_p8)
}
0x1d7f   :  { %s13114_s27 = scalar_lea.hbm %s13954_s13, 128 }
0x1d80   :  { %p13115_p9 = scmp.ne.s32.totalorder %s13954_s13, %s13114_s27  ;;  %p13118_p10 = scmp.lt.u32.totalorder %s13114_s27, %s13954_s13 }
0x1d82   :  { %p13120_p11 = pnand %p13118_p10, %p13115_p9 }
0x1d84   :  { %13123 = shalt.err (!%p13120_p11)
}
0x1d85   :  { %7931 = dma.vmem_to_hbm [thread:$0]  %s7929_s1, 128, %s13954_s13, [#allocation4]  }
0x1d86   :  { %13136 = dma.done.wait [#allocation4], 128  }
0x1d87   :  { %13137 = vsyncadd [#allocation4], 4294967168 }
0x1d88   :  { %7935 = vsyncpa [#allocation3], 1 }
0x1d89   :  { %7936 = vsyncpa [#allocation6], 1 }
0x1d8a   :  { %7937 = vsyncpa [#allocation9], 1 }
0x1d8b   :  { %7938 = vsyncpa [#allocation12], 1 }
0x1d8c   :  { %7939 = vsyncpa [#allocation15], 1 }
0x1d8d   :  { %7940 = vsyncpa [#allocation18], 1 }
0x1d8e   :  { %7941 = vsyncpa [#allocation4], 1 }

</bundles_post_ra>
